<compile_context>
chip_gen: v6e
topology: v6e:2x2x1
jax: 0.10.0
libtpu: 0.0.40
codegen_flags: <defaults>
</compile_context>

<pallas_src>
import jax
import jax.numpy as jnp
from jax.experimental import pallas as pl
from jax.experimental.pallas import tpu as pltpu

# Module hyper-parameters (fixed by the PyTorch spec).
SAMPLE_RATE = 22050
N_FFT = 4096
HOP_LENGTH = 1024
F_MIN = 10.0
N_MELS = 512

FREQ_BLOCK = 128  # frequency-axis tile (reduction axis of the kernel grid)


# ----------------------------------------------------------------------------- helpers
def _hann_window(n):
    # torch.hann_window(n) default is periodic.
    i = jnp.arange(n, dtype=jnp.float32)
    return 0.5 - 0.5 * jnp.cos(2.0 * jnp.pi * i / n)


def _dft_matrices(n_fft, n_freqs_pad):
    """cos/sin DFT matrices of shape (n_fft, n_freqs_pad); columns >= n_fft//2+1 are zero."""
    n = jnp.arange(n_fft, dtype=jnp.int32)
    k = jnp.arange(n_freqs_pad, dtype=jnp.int32)
    prod = (n[:, None] * k[None, :]) % n_fft            # exact angle index (fits int32)
    ang = (2.0 * jnp.pi / n_fft) * prod.astype(jnp.float32)
    n_freqs = n_fft // 2 + 1
    valid = (k < n_freqs)[None, :]
    cos_m = jnp.where(valid, jnp.cos(ang), 0.0)
    sin_m = jnp.where(valid, jnp.sin(ang), 0.0)
    return cos_m, sin_m


def _mel_filterbank(n_freqs, n_freqs_pad, n_mels, sample_rate, f_min, f_max):
    """torchaudio.functional.melscale_fbanks (htk scale, norm=None), zero-padded rows."""
    def hz_to_mel(f):
        return 2595.0 * jnp.log10(1.0 + f / 700.0)

    def mel_to_hz(m):
        return 700.0 * (10.0 ** (m / 2595.0) - 1.0)

    all_freqs = jnp.linspace(0.0, sample_rate / 2.0, n_freqs)
    m_pts = jnp.linspace(hz_to_mel(jnp.float32(f_min)),
                         hz_to_mel(jnp.float32(f_max)), n_mels + 2)
    f_pts = mel_to_hz(m_pts)
    f_diff = f_pts[1:] - f_pts[:-1]                      # (n_mels + 1,)
    slopes = f_pts[None, :] - all_freqs[:, None]         # (n_freqs, n_mels + 2)
    down = -slopes[:, :-2] / f_diff[:-1]
    up = slopes[:, 2:] / f_diff[1:]
    fb = jnp.maximum(0.0, jnp.minimum(down, up)).astype(jnp.float32)  # (n_freqs, n_mels)
    return jnp.pad(fb, ((0, n_freqs_pad - n_freqs), (0, 0)))


def _frame_and_window(x, n_frames):
    """Reflect-pad, extract overlapping frames, apply Hann window. x: (B, L) f32."""
    pad = N_FFT // 2
    xp = jnp.pad(x, ((0, 0), (pad, pad)), mode="reflect")
    starts = jnp.arange(n_frames) * HOP_LENGTH
    gather_idx = starts[:, None] + jnp.arange(N_FFT)[None, :]     # (n_frames, N_FFT)
    frames = xp[:, gather_idx]                                    # (B, n_frames, N_FFT)
    return frames * _hann_window(N_FFT)[None, None, :]


# ----------------------------------------------------------------------------- kernel
def _logmel_kernel(frames_ref,   # (BT, N_FFT)      resident across the grid
                   cos_ref,      # (N_FFT, FBLK)    DFT cos block for this freq tile
                   sin_ref,      # (N_FFT, FBLK)    DFT sin block
                   fb_ref,       # (FBLK, N_MELS)   mel filterbank block
                   out_ref,      # (BT, N_MELS)     lane-dense log-mel output
                   acc_ref):     # (BT, N_MELS)     f32 accumulator scratch
    k = pl.program_id(0)

    @pl.when(k == 0)
    def _():
        acc_ref[...] = jnp.zeros_like(acc_ref)

    f = frames_ref[...]
    re = jnp.dot(f, cos_ref[...], preferred_element_type=jnp.float32)
    im = jnp.dot(f, sin_ref[...], preferred_element_type=jnp.float32)
    power = re * re + im * im                                    # |rFFT|^2 for this tile
    acc_ref[...] += jnp.dot(power, fb_ref[...], preferred_element_type=jnp.float32)

    @pl.when(k == pl.num_programs(0) - 1)
    def _():
        out_ref[...] = jnp.log(jnp.maximum(acc_ref[...], 1e-6)).astype(out_ref.dtype)


# ----------------------------------------------------------------------------- wrapper
def log_mel_spectrogram(x):
    """x: (B, L) float waveform. Returns (B, n_mels, n_frames) float32 log-mel."""
    x = x.astype(jnp.float32)
    B, L = x.shape

    n_freqs = N_FFT // 2 + 1
    n_freqs_pad = ((n_freqs + FREQ_BLOCK - 1) // FREQ_BLOCK) * FREQ_BLOCK
    n_frames = 1 + L // HOP_LENGTH                   # center=True framing
    tf_pad = ((n_frames + 7) // 8) * 8               # sublane-aligned frame count
    bt = B * tf_pad

    frames = _frame_and_window(x, n_frames)                          # (B, n_frames, N_FFT)
    frames = jnp.pad(frames, ((0, 0), (0, tf_pad - n_frames), (0, 0)))
    frames2d = frames.reshape(bt, N_FFT)

    cos_m, sin_m = _dft_matrices(N_FFT, n_freqs_pad)                 # (N_FFT, n_freqs_pad)
    fb = _mel_filterbank(n_freqs, n_freqs_pad, N_MELS,
                         SAMPLE_RATE, F_MIN, SAMPLE_RATE / 2.0)      # (n_freqs_pad, N_MELS)

    n_kblocks = n_freqs_pad // FREQ_BLOCK

    grid_spec = pltpu.PrefetchScalarGridSpec(
        num_scalar_prefetch=0,
        grid=(n_kblocks,),
        in_specs=[
            pl.BlockSpec((bt, N_FFT), lambda k: (0, 0)),             # frames (loaded once)
            pl.BlockSpec((N_FFT, FREQ_BLOCK), lambda k: (0, k)),     # cos tile
            pl.BlockSpec((N_FFT, FREQ_BLOCK), lambda k: (0, k)),     # sin tile
            pl.BlockSpec((FREQ_BLOCK, N_MELS), lambda k: (k, 0)),    # fbank tile
        ],
        out_specs=pl.BlockSpec((bt, N_MELS), lambda k: (0, 0)),
        scratch_shapes=[pltpu.VMEM((bt, N_MELS), jnp.float32)],
    )

    mel2d = pl.pallas_call(
        _logmel_kernel,
        out_shape=jax.ShapeDtypeStruct((bt, N_MELS), jnp.float32),
        grid_spec=grid_spec,
        compiler_params=pltpu.CompilerParams(
            dimension_semantics=("arbitrary",),       # single reduction axis
            vmem_limit_bytes=32 * 1024 * 1024),
    )(frames2d, cos_m, sin_m, fb)

    mel = mel2d.reshape(B, tf_pad, N_MELS)[:, :n_frames, :]
    return jnp.swapaxes(mel, 1, 2)                    # (B, n_mels, n_frames) torch layout


# ----------------------------------------------------------------------------- demo
if __name__ == "__main__":
    B, L = 2, 4096                                    # small: 2 waveforms of 4096 samples
    key = jax.random.PRNGKey(0)
    x = jax.random.normal(key, (B, L), dtype=jnp.float32)

    out = jax.block_until_ready(log_mel_spectrogram(x))

    # Pure-JAX reference (same DFT-as-matmul formulation of the rFFT).
    n_freqs = N_FFT // 2 + 1
    n_frames = 1 + L // HOP_LENGTH
    frames_ref = _frame_and_window(x.astype(jnp.float32), n_frames)  # (B, n_frames, N_FFT)
    cos_r, sin_r = _dft_matrices(N_FFT, n_freqs)
    fb_r = _mel_filterbank(n_freqs, n_freqs, N_MELS, SAMPLE_RATE, F_MIN, SAMPLE_RATE / 2.0)
    re = jnp.einsum("btn,nk->btk", frames_ref, cos_r)
    im = jnp.einsum("btn,nk->btk", frames_ref, sin_r)
    power = re * re + im * im
    mel_ref = jnp.einsum("btk,km->btm", power, fb_r)
    ref = jnp.swapaxes(jnp.log(jnp.maximum(mel_ref, 1e-6)), 1, 2)    # (B, n_mels, n_frames)

    assert out.shape == (B, N_MELS, n_frames), out.shape
    assert bool(jnp.all(jnp.isfinite(out)))
    assert jnp.allclose(out, ref, atol=5e-2, rtol=1e-2), \
        f"mismatch vs reference, max abs diff {float(jnp.max(jnp.abs(out - ref)))}"
    print("KERNEL_OK")
</pallas_src>

<mosaic_0001>
module attributes {stable_mosaic.version = 11 : i64} {
  func.func @_logmel_kernel(%arg0: i32, %arg1: memref<16x4096xf32, #tpu.memory_space<vmem>>, %arg2: memref<4096x128xf32, #tpu.memory_space<vmem>>, %arg3: memref<4096x128xf32, #tpu.memory_space<vmem>>, %arg4: memref<128x512xf32, #tpu.memory_space<vmem>>, %arg5: memref<16x512xf32, #tpu.memory_space<vmem>>, %arg6: memref<16x512xf32, #tpu.memory_space<vmem>>) attributes {dimension_semantics = [#tpu.dimension_semantics<arbitrary>], iteration_bounds = array<i64: 17>, scalar_prefetch = 0 : i64, scratch_operands = 1 : i64, tpu.core_type = #tpu.core_type<tc>, window_params = [{pipeline_mode = #tpu.pipeline_mode<synchronous>, transform_indices = @transform_0, window_bounds = array<i64: 16, 4096>}, {transform_indices = @transform_1, window_bounds = array<i64: 4096, 128>}, {transform_indices = @transform_2, window_bounds = array<i64: 4096, 128>}, {transform_indices = @transform_3, window_bounds = array<i64: 128, 512>}, {pipeline_mode = #tpu.pipeline_mode<synchronous>, transform_indices = @transform_4, window_bounds = array<i64: 16, 512>}]} {
    %c0_i32 = arith.constant 0 : i32
    %0 = arith.cmpi eq, %arg0, %c0_i32 : i32
    %1 = arith.extui %0 : i1 to i32
    %c0_i32_0 = arith.constant 0 : i32
    %2 = arith.cmpi ne, %1, %c0_i32_0 : i32
    scf.if %2 {
      %cst_15 = arith.constant 0.000000e+00 : f32
      %19 = vector.broadcast %cst_15 : f32 to vector<16x512xf32>
      %c0_16 = arith.constant 0 : index
      %c0_17 = arith.constant 0 : index
      %20 = vector.load %arg6[%c0_16, %c0_17] : memref<16x512xf32, #tpu.memory_space<vmem>>, vector<16x512xf32>
      tpu.vector_store %arg6[%c0_16, %c0_17], %19 {strides = array<i32>} : memref<16x512xf32, #tpu.memory_space<vmem>>, vector<16x512xf32>,
    } else {
    }
    %c0 = arith.constant 0 : index
    %c0_1 = arith.constant 0 : index
    %3 = vector.load %arg1[%c0, %c0_1] : memref<16x4096xf32, #tpu.memory_space<vmem>>, vector<16x4096xf32>
    %c0_2 = arith.constant 0 : index
    %c0_3 = arith.constant 0 : index
    %4 = vector.load %arg2[%c0_2, %c0_3] : memref<4096x128xf32, #tpu.memory_space<vmem>>, vector<4096x128xf32>
    %cst = arith.constant dense<0.000000e+00> : vector<16x128xf32>
    %5 = tpu.matmul %3, %4, %cst {dimension_numbers = #tpu.dot_dimension_numbers<[1], [0], [0], [1], [0, 0, 1, 1], [], []>} : vector<16x4096xf32>, vector<4096x128xf32>, vector<16x128xf32> -> vector<16x128xf32>
    %c0_4 = arith.constant 0 : index
    %c0_5 = arith.constant 0 : index
    %6 = vector.load %arg3[%c0_4, %c0_5] : memref<4096x128xf32, #tpu.memory_space<vmem>>, vector<4096x128xf32>
    %cst_6 = arith.constant dense<0.000000e+00> : vector<16x128xf32>
    %7 = tpu.matmul %3, %6, %cst_6 {dimension_numbers = #tpu.dot_dimension_numbers<[1], [0], [0], [1], [0, 0, 1, 1], [], []>} : vector<16x4096xf32>, vector<4096x128xf32>, vector<16x128xf32> -> vector<16x128xf32>
    %8 = arith.mulf %5, %5 : vector<16x128xf32>
    %9 = arith.mulf %7, %7 : vector<16x128xf32>
    %10 = arith.addf %8, %9 : vector<16x128xf32>
    %c0_7 = arith.constant 0 : index
    %c0_8 = arith.constant 0 : index
    %11 = vector.load %arg6[%c0_7, %c0_8] : memref<16x512xf32, #tpu.memory_space<vmem>>, vector<16x512xf32>
    %c0_9 = arith.constant 0 : index
    %c0_10 = arith.constant 0 : index
    %12 = vector.load %arg4[%c0_9, %c0_10] : memref<128x512xf32, #tpu.memory_space<vmem>>, vector<128x512xf32>
    %cst_11 = arith.constant dense<0.000000e+00> : vector<16x512xf32>
    %13 = tpu.matmul %10, %12, %cst_11 {dimension_numbers = #tpu.dot_dimension_numbers<[1], [0], [0], [1], [0, 0, 1, 1], [], []>} : vector<16x128xf32>, vector<128x512xf32>, vector<16x512xf32> -> vector<16x512xf32>
    %14 = arith.addf %11, %13 : vector<16x512xf32>
    %c0_12 = arith.constant 0 : index
    %c0_13 = arith.constant 0 : index
    %15 = vector.load %arg6[%c0_12, %c0_13] : memref<16x512xf32, #tpu.memory_space<vmem>>, vector<16x512xf32>
    tpu.vector_store %arg6[%c0_12, %c0_13], %14 {strides = array<i32>} : memref<16x512xf32, #tpu.memory_space<vmem>>, vector<16x512xf32>,
    %c16_i32 = arith.constant 16 : i32
    %16 = arith.cmpi eq, %arg0, %c16_i32 : i32
    %17 = arith.extui %16 : i1 to i32
    %c0_i32_14 = arith.constant 0 : i32
    %18 = arith.cmpi ne, %17, %c0_i32_14 : i32
    scf.if %18 {
      %c0_15 = arith.constant 0 : index
      %c0_16 = arith.constant 0 : index
      %19 = vector.load %arg6[%c0_15, %c0_16] : memref<16x512xf32, #tpu.memory_space<vmem>>, vector<16x512xf32>
      %cst_17 = arith.constant 9.99999997E-7 : f32
      %20 = vector.broadcast %cst_17 : f32 to vector<16x512xf32>
      %21 = arith.maximumf %19, %20 : vector<16x512xf32>
      %22 = math.log %21 : vector<16x512xf32>
      %c0_18 = arith.constant 0 : index
      %c0_19 = arith.constant 0 : index
      %23 = vector.load %arg5[%c0_18, %c0_19] : memref<16x512xf32, #tpu.memory_space<vmem>>, vector<16x512xf32>
      tpu.vector_store %arg5[%c0_18, %c0_19], %22 {strides = array<i32>} : memref<16x512xf32, #tpu.memory_space<vmem>>, vector<16x512xf32>,
    } else {
    }
    return
  }
  func.func @transform_0(%arg0: i32) -> (i32, i32) {
    %c0_i32 = arith.constant 0 : i32
    %c0_i32_0 = arith.constant 0 : i32
    %c0_i32_1 = arith.constant 0 : i32
    return %c0_i32, %c0_i32_0 : i32, i32
  }
  func.func @transform_1(%arg0: i32) -> (i32, i32) {
    %c0_i32 = arith.constant 0 : i32
    %c0_i32_0 = arith.constant 0 : i32
    return %c0_i32, %arg0 : i32, i32
  }
  func.func @transform_2(%arg0: i32) -> (i32, i32) {
    %c0_i32 = arith.constant 0 : i32
    %c0_i32_0 = arith.constant 0 : i32
    return %c0_i32, %arg0 : i32, i32
  }
  func.func @transform_3(%arg0: i32) -> (i32, i32) {
    %c0_i32 = arith.constant 0 : i32
    %c0_i32_0 = arith.constant 0 : i32
    return %arg0, %c0_i32 : i32, i32
  }
  func.func @transform_4(%arg0: i32) -> (i32, i32) {
    %c0_i32 = arith.constant 0 : i32
    %c0_i32_0 = arith.constant 0 : i32
    %c0_i32_1 = arith.constant 0 : i32
    return %c0_i32, %c0_i32_0 : i32, i32
  }
}

</mosaic_0001>

<bundles_post_ra>
// kernel: tpu_custom_call.1
= control target key start
LH: loop header
LB: loop body
LE: loop exit
PB: predicated region body
PF: predicated region fallthrough
CT: control target
= control target key end

     0   :  { %9 = vsyncpa [#allocation4], 0  ;;  %s7209_s0 = inlined_call_operand.hbm [shape: f32[16,4096], index: 0, kind: input, shape index: {}]   ;;  %s7210_s1 = inlined_call_operand.hbm [shape: f32[4096,2176], index: 1, kind: input, shape index: {}]   ;;  %s7211_s2 = inlined_call_operand.hbm [shape: f32[4096,2176], index: 2, kind: input, shape index: {}]   ;;  %s7212_s3 = inlined_call_operand.hbm [shape: f32[2176,512], index: 3, kind: input, shape index: {}]   ;;  %s7213_s4 = inlined_call_operand.hbm [shape: f32[16,512], index: 4, kind: output, shape index: {}]  }
   0x1   :  { %10 = vsyncpa [#allocation7], 0 }
   0x2   :  { %12 = vsyncpa [#allocation7 + $0x1], 0 }
   0x3   :  { %13 = vsyncpa [#allocation10], 0 }
   0x4   :  { %15 = vsyncpa [#allocation10 + $0x1], 0 }
   0x5   :  { %16 = vsyncpa [#allocation5], 0  ;;  %s5824_s15 = smov 0   ;;  %s5826_s16 = smov 0  }
   0x6   :  { %s5828_s17 = smov 0   ;;  %s5830_s18 = smov 0  }
   0x7 LB: > { %s5845_s19 = sadd.s32 1, %s5781_s18   ;;  %s50_s20 = sadd.s32 1, %s5777_s17  ;;  %s5781_s18 = sphi %s5830_s18, %s7235_s18   ;;  %s5777_s17 = sphi %s5828_s17, %s7234_s17   ;;  %s5773_s16 = sphi %s5826_s16, %s7233_s16   ;;  %s5769_s15 = sphi %s5824_s15, %s7232_s15  }
   0x8   : > { %s47_s21 = ssub.s32 %s5781_s18, %s5845_s19  ;;  %p57_p0 = scmp.ne.s32.totalorder %s5777_s17, %s5773_s16 }
   0x9   : > { %p48_p1 = scmp.eq.s32.totalorder %s47_s21, 0  ;;  %p58_p2 = scmp.eq.s32.totalorder %s5781_s18, 0 }
   0xa   : > { %p5472_p3 = scmp.lt.s32.totalorder %s5781_s18, 17  ;;  %s173_s23 = sand.u32 1, %s5781_s18  }
   0xb   : > { %s5855_s22 = scalar_select %p48_p1, %s5777_s17, %s50_s20  }
   0xc   : > { %p59_p4 = por %p58_p2, %p57_p0  ;;  %s5859_s24 = sand.u32 1, %s5777_s17  }
   0xd   : > { %s4206_s25 = sshll.u32 %s5859_s24, 12  ;;  %s4207_s26 = sshll.u32 %s5781_s18, 7 }
   0xe   : > { %s5868_s29 = scalar_lea.hbm %s7210_s1, %s4207_s26  ;;  %s177_s30 = scalar_lea.vmem [#allocation6], %s4206_s25 }
   0xf   : > { %s183_s5 = sshll.u32 %s177_s30, 4  ;;  %p5872_p5 = pnand %p5472_p3, %p59_p4  ;;  %s5876_s5 = int_to_ptr.vmem [resolvable:$true] %s183_s5 }
  0x10   : > { %s5878_s7 = scalar_lea.sflag [#allocation7], %s173_s23  ;;  %s5601_s8 = scalar_lea.hbm %s5868_s29, 65536 }
  0x11   : > { %p5602_p6 = scmp.ne.s32.totalorder %s5868_s29, %s5601_s8  ;;  %p5884_p7 = pneg %p5872_p5 }
  0x12   : > { %s5606_s12 = scalar_lea.hbm %s7210_s1, 1114112  ;;  %p5607_p10 = scmp.lt.s32.totalorder %s5868_s29, %s7210_s1 }
  0x13   : > { %p5604_p8 = pnand %p5884_p7, %p5602_p6  ;;  %p5608_p11 = scmp.lt.s32.totalorder %s5606_s12, %s5601_s8 }
  0x15   : > { %p5605_p9 = pneg %p5604_p8  ;;  %p5609_p12 = por %p5608_p11, %p5607_p10 }
  0x17   : > { %p5610_p13 = pnand %p5609_p12, %p5605_p9 }
  0x19   : > { %5613 = shalt.err (!%p5610_p13)
}
  0x1a   : > { %s5614_s20 = scalar_lea.vmem %s5876_s5, 65536  ;;  %s5783_s21 = smov [#allocation6]  }
  0x1b   : > { %p5615_p0 = scmp.ne.s32.totalorder %s5876_s5, %s5614_s20  ;;  %s5619_s23 = sshll.u32 %s5783_s21, 4  ;;  %s5620_s23 = int_to_ptr.vmem [resolvable:$false] %s5619_s23 }
  0x1c   : > { %s5621_s27 = scalar_lea.vmem %s5620_s23, 131072  ;;  %p5622_p3 = scmp.lt.s32.totalorder %s5876_s5, %s5620_s23 }
  0x1d   : > { %p5617_p1 = pnand %p5615_p0, %p5884_p7  ;;  %p5623_p4 = scmp.lt.s32.totalorder %s5621_s27, %s5614_s20 }
  0x1f   : > { %p5618_p2 = pneg %p5617_p1  ;;  %p5624_p6 = por %p5623_p4, %p5622_p3 }
  0x21   : > { %p5625_p8 = pnand %p5624_p6, %p5618_p2 }
  0x23   : > { %5628 = shalt.err (!%p5625_p8)
}
  0x24   : > { %s7214_s28 = smov 2176   ;;  %s5785_s30 = smov 128  }
  0x25   : > { %s5786_s8 = smov 8   ;;  %s5915_s12 = scalar_lea.hbm %s7211_s2, %s4207_s26 }
  0x26   : > { %5464 = dma.hbm_to_vmem [thread:$0]  (!%p5872_p5), %s5868_s29, 65536, %s5876_s5, %s5878_s7, %s7214_s28, %s5785_s30, %s5786_s8  }
  0x27   : > { %s197_s13 = scalar_lea.vmem [#allocation8], %s4206_s25  ;;  %s5922_s20 = sadd.s32 4294967295, %s5781_s18  }
  0x28   : > { %s203_s14 = sshll.u32 %s197_s13, 4  ;;  %p63_p9 = scmp.ne.s32.totalorder %s5773_s16, %s5769_s15  ;;  %s5919_s14 = int_to_ptr.vmem [resolvable:$true] %s203_s14 }
  0x29   : > { %p7215_p10 = scmp.eq.s32.totalorder %s5922_s20, 0  ;;  %p4203_p11 = scmp.ge.s32.totalorder %s5781_s18, 1 }
  0x2a   : > { %p147_p12 = scmp.lt.s32.totalorder %s5781_s18, 18  ;;  %s5787_s29 = smov [#allocation3]  }
  0x2b   : > { %p5931_p13 = por %p7215_p10, %p63_p9  ;;  %s159_s5 = sshll.u32 %s5787_s29, 4  ;;  %s5942_s5 = int_to_ptr.vmem [resolvable:$true] %s159_s5 }
  0x2c   : > { %p5936_p1 = pnand %p4203_p11, %p147_p12  ;;  %s5629_s23 = scalar_lea.hbm %s5915_s12, 65536 }
  0x2d   : > { %s7221_s25 = scalar_select %p5931_p13, 1, 0 }
  0x2e   : > { %s7222_s26 = scalar_select %p5936_p1, 1, 0 }
  0x2f   : > { %p5457_p2 = pneg %p5936_p1  ;;  %p5630_p4 = scmp.ne.s32.totalorder %s5915_s12, %s5629_s23 }
  0x30   : > { %s5634_s11 = scalar_lea.hbm %s7211_s2, 1114112  ;;  %p5635_p9 = scmp.lt.s32.totalorder %s5915_s12, %s7211_s2 }
  0x31   : > { %p5946_p3 = pnand %p5457_p2, %p7215_p10  ;;  %p5632_p6 = pnand %p5630_p4, %p5884_p7 }
  0x32   : > { %p5636_p11 = scmp.lt.s32.totalorder %s5634_s11, %s5629_s23 }
  0x33   : > { %s7223_s15 = scalar_select %p5946_p3, 1, 0 }
  0x34   : > { %p5633_p8 = pneg %p5632_p6  ;;  %p5637_p12 = por %p5636_p11, %p5635_p9 }
  0x36   : > { %p5638_p2 = pnand %p5637_p12, %p5633_p8 }
  0x38   : > { %5641 = shalt.err (!%p5638_p2)
}
  0x39   : > { %s5642_s21 = scalar_lea.vmem %s5919_s14, 65536  ;;  %s5788_s28 = smov [#allocation8]  }
  0x3a   : > { %p5643_p0 = scmp.ne.s32.totalorder %s5919_s14, %s5642_s21  ;;  %s5647_s27 = sshll.u32 %s5788_s28, 4  ;;  %s5648_s27 = int_to_ptr.vmem [resolvable:$false] %s5647_s27 }
  0x3b   : > { %s5649_s10 = scalar_lea.vmem %s5648_s27, 131072  ;;  %p5650_p10 = scmp.lt.s32.totalorder %s5919_s14, %s5648_s27 }
  0x3c   : > { %p5645_p4 = pnand %p5643_p0, %p5884_p7  ;;  %p5651_p13 = scmp.lt.s32.totalorder %s5649_s10, %s5642_s21 }
  0x3e   : > { %p5646_p6 = pneg %p5645_p4  ;;  %p5652_p1 = por %p5651_p13, %p5650_p10 }
  0x40   : > { %p5653_p3 = pnand %p5652_p1, %p5646_p6 }
  0x42   : > { %5656 = shalt.err (!%p5653_p3)
}
  0x43   : > { %s7224_s23 = smov 2176   ;;  %p7225_p0 = scmp.ne.s32.totalorder %s7223_s15, 0 }
  0x44   : > { %5467 = dma.hbm_to_vmem [thread:$0]  (!%p5872_p5), %s5915_s12, 65536, %s5919_s14, %s5878_s7, %s7224_s23, %s5785_s30, %s5786_s8  }
  0x45   : > { %p5659_p8 = pneg %p7225_p0  ;;  %s5668_s28 = scalar_lea.vmem %s5942_s5, 8192 }
  0x46   : > { %p5669_p9 = scmp.ne.s32.totalorder %s5942_s5, %s5668_s28  ;;  %p5676_p1 = scmp.lt.s32.totalorder %s5942_s5, %s5942_s5 }
  0x47   : > { %p5677_p3 = scmp.lt.s32.totalorder %s5668_s28, %s5668_s28 }
  0x48   : > { %p5671_p10 = pnand %p5669_p9, %p5659_p8 }
  0x49   : > { %p5678_p11 = por %p5677_p3, %p5676_p1 }
  0x4a   : > { %p5672_p13 = pneg %p5671_p10 }
  0x4c   : > { %p5679_p12 = pnand %p5678_p11, %p5672_p13 }
  0x4e   : > { %5682 = shalt.err (!%p5679_p12)
}
  0x4f   : > { %s5789_s21 = smov 4096   ;;  %s5790_s7 = smov 256  }
  0x50   : > { %5460 = dma.hbm_to_vmem [thread:$0]  (!%p7225_p0), %s7209_s0, 8192, %s5942_s5, [#allocation4], %s5789_s21, %s5789_s21, %s5790_s7  }
  0x51   : > { %s4226_s12 = sshll.u32 %s5781_s18, 13  ;;  %s7226_s14 = sshll.u32 %s5859_s24, 9 }
  0x52   : > { %s217_s11 = scalar_lea.vmem [#allocation9], %s7226_s14  ;;  %s5993_s10 = scalar_lea.hbm %s7212_s3, %s4226_s12 }
  0x53   : > { %s225_s13 = sshll.u32 %s217_s11, 4  ;;  %s214_s23 = scalar_lea.sflag [#allocation10], %s5859_s24  ;;  %s5995_s13 = int_to_ptr.vmem [resolvable:$true] %s225_s13 }
  0x54   : > { %s5683_s15 = scalar_lea.hbm %s5993_s10, 8192  ;;  %s5688_s28 = scalar_lea.hbm %s7212_s3, 139264 }
  0x55   : > { %p5684_p2 = scmp.ne.s32.totalorder %s5993_s10, %s5683_s15  ;;  %p5689_p0 = scmp.lt.s32.totalorder %s5993_s10, %s7212_s3 }
  0x56   : > { %p5690_p8 = scmp.lt.s32.totalorder %s5688_s28, %s5683_s15 }
  0x57   : > { %p5686_p4 = pnand %p5684_p2, %p5884_p7 }
  0x58   : > { %p5691_p9 = por %p5690_p8, %p5689_p0 }
  0x59   : > { %p5687_p6 = pneg %p5686_p4 }
  0x5b   : > { %p5692_p10 = pnand %p5691_p9, %p5687_p6 }
  0x5d   : > { %5695 = shalt.err (!%p5692_p10)
}
  0x5e   : > { %s5696_s30 = scalar_lea.vmem %s5995_s13, 8192  ;;  %s5791_s8 = smov [#allocation9]  }
  0x5f   : > { %p5697_p13 = scmp.ne.s32.totalorder %s5995_s13, %s5696_s30  ;;  %s5701_s12 = sshll.u32 %s5791_s8, 4  ;;  %s5702_s12 = int_to_ptr.vmem [resolvable:$false] %s5701_s12 }
  0x60   : > { %s5703_s14 = scalar_lea.vmem %s5702_s12, 16384  ;;  %p5704_p11 = scmp.lt.s32.totalorder %s5995_s13, %s5702_s12 }
  0x61   : > { %p5699_p1 = pnand %p5697_p13, %p5884_p7  ;;  %p5705_p12 = scmp.lt.s32.totalorder %s5703_s14, %s5696_s30 }
  0x63   : > { %p5700_p3 = pneg %p5699_p1  ;;  %p5706_p2 = por %p5705_p12, %p5704_p11 }
  0x65   : > { %p5707_p4 = pnand %p5706_p2, %p5700_p3 }
  0x67   : > { %5710 = shalt.err (!%p5707_p4)
}
  0x68   : > { %s5792_s11 = smov 512   ;;  %s5793_s29 = smov 32  }
  0x69   : > { %5470 = dma.hbm_to_vmem [thread:$0]  (!%p5872_p5), %s5993_s10, 8192, %s5995_s13, %s214_s23, %s5792_s11, %s5792_s11, %s5793_s29  }
  0x6a   : > { %p7227_p7 = scmp.ne.s32.totalorder %s7222_s26, 0 }
  0x6b   : > { %p7228_p6 = scmp.eq.s32.totalorder (!%p7227_p7), %s5922_s20, 0 }
  0x6c   : > { %237 = sbr.rel (%p7227_p7) target bundleno = 1160 (0x488), region = 36 }
  0x71   : > { %5752 = dma.done.wait (%p7228_p6), [#allocation4], 8192   ;;  %p7229_p0 = pmov %p7228_p6 }
  0x72   : > { %s243_s9 = sand.u32 1, %s5922_s20   ;;  %s245_s27 = sand.u32 1, %s5773_s16  }
  0x73   : > { %5754 = vsyncadd (%p7229_p0), [#allocation4], 4294959104  ;;  %s4216_s15 = sshll.u32 %s245_s27, 12  ;;  %s244_s18 = scalar_lea.sflag [#allocation7], %s243_s9 }
  0x74   : > { %s6028_s5 = scalar_lea.vmem [#allocation6], %s4216_s15  ;;  %p7230_p8 = scmp.ne.s32.totalorder %s7221_s25, 0 }
  0x76   : > { %5756 = dma.done.wait (%p7230_p8), %s244_s18, 131072  }
  0x77   : > { %5758 = vsyncadd (%p7230_p8), %s244_s18, 4294836224  ;;  %s4218_s24 = sshll.u32 %s245_s27, 9  ;;  %s6034_s6 = scalar_lea.vmem [#allocation8], %s4216_s15 }
  0x78   : > { %s262_s26 = scalar_lea.sflag [#allocation10], %s245_s27  ;;  %s6036_s13 = scalar_lea.vmem [#allocation9], %s4218_s24 }
  0x79   : > { %5760 = dma.done.wait (%p7230_p8), %s262_s26, 8192  }
  0x7a   : > { %5762 = vsyncadd (%p7230_p8), %s262_s26, 4294959104  ;;  %p7231_p5 = scmp.ne.s32.totalorder %s5922_s20, 0 }
  0x7c   : > { %299 = sbr.rel (%p7231_p5) target bundleno = 134 (0x86), region = 56 }
  0x81   : > { %v5794_v0 = vmov 0.0  }
  0x82   : > { %300 = vst [vmem:[#allocation2 + $0x30] sm:$0xff] %v5794_v0  ;;  %301 = vst [vmem:[#allocation2] sm:$0xff] %v5794_v0 }
  0x83   : > { %302 = vst [vmem:[#allocation2 + $0x18] sm:$0xff] %v5794_v0  ;;  %303 = vst [vmem:[#allocation2 + $0x10] sm:$0xff] %v5794_v0 }
  0x84   : > { %304 = vst [vmem:[#allocation2 + $0x8] sm:$0xff] %v5794_v0  ;;  %305 = vst [vmem:[#allocation2 + $0x20] sm:$0xff] %v5794_v0 }
  0x85   : > { %306 = vst [vmem:[#allocation2 + $0x28] sm:$0xff] %v5794_v0  ;;  %307 = vst [vmem:[#allocation2 + $0x38] sm:$0xff] %v5794_v0 }
  0x86 PF: > { %v403_v1 = vld [vmem:[%s6028_s5 + $0xf8] sm:$0xff]  ;;  %v402_v5 = vld [vmem:[%s6028_s5 + $0xf0] sm:$0xff]  ;;  %v401_v9 = vld [vmem:[%s6028_s5 + $0xe8] sm:$0xff]  ;;  %p4220_p9 = scmp.ne.s32.totalorder %s5922_s20, 16 }
  0x87   : > { %v435_v2 = vld [vmem:[%s6028_s5 + $0x1f8] sm:$0xff]  ;;  %4227 = vmatprep.subr.mxu0 %v403_v1  ;;  %v434_v6 = vld [vmem:[%s6028_s5 + $0x1f0] sm:$0xff]  ;;  %v433_v10 = vld [vmem:[%s6028_s5 + $0x1e8] sm:$0xff] }
  0x88   : > { %v387_v3 = vld [vmem:[%s6028_s5 + $0x78] sm:$0xff]  ;;  %4265 = vmatprep.subr.mxu1 %v435_v2  ;;  %v386_v7 = vld [vmem:[%s6028_s5 + $0x70] sm:$0xff]  ;;  %v385_v11 = vld [vmem:[%s6028_s5 + $0x68] sm:$0xff] }
  0x89   : > { %v419_v4 = vld [vmem:[%s6028_s5 + $0x178] sm:$0xff]  ;;  %4228 = vmatpush3.msra.mxu0 %v387_v3  ;;  %v418_v8 = vld [vmem:[%s6028_s5 + $0x170] sm:$0xff]  ;;  %v417_v12 = vld [vmem:[%s6028_s5 + $0x168] sm:$0xff] }
  0x8a   : > { %4266 = vmatpush3.msra.mxu1 %v419_v4  ;;  %4229 = vmatprep.subr.mxu0 %v402_v5  ;;  %v400_v13 = vld [vmem:[%s6028_s5 + $0xe0] sm:$0xff]  ;;  %v399_v17 = vld [vmem:[%s6028_s5 + $0xd8] sm:$0xff]  ;;  %v398_v21 = vld [vmem:[%s6028_s5 + $0xd0] sm:$0xff] }
  0x8b   : > { %4267 = vmatprep.subr.mxu1 %v434_v6  ;;  %4230 = vmatpush3.msra.mxu0 %v386_v7  ;;  %v432_v14 = vld [vmem:[%s6028_s5 + $0x1e0] sm:$0xff]  ;;  %v431_v18 = vld [vmem:[%s6028_s5 + $0x1d8] sm:$0xff]  ;;  %v430_v22 = vld [vmem:[%s6028_s5 + $0x1d0] sm:$0xff] }
  0x8c   : > { %4268 = vmatpush3.msra.mxu1 %v418_v8  ;;  %4231 = vmatprep.subr.mxu0 %v401_v9  ;;  %v384_v15 = vld [vmem:[%s6028_s5 + $0x60] sm:$0xff]  ;;  %v383_v19 = vld [vmem:[%s6028_s5 + $0x58] sm:$0xff]  ;;  %v382_v23 = vld [vmem:[%s6028_s5 + $0x50] sm:$0xff] }
  0x8d   : > { %4269 = vmatprep.subr.mxu1 %v433_v10  ;;  %v416_v16 = vld [vmem:[%s6028_s5 + $0x160] sm:$0xff]  ;;  %4232 = vmatpush3.msra.mxu0 %v385_v11  ;;  %v415_v20 = vld [vmem:[%s6028_s5 + $0x158] sm:$0xff]  ;;  %v414_v24 = vld [vmem:[%s6028_s5 + $0x150] sm:$0xff] }
  0x8e   : > { %4270 = vmatpush3.msra.mxu1 %v417_v12  ;;  %4233 = vmatprep.subr.mxu0 %v400_v13  ;;  %v397_v25 = vld [vmem:[%s6028_s5 + $0xc8] sm:$0xff]  ;;  %v396_v29 = vld [vmem:[%s6028_s5 + $0xc0] sm:$0xff]  ;;  %v395_v33 = vld [vmem:[%s6028_s5 + $0xb8] sm:$0xff] }
  0x8f   : > { %4271 = vmatprep.subr.mxu1 %v432_v14  ;;  %4234 = vmatpush3.msra.mxu0 %v384_v15  ;;  %v429_v26 = vld [vmem:[%s6028_s5 + $0x1c8] sm:$0xff]  ;;  %v428_v30 = vld [vmem:[%s6028_s5 + $0x1c0] sm:$0xff]  ;;  %v427_v34 = vld [vmem:[%s6028_s5 + $0x1b8] sm:$0xff] }
  0x90   : > { %4272 = vmatpush3.msra.mxu1 %v416_v16  ;;  %4235 = vmatprep.subr.mxu0 %v399_v17  ;;  %v381_v27 = vld [vmem:[%s6028_s5 + $0x48] sm:$0xff]  ;;  %v380_v31 = vld [vmem:[%s6028_s5 + $0x40] sm:$0xff]  ;;  %v379_v35 = vld [vmem:[%s6028_s5 + $0x38] sm:$0xff] }
  0x91   : > { %4273 = vmatprep.subr.mxu1 %v431_v18  ;;  %4236 = vmatpush3.msra.mxu0 %v383_v19  ;;  %v413_v28 = vld [vmem:[%s6028_s5 + $0x148] sm:$0xff]  ;;  %v412_v32 = vld [vmem:[%s6028_s5 + $0x140] sm:$0xff]  ;;  %v411_v36 = vld [vmem:[%s6028_s5 + $0x138] sm:$0xff] }
  0x92   : > { %4274 = vmatpush3.msra.mxu1 %v415_v20  ;;  %4237 = vmatprep.subr.mxu0 %v398_v21  ;;  %v394_v37 = vld [vmem:[%s6028_s5 + $0xb0] sm:$0xff]  ;;  %v393_v41 = vld [vmem:[%s6028_s5 + $0xa8] sm:$0xff]  ;;  %v392_v45 = vld [vmem:[%s6028_s5 + $0xa0] sm:$0xff] }
  0x93   : > { %4275 = vmatprep.subr.mxu1 %v430_v22  ;;  %4238 = vmatpush3.msra.mxu0 %v382_v23  ;;  %v426_v38 = vld [vmem:[%s6028_s5 + $0x1b0] sm:$0xff]  ;;  %v425_v42 = vld [vmem:[%s6028_s5 + $0x1a8] sm:$0xff]  ;;  %v424_v46 = vld [vmem:[%s6028_s5 + $0x1a0] sm:$0xff] }
  0x94   : > { %4276 = vmatpush3.msra.mxu1 %v414_v24  ;;  %4239 = vmatprep.subr.mxu0 %v397_v25  ;;  %v378_v39 = vld [vmem:[%s6028_s5 + $0x30] sm:$0xff]  ;;  %v377_v43 = vld [vmem:[%s6028_s5 + $0x28] sm:$0xff]  ;;  %v376_v47 = vld [vmem:[%s6028_s5 + $0x20] sm:$0xff] }
  0x95   : > { %4277 = vmatprep.subr.mxu1 %v429_v26  ;;  %4240 = vmatpush3.msra.mxu0 %v381_v27  ;;  %v410_v40 = vld [vmem:[%s6028_s5 + $0x130] sm:$0xff]  ;;  %v409_v44 = vld [vmem:[%s6028_s5 + $0x128] sm:$0xff]  ;;  %v408_v48 = vld [vmem:[%s6028_s5 + $0x120] sm:$0xff] }
  0x96   : > { %4278 = vmatpush3.msra.mxu1 %v413_v28  ;;  %4241 = vmatprep.subr.mxu0 %v396_v29  ;;  %v391_v49 = vld [vmem:[%s6028_s5 + $0x98] sm:$0xff]  ;;  %v390_v53 = vld [vmem:[%s6028_s5 + $0x90] sm:$0xff]  ;;  %v389_v57 = vld [vmem:[%s6028_s5 + $0x88] sm:$0xff] }
  0x97   : > { %4279 = vmatprep.subr.mxu1 %v428_v30  ;;  %4242 = vmatpush3.msra.mxu0 %v380_v31  ;;  %v423_v50 = vld [vmem:[%s6028_s5 + $0x198] sm:$0xff]  ;;  %v422_v54 = vld [vmem:[%s6028_s5 + $0x190] sm:$0xff]  ;;  %v421_v58 = vld [vmem:[%s6028_s5 + $0x188] sm:$0xff] }
  0x98   : > { %4280 = vmatpush3.msra.mxu1 %v412_v32  ;;  %4243 = vmatprep.subr.mxu0 %v395_v33  ;;  %v375_v51 = vld [vmem:[%s6028_s5 + $0x18] sm:$0xff]  ;;  %v374_v55 = vld [vmem:[%s6028_s5 + $0x10] sm:$0xff]  ;;  %v373_v59 = vld [vmem:[%s6028_s5 + $0x8] sm:$0xff] }
  0x99   : > { %4281 = vmatprep.subr.mxu1 %v427_v34  ;;  %4244 = vmatpush3.msra.mxu0 %v379_v35  ;;  %v407_v52 = vld [vmem:[%s6028_s5 + $0x118] sm:$0xff]  ;;  %v406_v56 = vld [vmem:[%s6028_s5 + $0x110] sm:$0xff]  ;;  %v405_v60 = vld [vmem:[%s6028_s5 + $0x108] sm:$0xff] }
  0x9a   : > { %4282 = vmatpush3.msra.mxu1 %v411_v36  ;;  %4245 = vmatprep.subr.mxu0 %v394_v37  ;;  %v388_v61 = vld [vmem:[%s6028_s5 + $0x80] sm:$0xff]  ;;  %v309_v0 = vld [vmem:[#allocation3 + $0x8] sm:$0xff]  ;;  %v311_v2 = vld [vmem:[#allocation3 + $0x18] sm:$0xff] }
  0x9b   : > { %4283 = vmatprep.subr.mxu1 %v426_v38  ;;  %4246 = vmatpush3.msra.mxu0 %v378_v39  ;;  %v420_v62 = vld [vmem:[%s6028_s5 + $0x180] sm:$0xff]  ;;  %v310_v4 = vld [vmem:[#allocation3 + $0x10] sm:$0xff]  ;;  %v467_v5 = vld [vmem:[%s6028_s5 + $0x2f8] sm:$0xff] }
  0x9c   : > { %4284 = vmatpush3.msra.mxu1 %v410_v40  ;;  %4247 = vmatprep.subr.mxu0 %v393_v41  ;;  %v372_v63 = vld [vmem:[%s6028_s5] sm:$0xff]  ;;  %v499_v6 = vld [vmem:[%s6028_s5 + $0x3f8] sm:$0xff]  ;;  %v466_v9 = vld [vmem:[%s6028_s5 + $0x2f0] sm:$0xff] }
  0x9d   : > { %4285 = vmatprep.subr.mxu1 %v425_v42  ;;  %4248 = vmatpush3.msra.mxu0 %v377_v43  ;;  %v404_v1 = vld [vmem:[%s6028_s5 + $0x100] sm:$0xff]  ;;  %v451_v7 = vld [vmem:[%s6028_s5 + $0x278] sm:$0xff]  ;;  %v498_v10 = vld [vmem:[%s6028_s5 + $0x3f0] sm:$0xff] }
  0x9e   : > { %4286 = vmatpush3.msra.mxu1 %v409_v44  ;;  %4249 = vmatprep.subr.mxu0 %v392_v45  ;;  %v308_v3 = vld [vmem:[#allocation3] sm:$0xff]  ;;  %v483_v8 = vld [vmem:[%s6028_s5 + $0x378] sm:$0xff]  ;;  %v450_v11 = vld [vmem:[%s6028_s5 + $0x270] sm:$0xff] }
  0x9f   : > { %4287 = vmatprep.subr.mxu1 %v424_v46  ;;  %4250 = vmatpush3.msra.mxu0 %v376_v47  ;;  %v482_v12 = vld [vmem:[%s6028_s5 + $0x370] sm:$0xff]  ;;  %v465_v13 = vld [vmem:[%s6028_s5 + $0x2e8] sm:$0xff]  ;;  %v464_v17 = vld [vmem:[%s6028_s5 + $0x2e0] sm:$0xff] }
  0xa0   : > { %4288 = vmatpush3.msra.mxu1 %v408_v48  ;;  %4251 = vmatprep.subr.mxu0 %v391_v49  ;;  %v497_v14 = vld [vmem:[%s6028_s5 + $0x3e8] sm:$0xff]  ;;  %v496_v18 = vld [vmem:[%s6028_s5 + $0x3e0] sm:$0xff]  ;;  %v463_v21 = vld [vmem:[%s6028_s5 + $0x2d8] sm:$0xff] }
  0xa1   : > { %4289 = vmatprep.subr.mxu1 %v423_v50  ;;  %4252 = vmatpush3.msra.mxu0 %v375_v51  ;;  %v449_v15 = vld [vmem:[%s6028_s5 + $0x268] sm:$0xff]  ;;  %v448_v19 = vld [vmem:[%s6028_s5 + $0x260] sm:$0xff]  ;;  %v495_v22 = vld [vmem:[%s6028_s5 + $0x3d8] sm:$0xff] }
  0xa2   : > { %4290 = vmatpush3.msra.mxu1 %v407_v52  ;;  %4253 = vmatprep.subr.mxu0 %v390_v53  ;;  %v481_v16 = vld [vmem:[%s6028_s5 + $0x368] sm:$0xff]  ;;  %v480_v20 = vld [vmem:[%s6028_s5 + $0x360] sm:$0xff]  ;;  %v447_v23 = vld [vmem:[%s6028_s5 + $0x258] sm:$0xff] }
  0xa3   : > { %4291 = vmatprep.subr.mxu1 %v422_v54  ;;  %4254 = vmatpush3.msra.mxu0 %v374_v55  ;;  %v479_v24 = vld [vmem:[%s6028_s5 + $0x358] sm:$0xff]  ;;  %v462_v25 = vld [vmem:[%s6028_s5 + $0x2d0] sm:$0xff]  ;;  %v461_v29 = vld [vmem:[%s6028_s5 + $0x2c8] sm:$0xff] }
  0xa4   : > { %4292 = vmatpush3.msra.mxu1 %v406_v56  ;;  %4255 = vmatprep.subr.mxu0 %v389_v57  ;;  %v494_v26 = vld [vmem:[%s6028_s5 + $0x3d0] sm:$0xff]  ;;  %v493_v30 = vld [vmem:[%s6028_s5 + $0x3c8] sm:$0xff]  ;;  %v460_v33 = vld [vmem:[%s6028_s5 + $0x2c0] sm:$0xff] }
  0xa5   : > { %4293 = vmatprep.subr.mxu1 %v421_v58  ;;  %4256 = vmatpush3.msra.mxu0 %v373_v59  ;;  %v446_v27 = vld [vmem:[%s6028_s5 + $0x250] sm:$0xff]  ;;  %v445_v31 = vld [vmem:[%s6028_s5 + $0x248] sm:$0xff]  ;;  %v492_v34 = vld [vmem:[%s6028_s5 + $0x3c0] sm:$0xff] }
  0xa6   : > { %4294 = vmatpush3.msra.mxu1 %v405_v60  ;;  %4257 = vmatprep.subr.mxu0 %v388_v61  ;;  %v478_v28 = vld [vmem:[%s6028_s5 + $0x350] sm:$0xff]  ;;  %v477_v32 = vld [vmem:[%s6028_s5 + $0x348] sm:$0xff]  ;;  %v444_v35 = vld [vmem:[%s6028_s5 + $0x240] sm:$0xff] }
  0xa7   : > { %4295 = vmatprep.subr.mxu1 %v420_v62  ;;  %4258 = vmatpush3.msra.mxu0 %v372_v63  ;;  %v476_v36 = vld [vmem:[%s6028_s5 + $0x340] sm:$0xff]  ;;  %v459_v37 = vld [vmem:[%s6028_s5 + $0x2b8] sm:$0xff]  ;;  %v458_v41 = vld [vmem:[%s6028_s5 + $0x2b0] sm:$0xff] }
  0xa8   : > { %948 = vmatprep.mubr.f32.mxu0 %v309_v0  ;;  %4296 = vmatpush3.msra.mxu1 %v404_v1  ;;  %v491_v38 = vld [vmem:[%s6028_s5 + $0x3b8] sm:$0xff]  ;;  %v490_v42 = vld [vmem:[%s6028_s5 + $0x3b0] sm:$0xff]  ;;  %v457_v45 = vld [vmem:[%s6028_s5 + $0x2a8] sm:$0xff] }
  0xa9   : > { %1023 = vmatprep.mubr.f32.mxu1 %v311_v2  ;;  %949 = vmatmul.mubr.f32.vlgmr.msra.gmra.mxu0 %v308_v3  ;;  %v443_v39 = vld [vmem:[%s6028_s5 + $0x238] sm:$0xff]  ;;  %v442_v43 = vld [vmem:[%s6028_s5 + $0x230] sm:$0xff]  ;;  %v489_v46 = vld [vmem:[%s6028_s5 + $0x3a8] sm:$0xff] }
  0xaa   : > { %1024 = vmatmul.mubr.f32.vlgmr.msra.gmra.mxu1 %v310_v4  ;;  %4303 = vmatprep.subr.mxu0 %v467_v5  ;;  %v475_v40 = vld [vmem:[%s6028_s5 + $0x338] sm:$0xff]  ;;  %v474_v44 = vld [vmem:[%s6028_s5 + $0x330] sm:$0xff]  ;;  %v441_v47 = vld [vmem:[%s6028_s5 + $0x228] sm:$0xff] }
  0xab   : > { %4341 = vmatprep.subr.mxu1 %v499_v6  ;;  %4304 = vmatpush3.msra.mxu0 %v451_v7  ;;  %v473_v48 = vld [vmem:[%s6028_s5 + $0x328] sm:$0xff]  ;;  %v456_v49 = vld [vmem:[%s6028_s5 + $0x2a0] sm:$0xff]  ;;  %v455_v53 = vld [vmem:[%s6028_s5 + $0x298] sm:$0xff] }
  0xac   : > { %4342 = vmatpush3.msra.mxu1 %v483_v8  ;;  %4305 = vmatprep.subr.mxu0 %v466_v9  ;;  %v488_v50 = vld [vmem:[%s6028_s5 + $0x3a0] sm:$0xff]  ;;  %v487_v54 = vld [vmem:[%s6028_s5 + $0x398] sm:$0xff]  ;;  %v341_v57 = vld [vmem:[#allocation3 + $0x108] sm:$0xff] }
  0xad   : > { %4343 = vmatprep.subr.mxu1 %v498_v10  ;;  %4306 = vmatpush3.msra.mxu0 %v450_v11  ;;  %v440_v51 = vld [vmem:[%s6028_s5 + $0x220] sm:$0xff]  ;;  %v439_v55 = vld [vmem:[%s6028_s5 + $0x218] sm:$0xff]  ;;  %v454_v59 = vld [vmem:[%s6028_s5 + $0x290] sm:$0xff] }
  0xae   : > { %4344 = vmatpush3.msra.mxu1 %v482_v12  ;;  %4307 = vmatprep.subr.mxu0 %v465_v13  ;;  %v472_v52 = vld [vmem:[%s6028_s5 + $0x320] sm:$0xff]  ;;  %v471_v56 = vld [vmem:[%s6028_s5 + $0x318] sm:$0xff]  ;;  %v486_v60 = vld [vmem:[%s6028_s5 + $0x390] sm:$0xff] }
  0xaf   : > { %4345 = vmatprep.subr.mxu1 %v497_v14  ;;  %4308 = vmatpush3.msra.mxu0 %v449_v15  ;;  %v343_v58 = vld [vmem:[#allocation3 + $0x118] sm:$0xff]  ;;  %v340_v61 = vld [vmem:[#allocation3 + $0x100] sm:$0xff]  ;;  %v342_v62 = vld [vmem:[#allocation3 + $0x110] sm:$0xff] }
  0xb0   : > { %4346 = vmatpush3.msra.mxu1 %v481_v16  ;;  %4309 = vmatprep.subr.mxu0 %v464_v17  ;;  %v438_v63 = vld [vmem:[%s6028_s5 + $0x210] sm:$0xff]  ;;  %v453_v1 = vld [vmem:[%s6028_s5 + $0x288] sm:$0xff]  ;;  %v452_v5 = vld [vmem:[%s6028_s5 + $0x280] sm:$0xff] }
  0xb1   : > { %4347 = vmatprep.subr.mxu1 %v496_v18  ;;  %4310 = vmatpush3.msra.mxu0 %v448_v19  ;;  %v470_v0 = vld [vmem:[%s6028_s5 + $0x310] sm:$0xff]  ;;  %v485_v2 = vld [vmem:[%s6028_s5 + $0x388] sm:$0xff]  ;;  %v484_v6 = vld [vmem:[%s6028_s5 + $0x380] sm:$0xff] }
  0xb2   : > { %4348 = vmatpush3.msra.mxu1 %v480_v20  ;;  %4311 = vmatprep.subr.mxu0 %v463_v21  ;;  %v437_v3 = vld [vmem:[%s6028_s5 + $0x208] sm:$0xff]  ;;  %v436_v7 = vld [vmem:[%s6028_s5 + $0x200] sm:$0xff]  ;;  %v315_v11 = vld [vmem:[#allocation3 + $0x38] sm:$0xff] }
  0xb3   : > { %4349 = vmatprep.subr.mxu1 %v495_v22  ;;  %4312 = vmatpush3.msra.mxu0 %v447_v23  ;;  %v469_v4 = vld [vmem:[%s6028_s5 + $0x308] sm:$0xff]  ;;  %v468_v9 = vld [vmem:[%s6028_s5 + $0x300] sm:$0xff]  ;;  %v531_v12 = vld [vmem:[%s6028_s5 + $0x4f8] sm:$0xff] }
  0xb4   : > { %4350 = vmatpush3.msra.mxu1 %v479_v24  ;;  %4313 = vmatprep.subr.mxu0 %v462_v25  ;;  %v313_v8 = vld [vmem:[#allocation3 + $0x28] sm:$0xff]  ;;  %v312_v10 = vld [vmem:[#allocation3 + $0x20] sm:$0xff]  ;;  %v563_v13 = vld [vmem:[%s6028_s5 + $0x5f8] sm:$0xff] }
  0xb5   : > { %4351 = vmatprep.subr.mxu1 %v494_v26  ;;  %4314 = vmatpush3.msra.mxu0 %v446_v27  ;;  %v314_v14 = vld [vmem:[#allocation3 + $0x30] sm:$0xff]  ;;  %v515_v15 = vld [vmem:[%s6028_s5 + $0x478] sm:$0xff]  ;;  %v345_v19 = vld [vmem:[#allocation3 + $0x128] sm:$0xff] }
  0xb6   : > { %4352 = vmatpush3.msra.mxu1 %v478_v28  ;;  %4315 = vmatprep.subr.mxu0 %v461_v29  ;;  %v547_v16 = vld [vmem:[%s6028_s5 + $0x578] sm:$0xff]  ;;  %v530_v17 = vld [vmem:[%s6028_s5 + $0x4f0] sm:$0xff]  ;;  %v344_v22 = vld [vmem:[#allocation3 + $0x120] sm:$0xff] }
  0xb7   : > { %4353 = vmatprep.subr.mxu1 %v493_v30  ;;  %4316 = vmatpush3.msra.mxu0 %v445_v31  ;;  %v562_v18 = vld [vmem:[%s6028_s5 + $0x5f0] sm:$0xff]  ;;  %v529_v23 = vld [vmem:[%s6028_s5 + $0x4e8] sm:$0xff]  ;;  %v347_v25 = vld [vmem:[#allocation3 + $0x138] sm:$0xff] }
  0xb8   : > { %4354 = vmatpush3.msra.mxu1 %v477_v32  ;;  %4317 = vmatprep.subr.mxu0 %v460_v33  ;;  %v514_v20 = vld [vmem:[%s6028_s5 + $0x470] sm:$0xff]  ;;  %v561_v24 = vld [vmem:[%s6028_s5 + $0x5e8] sm:$0xff]  ;;  %v528_v28 = vld [vmem:[%s6028_s5 + $0x4e0] sm:$0xff] }
  0xb9   : > { %4355 = vmatprep.subr.mxu1 %v492_v34  ;;  %4318 = vmatpush3.msra.mxu0 %v444_v35  ;;  %v546_v21 = vld [vmem:[%s6028_s5 + $0x570] sm:$0xff]  ;;  %v513_v26 = vld [vmem:[%s6028_s5 + $0x468] sm:$0xff]  ;;  %v560_v30 = vld [vmem:[%s6028_s5 + $0x5e0] sm:$0xff] }
  0xba   : > { %4356 = vmatpush3.msra.mxu1 %v476_v36  ;;  %4319 = vmatprep.subr.mxu0 %v459_v37  ;;  %v545_v27 = vld [vmem:[%s6028_s5 + $0x568] sm:$0xff]  ;;  %v346_v29 = vld [vmem:[#allocation3 + $0x130] sm:$0xff]  ;;  %v512_v31 = vld [vmem:[%s6028_s5 + $0x460] sm:$0xff] }
  0xbb   : > { %4357 = vmatprep.subr.mxu1 %v491_v38  ;;  %4320 = vmatpush3.msra.mxu0 %v443_v39  ;;  %v544_v32 = vld [vmem:[%s6028_s5 + $0x560] sm:$0xff]  ;;  %v527_v33 = vld [vmem:[%s6028_s5 + $0x4d8] sm:$0xff]  ;;  %v526_v37 = vld [vmem:[%s6028_s5 + $0x4d0] sm:$0xff] }
  0xbc   : > { %4358 = vmatpush3.msra.mxu1 %v475_v40  ;;  %4321 = vmatprep.subr.mxu0 %v458_v41  ;;  %v559_v34 = vld [vmem:[%s6028_s5 + $0x5d8] sm:$0xff]  ;;  %v558_v38 = vld [vmem:[%s6028_s5 + $0x5d0] sm:$0xff]  ;;  %v525_v41 = vld [vmem:[%s6028_s5 + $0x4c8] sm:$0xff] }
  0xbd   : > { %4359 = vmatprep.subr.mxu1 %v490_v42  ;;  %4322 = vmatpush3.msra.mxu0 %v442_v43  ;;  %v511_v35 = vld [vmem:[%s6028_s5 + $0x458] sm:$0xff]  ;;  %v510_v39 = vld [vmem:[%s6028_s5 + $0x450] sm:$0xff]  ;;  %v557_v42 = vld [vmem:[%s6028_s5 + $0x5c8] sm:$0xff] }
  0xbe   : > { %4360 = vmatpush3.msra.mxu1 %v474_v44  ;;  %4323 = vmatprep.subr.mxu0 %v457_v45  ;;  %v543_v36 = vld [vmem:[%s6028_s5 + $0x558] sm:$0xff]  ;;  %v542_v40 = vld [vmem:[%s6028_s5 + $0x550] sm:$0xff]  ;;  %v509_v43 = vld [vmem:[%s6028_s5 + $0x448] sm:$0xff] }
  0xbf   : > { %4361 = vmatprep.subr.mxu1 %v489_v46  ;;  %4324 = vmatpush3.msra.mxu0 %v441_v47  ;;  %v541_v44 = vld [vmem:[%s6028_s5 + $0x548] sm:$0xff]  ;;  %v524_v45 = vld [vmem:[%s6028_s5 + $0x4c0] sm:$0xff] }
  0xc0   : > { %4362 = vmatpush3.msra.mxu1 %v473_v48  ;;  %4325 = vmatprep.subr.mxu0 %v456_v49  ;;  %v556_v46 = vld [vmem:[%s6028_s5 + $0x5c0] sm:$0xff]  ;;  %v523_v49 = vld [vmem:[%s6028_s5 + $0x4b8] sm:$0xff] }
  0xc1   : > { %4363 = vmatprep.subr.mxu1 %v488_v50  ;;  %4326 = vmatpush3.msra.mxu0 %v440_v51  ;;  %v508_v47 = vld [vmem:[%s6028_s5 + $0x440] sm:$0xff]  ;;  %v555_v50 = vld [vmem:[%s6028_s5 + $0x5b8] sm:$0xff] }
  0xc2   : > { %4364 = vmatpush3.msra.mxu1 %v472_v52  ;;  %4327 = vmatprep.subr.mxu0 %v455_v53  ;;  %v540_v48 = vld [vmem:[%s6028_s5 + $0x540] sm:$0xff]  ;;  %v507_v51 = vld [vmem:[%s6028_s5 + $0x438] sm:$0xff]  ;;  %v522_v53 = vld [vmem:[%s6028_s5 + $0x4b0] sm:$0xff] }
  0xc3   : > { %4365 = vmatprep.subr.mxu1 %v487_v54  ;;  %4328 = vmatpush3.msra.mxu0 %v439_v55  ;;  %v539_v52 = vld [vmem:[%s6028_s5 + $0x538] sm:$0xff]  ;;  %v554_v54 = vld [vmem:[%s6028_s5 + $0x5b0] sm:$0xff] }
  0xc4   : > { %4366 = vmatpush3.msra.mxu1 %v471_v56  ;;  %953 = vmatprep.mubr.f32.mxu0 %v341_v57  ;;  %v506_v55 = vld [vmem:[%s6028_s5 + $0x430] sm:$0xff]  ;;  %v521_v57 = vld [vmem:[%s6028_s5 + $0x4a8] sm:$0xff] }
  0xc5   : > { %1028 = vmatprep.mubr.f32.mxu1 %v343_v58  ;;  %4329 = vmatprep.subr.mxu0 %v454_v59  ;;  %v538_v56 = vld [vmem:[%s6028_s5 + $0x530] sm:$0xff]  ;;  %v553_v58 = vld [vmem:[%s6028_s5 + $0x5a8] sm:$0xff] }
  0xc6   : > { %4367 = vmatprep.subr.mxu1 %v486_v60  ;;  %954 = vmatmul.mubr.f32.gmra.mxu0 %v340_v61  ;;  %v505_v59 = vld [vmem:[%s6028_s5 + $0x428] sm:$0xff]  ;;  %v520_v61 = vld [vmem:[%s6028_s5 + $0x4a0] sm:$0xff] }
  0xc7   : > { %1029 = vmatmul.mubr.f32.gmra.mxu1 %v342_v62  ;;  %4330 = vmatpush3.msra.mxu0 %v438_v63  ;;  %v537_v60 = vld [vmem:[%s6028_s5 + $0x528] sm:$0xff]  ;;  %v552_v62 = vld [vmem:[%s6028_s5 + $0x5a0] sm:$0xff] }
  0xc8   : > { %4368 = vmatpush3.msra.mxu1 %v470_v0  ;;  %4331 = vmatprep.subr.mxu0 %v453_v1  ;;  %v504_v63 = vld [vmem:[%s6028_s5 + $0x420] sm:$0xff]  ;;  %v519_v1 = vld [vmem:[%s6028_s5 + $0x498] sm:$0xff] }
  0xc9   : > { %4369 = vmatprep.subr.mxu1 %v485_v2  ;;  %4332 = vmatpush3.msra.mxu0 %v437_v3  ;;  %v536_v0 = vld [vmem:[%s6028_s5 + $0x520] sm:$0xff]  ;;  %v551_v2 = vld [vmem:[%s6028_s5 + $0x598] sm:$0xff] }
  0xca   : > { %4370 = vmatpush3.msra.mxu1 %v469_v4  ;;  %4333 = vmatprep.subr.mxu0 %v452_v5  ;;  %v503_v3 = vld [vmem:[%s6028_s5 + $0x418] sm:$0xff]  ;;  %v518_v5 = vld [vmem:[%s6028_s5 + $0x490] sm:$0xff] }
  0xcb   : > { %4371 = vmatprep.subr.mxu1 %v484_v6  ;;  %4334 = vmatpush3.msra.mxu0 %v436_v7  ;;  %v535_v4 = vld [vmem:[%s6028_s5 + $0x518] sm:$0xff]  ;;  %v550_v6 = vld [vmem:[%s6028_s5 + $0x590] sm:$0xff] }
  0xcc   : > { %1098 = vmatprep.mubr.f32.mxu0 %v313_v8  ;;  %4372 = vmatpush3.msra.mxu1 %v468_v9  ;;  %v502_v7 = vld [vmem:[%s6028_s5 + $0x410] sm:$0xff]  ;;  %v517_v9 = vld [vmem:[%s6028_s5 + $0x488] sm:$0xff] }
  0xcd   : > { %1099 = vmatmul.mubr.f32.vlgmr.msra.gmra.mxu0 %v312_v10  ;;  %1173 = vmatprep.mubr.f32.mxu1 %v315_v11  ;;  %v534_v8 = vld [vmem:[%s6028_s5 + $0x510] sm:$0xff]  ;;  %v549_v10 = vld [vmem:[%s6028_s5 + $0x588] sm:$0xff] }
  0xce   : > { %4379 = vmatprep.subr.mxu0 %v531_v12  ;;  %4417 = vmatprep.subr.mxu1 %v563_v13  ;;  %v501_v11 = vld [vmem:[%s6028_s5 + $0x408] sm:$0xff]  ;;  %v516_v13 = vld [vmem:[%s6028_s5 + $0x480] sm:$0xff] }
  0xcf   : > { %1174 = vmatmul.mubr.f32.vlgmr.msra.gmra.mxu1 %v314_v14  ;;  %4380 = vmatpush3.msra.mxu0 %v515_v15  ;;  %v533_v12 = vld [vmem:[%s6028_s5 + $0x508] sm:$0xff]  ;;  %v548_v14 = vld [vmem:[%s6028_s5 + $0x580] sm:$0xff] }
  0xd0   : > { %4418 = vmatpush3.msra.mxu1 %v547_v16  ;;  %4381 = vmatprep.subr.mxu0 %v530_v17  ;;  %v500_v15 = vld [vmem:[%s6028_s5 + $0x400] sm:$0xff]  ;;  %v317_v16 = vld [vmem:[#allocation3 + $0x48] sm:$0xff] }
  0xd1   : > { %4419 = vmatprep.subr.mxu1 %v562_v18  ;;  %1103 = vmatprep.mubr.f32.mxu0 %v345_v19  ;;  %v532_v17 = vld [vmem:[%s6028_s5 + $0x500] sm:$0xff]  ;;  %v319_v19 = vld [vmem:[#allocation3 + $0x58] sm:$0xff] }
  0xd2   : > { %4382 = vmatpush3.msra.mxu0 %v514_v20  ;;  %4420 = vmatpush3.msra.mxu1 %v546_v21  ;;  %v316_v18 = vld [vmem:[#allocation3 + $0x40] sm:$0xff]  ;;  %v595_v20 = vld [vmem:[%s6028_s5 + $0x6f8] sm:$0xff] }
  0xd3   : > { %1104 = vmatmul.mubr.f32.gmra.mxu0 %v344_v22  ;;  %4383 = vmatprep.subr.mxu0 %v529_v23  ;;  %v627_v21 = vld [vmem:[%s6028_s5 + $0x7f8] sm:$0xff]  ;;  %v318_v22 = vld [vmem:[#allocation3 + $0x50] sm:$0xff] }
  0xd4   : > { %4421 = vmatprep.subr.mxu1 %v561_v24  ;;  %1178 = vmatprep.mubr.f32.mxu1 %v347_v25  ;;  %v579_v23 = vld [vmem:[%s6028_s5 + $0x678] sm:$0xff]  ;;  %v594_v25 = vld [vmem:[%s6028_s5 + $0x6f0] sm:$0xff] }
  0xd5   : > { %4384 = vmatpush3.msra.mxu0 %v513_v26  ;;  %4422 = vmatpush3.msra.mxu1 %v545_v27  ;;  %v611_v24 = vld [vmem:[%s6028_s5 + $0x778] sm:$0xff]  ;;  %v626_v26 = vld [vmem:[%s6028_s5 + $0x7f0] sm:$0xff]  ;;  %v349_v27 = vld [vmem:[#allocation3 + $0x148] sm:$0xff] }
  0xd6   : > { %4385 = vmatprep.subr.mxu0 %v528_v28  ;;  %1179 = vmatmul.mubr.f32.gmra.mxu1 %v346_v29  ;;  %v578_v28 = vld [vmem:[%s6028_s5 + $0x670] sm:$0xff] }
  0xd7   : > { %4423 = vmatprep.subr.mxu1 %v560_v30  ;;  %4386 = vmatpush3.msra.mxu0 %v512_v31  ;;  %v610_v29 = vld [vmem:[%s6028_s5 + $0x770] sm:$0xff]  ;;  %v348_v30 = vld [vmem:[#allocation3 + $0x140] sm:$0xff]  ;;  %v593_v31 = vld [vmem:[%s6028_s5 + $0x6e8] sm:$0xff] }
  0xd8   : > { %4424 = vmatpush3.msra.mxu1 %v544_v32  ;;  %4387 = vmatprep.subr.mxu0 %v527_v33  ;;  %v625_v32 = vld [vmem:[%s6028_s5 + $0x7e8] sm:$0xff]  ;;  %v351_v33 = vld [vmem:[#allocation3 + $0x158] sm:$0xff] }
  0xd9   : > { %4425 = vmatprep.subr.mxu1 %v559_v34  ;;  %4388 = vmatpush3.msra.mxu0 %v511_v35  ;;  %v577_v34 = vld [vmem:[%s6028_s5 + $0x668] sm:$0xff] }
  0xda   : > { %4426 = vmatpush3.msra.mxu1 %v543_v36  ;;  %4389 = vmatprep.subr.mxu0 %v526_v37  ;;  %v609_v35 = vld [vmem:[%s6028_s5 + $0x768] sm:$0xff]  ;;  %v592_v36 = vld [vmem:[%s6028_s5 + $0x6e0] sm:$0xff]  ;;  %v350_v37 = vld [vmem:[#allocation3 + $0x150] sm:$0xff] }
  0xdb   : > { %4427 = vmatprep.subr.mxu1 %v558_v38  ;;  %4390 = vmatpush3.msra.mxu0 %v510_v39  ;;  %v624_v38 = vld [vmem:[%s6028_s5 + $0x7e0] sm:$0xff] }
  0xdc   : > { %4428 = vmatpush3.msra.mxu1 %v542_v40  ;;  %4391 = vmatprep.subr.mxu0 %v525_v41  ;;  %v576_v39 = vld [vmem:[%s6028_s5 + $0x660] sm:$0xff]  ;;  %v591_v41 = vld [vmem:[%s6028_s5 + $0x6d8] sm:$0xff] }
  0xdd   : > { %4429 = vmatprep.subr.mxu1 %v557_v42  ;;  %4392 = vmatpush3.msra.mxu0 %v509_v43  ;;  %v608_v40 = vld [vmem:[%s6028_s5 + $0x760] sm:$0xff]  ;;  %v623_v42 = vld [vmem:[%s6028_s5 + $0x7d8] sm:$0xff] }
  0xde   : > { %4430 = vmatpush3.msra.mxu1 %v541_v44  ;;  %4393 = vmatprep.subr.mxu0 %v524_v45  ;;  %v575_v43 = vld [vmem:[%s6028_s5 + $0x658] sm:$0xff]  ;;  %v590_v45 = vld [vmem:[%s6028_s5 + $0x6d0] sm:$0xff] }
  0xdf   : > { %4431 = vmatprep.subr.mxu1 %v556_v46  ;;  %4394 = vmatpush3.msra.mxu0 %v508_v47  ;;  %v607_v44 = vld [vmem:[%s6028_s5 + $0x758] sm:$0xff]  ;;  %v622_v46 = vld [vmem:[%s6028_s5 + $0x7d0] sm:$0xff] }
  0xe0   : > { %4432 = vmatpush3.msra.mxu1 %v540_v48  ;;  %4395 = vmatprep.subr.mxu0 %v523_v49  ;;  %v574_v47 = vld [vmem:[%s6028_s5 + $0x650] sm:$0xff]  ;;  %v589_v49 = vld [vmem:[%s6028_s5 + $0x6c8] sm:$0xff] }
  0xe1   : > { %4433 = vmatprep.subr.mxu1 %v555_v50  ;;  %4396 = vmatpush3.msra.mxu0 %v507_v51  ;;  %v606_v48 = vld [vmem:[%s6028_s5 + $0x750] sm:$0xff]  ;;  %v621_v50 = vld [vmem:[%s6028_s5 + $0x7c8] sm:$0xff] }
  0xe2   : > { %4434 = vmatpush3.msra.mxu1 %v539_v52  ;;  %4397 = vmatprep.subr.mxu0 %v522_v53  ;;  %v573_v51 = vld [vmem:[%s6028_s5 + $0x648] sm:$0xff]  ;;  %v588_v53 = vld [vmem:[%s6028_s5 + $0x6c0] sm:$0xff] }
  0xe3   : > { %4435 = vmatprep.subr.mxu1 %v554_v54  ;;  %4398 = vmatpush3.msra.mxu0 %v506_v55  ;;  %v605_v52 = vld [vmem:[%s6028_s5 + $0x748] sm:$0xff]  ;;  %v620_v54 = vld [vmem:[%s6028_s5 + $0x7c0] sm:$0xff] }
  0xe4   : > { %4436 = vmatpush3.msra.mxu1 %v538_v56  ;;  %4399 = vmatprep.subr.mxu0 %v521_v57  ;;  %v572_v55 = vld [vmem:[%s6028_s5 + $0x640] sm:$0xff]  ;;  %v587_v57 = vld [vmem:[%s6028_s5 + $0x6b8] sm:$0xff] }
  0xe5   : > { %4437 = vmatprep.subr.mxu1 %v553_v58  ;;  %4400 = vmatpush3.msra.mxu0 %v505_v59  ;;  %v604_v56 = vld [vmem:[%s6028_s5 + $0x740] sm:$0xff]  ;;  %v619_v58 = vld [vmem:[%s6028_s5 + $0x7b8] sm:$0xff] }
  0xe6   : > { %4438 = vmatpush3.msra.mxu1 %v537_v60  ;;  %4401 = vmatprep.subr.mxu0 %v520_v61  ;;  %v571_v59 = vld [vmem:[%s6028_s5 + $0x638] sm:$0xff]  ;;  %v586_v61 = vld [vmem:[%s6028_s5 + $0x6b0] sm:$0xff] }
  0xe7   : > { %4439 = vmatprep.subr.mxu1 %v552_v62  ;;  %4402 = vmatpush3.msra.mxu0 %v504_v63  ;;  %v603_v60 = vld [vmem:[%s6028_s5 + $0x738] sm:$0xff]  ;;  %v618_v62 = vld [vmem:[%s6028_s5 + $0x7b0] sm:$0xff] }
  0xe8   : > { %4440 = vmatpush3.msra.mxu1 %v536_v0  ;;  %4403 = vmatprep.subr.mxu0 %v519_v1  ;;  %v570_v63 = vld [vmem:[%s6028_s5 + $0x630] sm:$0xff]  ;;  %v585_v1 = vld [vmem:[%s6028_s5 + $0x6a8] sm:$0xff] }
  0xe9   : > { %4441 = vmatprep.subr.mxu1 %v551_v2  ;;  %4404 = vmatpush3.msra.mxu0 %v503_v3  ;;  %v602_v0 = vld [vmem:[%s6028_s5 + $0x730] sm:$0xff]  ;;  %v617_v2 = vld [vmem:[%s6028_s5 + $0x7a8] sm:$0xff] }
  0xea   : > { %4442 = vmatpush3.msra.mxu1 %v535_v4  ;;  %4405 = vmatprep.subr.mxu0 %v518_v5  ;;  %v569_v3 = vld [vmem:[%s6028_s5 + $0x628] sm:$0xff]  ;;  %v584_v5 = vld [vmem:[%s6028_s5 + $0x6a0] sm:$0xff] }
  0xeb   : > { %4443 = vmatprep.subr.mxu1 %v550_v6  ;;  %4406 = vmatpush3.msra.mxu0 %v502_v7  ;;  %v601_v4 = vld [vmem:[%s6028_s5 + $0x728] sm:$0xff]  ;;  %v616_v6 = vld [vmem:[%s6028_s5 + $0x7a0] sm:$0xff] }
  0xec   : > { %4444 = vmatpush3.msra.mxu1 %v534_v8  ;;  %4407 = vmatprep.subr.mxu0 %v517_v9  ;;  %v568_v7 = vld [vmem:[%s6028_s5 + $0x620] sm:$0xff]  ;;  %v583_v9 = vld [vmem:[%s6028_s5 + $0x698] sm:$0xff] }
  0xed   : > { %4445 = vmatprep.subr.mxu1 %v549_v10  ;;  %4408 = vmatpush3.msra.mxu0 %v501_v11  ;;  %v600_v8 = vld [vmem:[%s6028_s5 + $0x720] sm:$0xff]  ;;  %v615_v10 = vld [vmem:[%s6028_s5 + $0x798] sm:$0xff] }
  0xee   : > { %4446 = vmatpush3.msra.mxu1 %v533_v12  ;;  %4409 = vmatprep.subr.mxu0 %v516_v13  ;;  %v567_v11 = vld [vmem:[%s6028_s5 + $0x618] sm:$0xff]  ;;  %v582_v13 = vld [vmem:[%s6028_s5 + $0x690] sm:$0xff] }
  0xef   : > { %4447 = vmatprep.subr.mxu1 %v548_v14  ;;  %4410 = vmatpush3.msra.mxu0 %v500_v15  ;;  %v599_v12 = vld [vmem:[%s6028_s5 + $0x718] sm:$0xff]  ;;  %v614_v14 = vld [vmem:[%s6028_s5 + $0x790] sm:$0xff] }
  0xf0   : > { %1248 = vmatprep.mubr.f32.mxu0 %v317_v16  ;;  %4448 = vmatpush3.msra.mxu1 %v532_v17  ;;  %v566_v15 = vld [vmem:[%s6028_s5 + $0x610] sm:$0xff]  ;;  %v581_v17 = vld [vmem:[%s6028_s5 + $0x688] sm:$0xff] }
  0xf1   : > { %1249 = vmatmul.mubr.f32.vlgmr.msra.gmra.mxu0 %v316_v18  ;;  %1323 = vmatprep.mubr.f32.mxu1 %v319_v19  ;;  %v598_v16 = vld [vmem:[%s6028_s5 + $0x710] sm:$0xff]  ;;  %v613_v18 = vld [vmem:[%s6028_s5 + $0x788] sm:$0xff] }
  0xf2   : > { %4455 = vmatprep.subr.mxu0 %v595_v20  ;;  %4493 = vmatprep.subr.mxu1 %v627_v21  ;;  %v565_v19 = vld [vmem:[%s6028_s5 + $0x608] sm:$0xff]  ;;  %v580_v21 = vld [vmem:[%s6028_s5 + $0x680] sm:$0xff] }
  0xf3   : > { %1324 = vmatmul.mubr.f32.vlgmr.msra.gmra.mxu1 %v318_v22  ;;  %4456 = vmatpush3.msra.mxu0 %v579_v23  ;;  %v597_v20 = vld [vmem:[%s6028_s5 + $0x708] sm:$0xff]  ;;  %v612_v22 = vld [vmem:[%s6028_s5 + $0x780] sm:$0xff] }
  0xf4   : > { %4494 = vmatpush3.msra.mxu1 %v611_v24  ;;  %4457 = vmatprep.subr.mxu0 %v594_v25  ;;  %v564_v23 = vld [vmem:[%s6028_s5 + $0x600] sm:$0xff]  ;;  %v321_v24 = vld [vmem:[#allocation3 + $0x68] sm:$0xff] }
  0xf5   : > { %4495 = vmatprep.subr.mxu1 %v626_v26  ;;  %1253 = vmatprep.mubr.f32.mxu0 %v349_v27  ;;  %v596_v25 = vld [vmem:[%s6028_s5 + $0x700] sm:$0xff]  ;;  %v323_v27 = vld [vmem:[#allocation3 + $0x78] sm:$0xff] }
  0xf6   : > { %4458 = vmatpush3.msra.mxu0 %v578_v28  ;;  %4496 = vmatpush3.msra.mxu1 %v610_v29  ;;  %v320_v26 = vld [vmem:[#allocation3 + $0x60] sm:$0xff]  ;;  %v659_v28 = vld [vmem:[%s6028_s5 + $0x8f8] sm:$0xff] }
  0xf7   : > { %1254 = vmatmul.mubr.f32.gmra.mxu0 %v348_v30  ;;  %4459 = vmatprep.subr.mxu0 %v593_v31  ;;  %v691_v29 = vld [vmem:[%s6028_s5 + $0x9f8] sm:$0xff]  ;;  %v322_v30 = vld [vmem:[#allocation3 + $0x70] sm:$0xff] }
  0xf8   : > { %4497 = vmatprep.subr.mxu1 %v625_v32  ;;  %1328 = vmatprep.mubr.f32.mxu1 %v351_v33  ;;  %v643_v31 = vld [vmem:[%s6028_s5 + $0x878] sm:$0xff]  ;;  %v658_v33 = vld [vmem:[%s6028_s5 + $0x8f0] sm:$0xff] }
  0xf9   : > { %4460 = vmatpush3.msra.mxu0 %v577_v34  ;;  %4498 = vmatpush3.msra.mxu1 %v609_v35  ;;  %v675_v32 = vld [vmem:[%s6028_s5 + $0x978] sm:$0xff]  ;;  %v690_v34 = vld [vmem:[%s6028_s5 + $0x9f0] sm:$0xff]  ;;  %v353_v35 = vld [vmem:[#allocation3 + $0x168] sm:$0xff] }
  0xfa   : > { %4461 = vmatprep.subr.mxu0 %v592_v36  ;;  %1329 = vmatmul.mubr.f32.gmra.mxu1 %v350_v37  ;;  %v642_v36 = vld [vmem:[%s6028_s5 + $0x870] sm:$0xff] }
  0xfb   : > { %4499 = vmatprep.subr.mxu1 %v624_v38  ;;  %4462 = vmatpush3.msra.mxu0 %v576_v39  ;;  %v674_v37 = vld [vmem:[%s6028_s5 + $0x970] sm:$0xff]  ;;  %v352_v38 = vld [vmem:[#allocation3 + $0x160] sm:$0xff]  ;;  %v657_v39 = vld [vmem:[%s6028_s5 + $0x8e8] sm:$0xff] }
  0xfc   : > { %4500 = vmatpush3.msra.mxu1 %v608_v40  ;;  %4463 = vmatprep.subr.mxu0 %v591_v41  ;;  %v689_v40 = vld [vmem:[%s6028_s5 + $0x9e8] sm:$0xff]  ;;  %v355_v41 = vld [vmem:[#allocation3 + $0x178] sm:$0xff] }
  0xfd   : > { %4501 = vmatprep.subr.mxu1 %v623_v42  ;;  %4464 = vmatpush3.msra.mxu0 %v575_v43  ;;  %v641_v42 = vld [vmem:[%s6028_s5 + $0x868] sm:$0xff] }
  0xfe   : > { %4502 = vmatpush3.msra.mxu1 %v607_v44  ;;  %4465 = vmatprep.subr.mxu0 %v590_v45  ;;  %v673_v43 = vld [vmem:[%s6028_s5 + $0x968] sm:$0xff]  ;;  %v656_v44 = vld [vmem:[%s6028_s5 + $0x8e0] sm:$0xff]  ;;  %v354_v45 = vld [vmem:[#allocation3 + $0x170] sm:$0xff] }
  0xff   : > { %4503 = vmatprep.subr.mxu1 %v622_v46  ;;  %4466 = vmatpush3.msra.mxu0 %v574_v47  ;;  %v688_v46 = vld [vmem:[%s6028_s5 + $0x9e0] sm:$0xff] }
 0x100   : > { %4504 = vmatpush3.msra.mxu1 %v606_v48  ;;  %4467 = vmatprep.subr.mxu0 %v589_v49  ;;  %v640_v47 = vld [vmem:[%s6028_s5 + $0x860] sm:$0xff]  ;;  %v655_v49 = vld [vmem:[%s6028_s5 + $0x8d8] sm:$0xff] }
 0x101   : > { %4505 = vmatprep.subr.mxu1 %v621_v50  ;;  %4468 = vmatpush3.msra.mxu0 %v573_v51  ;;  %v672_v48 = vld [vmem:[%s6028_s5 + $0x960] sm:$0xff]  ;;  %v687_v50 = vld [vmem:[%s6028_s5 + $0x9d8] sm:$0xff] }
 0x102   : > { %4506 = vmatpush3.msra.mxu1 %v605_v52  ;;  %4469 = vmatprep.subr.mxu0 %v588_v53  ;;  %v639_v51 = vld [vmem:[%s6028_s5 + $0x858] sm:$0xff]  ;;  %v654_v53 = vld [vmem:[%s6028_s5 + $0x8d0] sm:$0xff] }
 0x103   : > { %4507 = vmatprep.subr.mxu1 %v620_v54  ;;  %4470 = vmatpush3.msra.mxu0 %v572_v55  ;;  %v671_v52 = vld [vmem:[%s6028_s5 + $0x958] sm:$0xff]  ;;  %v686_v54 = vld [vmem:[%s6028_s5 + $0x9d0] sm:$0xff] }
 0x104   : > { %4508 = vmatpush3.msra.mxu1 %v604_v56  ;;  %4471 = vmatprep.subr.mxu0 %v587_v57  ;;  %v638_v55 = vld [vmem:[%s6028_s5 + $0x850] sm:$0xff]  ;;  %v653_v57 = vld [vmem:[%s6028_s5 + $0x8c8] sm:$0xff] }
 0x105   : > { %4509 = vmatprep.subr.mxu1 %v619_v58  ;;  %4472 = vmatpush3.msra.mxu0 %v571_v59  ;;  %v670_v56 = vld [vmem:[%s6028_s5 + $0x950] sm:$0xff]  ;;  %v685_v58 = vld [vmem:[%s6028_s5 + $0x9c8] sm:$0xff] }
 0x106   : > { %4510 = vmatpush3.msra.mxu1 %v603_v60  ;;  %4473 = vmatprep.subr.mxu0 %v586_v61  ;;  %v637_v59 = vld [vmem:[%s6028_s5 + $0x848] sm:$0xff]  ;;  %v652_v61 = vld [vmem:[%s6028_s5 + $0x8c0] sm:$0xff] }
 0x107   : > { %4511 = vmatprep.subr.mxu1 %v618_v62  ;;  %4474 = vmatpush3.msra.mxu0 %v570_v63  ;;  %v669_v60 = vld [vmem:[%s6028_s5 + $0x948] sm:$0xff]  ;;  %v684_v62 = vld [vmem:[%s6028_s5 + $0x9c0] sm:$0xff] }
 0x108   : > { %4512 = vmatpush3.msra.mxu1 %v602_v0  ;;  %4475 = vmatprep.subr.mxu0 %v585_v1  ;;  %v636_v63 = vld [vmem:[%s6028_s5 + $0x840] sm:$0xff]  ;;  %v651_v1 = vld [vmem:[%s6028_s5 + $0x8b8] sm:$0xff] }
 0x109   : > { %4513 = vmatprep.subr.mxu1 %v617_v2  ;;  %4476 = vmatpush3.msra.mxu0 %v569_v3  ;;  %v668_v0 = vld [vmem:[%s6028_s5 + $0x940] sm:$0xff]  ;;  %v683_v2 = vld [vmem:[%s6028_s5 + $0x9b8] sm:$0xff] }
 0x10a   : > { %4514 = vmatpush3.msra.mxu1 %v601_v4  ;;  %4477 = vmatprep.subr.mxu0 %v584_v5  ;;  %v635_v3 = vld [vmem:[%s6028_s5 + $0x838] sm:$0xff]  ;;  %v650_v5 = vld [vmem:[%s6028_s5 + $0x8b0] sm:$0xff] }
 0x10b   : > { %4515 = vmatprep.subr.mxu1 %v616_v6  ;;  %4478 = vmatpush3.msra.mxu0 %v568_v7  ;;  %v667_v4 = vld [vmem:[%s6028_s5 + $0x938] sm:$0xff]  ;;  %v682_v6 = vld [vmem:[%s6028_s5 + $0x9b0] sm:$0xff] }
 0x10c   : > { %4516 = vmatpush3.msra.mxu1 %v600_v8  ;;  %4479 = vmatprep.subr.mxu0 %v583_v9  ;;  %v634_v7 = vld [vmem:[%s6028_s5 + $0x830] sm:$0xff]  ;;  %v649_v9 = vld [vmem:[%s6028_s5 + $0x8a8] sm:$0xff] }
 0x10d   : > { %4517 = vmatprep.subr.mxu1 %v615_v10  ;;  %4480 = vmatpush3.msra.mxu0 %v567_v11  ;;  %v666_v8 = vld [vmem:[%s6028_s5 + $0x930] sm:$0xff]  ;;  %v681_v10 = vld [vmem:[%s6028_s5 + $0x9a8] sm:$0xff] }
 0x10e   : > { %4518 = vmatpush3.msra.mxu1 %v599_v12  ;;  %4481 = vmatprep.subr.mxu0 %v582_v13  ;;  %v633_v11 = vld [vmem:[%s6028_s5 + $0x828] sm:$0xff]  ;;  %v648_v13 = vld [vmem:[%s6028_s5 + $0x8a0] sm:$0xff] }
 0x10f   : > { %4519 = vmatprep.subr.mxu1 %v614_v14  ;;  %4482 = vmatpush3.msra.mxu0 %v566_v15  ;;  %v665_v12 = vld [vmem:[%s6028_s5 + $0x928] sm:$0xff]  ;;  %v680_v14 = vld [vmem:[%s6028_s5 + $0x9a0] sm:$0xff] }
 0x110   : > { %4520 = vmatpush3.msra.mxu1 %v598_v16  ;;  %4483 = vmatprep.subr.mxu0 %v581_v17  ;;  %v632_v15 = vld [vmem:[%s6028_s5 + $0x820] sm:$0xff]  ;;  %v647_v17 = vld [vmem:[%s6028_s5 + $0x898] sm:$0xff] }
 0x111   : > { %4521 = vmatprep.subr.mxu1 %v613_v18  ;;  %4484 = vmatpush3.msra.mxu0 %v565_v19  ;;  %v664_v16 = vld [vmem:[%s6028_s5 + $0x920] sm:$0xff]  ;;  %v679_v18 = vld [vmem:[%s6028_s5 + $0x998] sm:$0xff] }
 0x112   : > { %4522 = vmatpush3.msra.mxu1 %v597_v20  ;;  %4485 = vmatprep.subr.mxu0 %v580_v21  ;;  %v631_v19 = vld [vmem:[%s6028_s5 + $0x818] sm:$0xff]  ;;  %v646_v21 = vld [vmem:[%s6028_s5 + $0x890] sm:$0xff] }
 0x113   : > { %4523 = vmatprep.subr.mxu1 %v612_v22  ;;  %4486 = vmatpush3.msra.mxu0 %v564_v23  ;;  %v663_v20 = vld [vmem:[%s6028_s5 + $0x918] sm:$0xff]  ;;  %v678_v22 = vld [vmem:[%s6028_s5 + $0x990] sm:$0xff] }
 0x114   : > { %1398 = vmatprep.mubr.f32.mxu0 %v321_v24  ;;  %4524 = vmatpush3.msra.mxu1 %v596_v25  ;;  %v630_v23 = vld [vmem:[%s6028_s5 + $0x810] sm:$0xff]  ;;  %v645_v25 = vld [vmem:[%s6028_s5 + $0x888] sm:$0xff] }
 0x115   : > { %1399 = vmatmul.mubr.f32.vlgmr.msra.gmra.mxu0 %v320_v26  ;;  %1473 = vmatprep.mubr.f32.mxu1 %v323_v27  ;;  %v662_v24 = vld [vmem:[%s6028_s5 + $0x910] sm:$0xff]  ;;  %v677_v26 = vld [vmem:[%s6028_s5 + $0x988] sm:$0xff] }
 0x116   : > { %4531 = vmatprep.subr.mxu0 %v659_v28  ;;  %4569 = vmatprep.subr.mxu1 %v691_v29  ;;  %v629_v27 = vld [vmem:[%s6028_s5 + $0x808] sm:$0xff]  ;;  %v644_v29 = vld [vmem:[%s6028_s5 + $0x880] sm:$0xff] }
 0x117   : > { %1474 = vmatmul.mubr.f32.vlgmr.msra.gmra.mxu1 %v322_v30  ;;  %4532 = vmatpush3.msra.mxu0 %v643_v31  ;;  %v661_v28 = vld [vmem:[%s6028_s5 + $0x908] sm:$0xff]  ;;  %v676_v30 = vld [vmem:[%s6028_s5 + $0x980] sm:$0xff] }
 0x118   : > { %4570 = vmatpush3.msra.mxu1 %v675_v32  ;;  %4533 = vmatprep.subr.mxu0 %v658_v33  ;;  %v628_v31 = vld [vmem:[%s6028_s5 + $0x800] sm:$0xff]  ;;  %v325_v32 = vld [vmem:[#allocation3 + $0x88] sm:$0xff] }
 0x119   : > { %4571 = vmatprep.subr.mxu1 %v690_v34  ;;  %1403 = vmatprep.mubr.f32.mxu0 %v353_v35  ;;  %v660_v33 = vld [vmem:[%s6028_s5 + $0x900] sm:$0xff]  ;;  %v327_v35 = vld [vmem:[#allocation3 + $0x98] sm:$0xff] }
 0x11a   : > { %4534 = vmatpush3.msra.mxu0 %v642_v36  ;;  %4572 = vmatpush3.msra.mxu1 %v674_v37  ;;  %v324_v34 = vld [vmem:[#allocation3 + $0x80] sm:$0xff]  ;;  %v723_v36 = vld [vmem:[%s6028_s5 + $0xaf8] sm:$0xff] }
 0x11b   : > { %1404 = vmatmul.mubr.f32.gmra.mxu0 %v352_v38  ;;  %4535 = vmatprep.subr.mxu0 %v657_v39  ;;  %v755_v37 = vld [vmem:[%s6028_s5 + $0xbf8] sm:$0xff]  ;;  %v326_v38 = vld [vmem:[#allocation3 + $0x90] sm:$0xff] }
 0x11c   : > { %4573 = vmatprep.subr.mxu1 %v689_v40  ;;  %1478 = vmatprep.mubr.f32.mxu1 %v355_v41  ;;  %v707_v39 = vld [vmem:[%s6028_s5 + $0xa78] sm:$0xff]  ;;  %v722_v41 = vld [vmem:[%s6028_s5 + $0xaf0] sm:$0xff] }
 0x11d   : > { %4536 = vmatpush3.msra.mxu0 %v641_v42  ;;  %4574 = vmatpush3.msra.mxu1 %v673_v43  ;;  %v739_v40 = vld [vmem:[%s6028_s5 + $0xb78] sm:$0xff]  ;;  %v754_v42 = vld [vmem:[%s6028_s5 + $0xbf0] sm:$0xff]  ;;  %v357_v43 = vld [vmem:[#allocation3 + $0x188] sm:$0xff] }
 0x11e   : > { %4537 = vmatprep.subr.mxu0 %v656_v44  ;;  %1479 = vmatmul.mubr.f32.gmra.mxu1 %v354_v45  ;;  %v706_v44 = vld [vmem:[%s6028_s5 + $0xa70] sm:$0xff] }
 0x11f   : > { %4575 = vmatprep.subr.mxu1 %v688_v46  ;;  %4538 = vmatpush3.msra.mxu0 %v640_v47  ;;  %v738_v45 = vld [vmem:[%s6028_s5 + $0xb70] sm:$0xff]  ;;  %v356_v46 = vld [vmem:[#allocation3 + $0x180] sm:$0xff]  ;;  %v721_v47 = vld [vmem:[%s6028_s5 + $0xae8] sm:$0xff] }
 0x120   : > { %4576 = vmatpush3.msra.mxu1 %v672_v48  ;;  %4539 = vmatprep.subr.mxu0 %v655_v49  ;;  %v753_v48 = vld [vmem:[%s6028_s5 + $0xbe8] sm:$0xff]  ;;  %v359_v49 = vld [vmem:[#allocation3 + $0x198] sm:$0xff] }
 0x121   : > { %4577 = vmatprep.subr.mxu1 %v687_v50  ;;  %4540 = vmatpush3.msra.mxu0 %v639_v51  ;;  %v705_v50 = vld [vmem:[%s6028_s5 + $0xa68] sm:$0xff] }
 0x122   : > { %4578 = vmatpush3.msra.mxu1 %v671_v52  ;;  %4541 = vmatprep.subr.mxu0 %v654_v53  ;;  %v737_v51 = vld [vmem:[%s6028_s5 + $0xb68] sm:$0xff]  ;;  %v720_v52 = vld [vmem:[%s6028_s5 + $0xae0] sm:$0xff]  ;;  %v358_v53 = vld [vmem:[#allocation3 + $0x190] sm:$0xff] }
 0x123   : > { %4579 = vmatprep.subr.mxu1 %v686_v54  ;;  %4542 = vmatpush3.msra.mxu0 %v638_v55  ;;  %v752_v54 = vld [vmem:[%s6028_s5 + $0xbe0] sm:$0xff] }
 0x124   : > { %4580 = vmatpush3.msra.mxu1 %v670_v56  ;;  %4543 = vmatprep.subr.mxu0 %v653_v57  ;;  %v704_v55 = vld [vmem:[%s6028_s5 + $0xa60] sm:$0xff]  ;;  %v719_v57 = vld [vmem:[%s6028_s5 + $0xad8] sm:$0xff] }
 0x125   : > { %4581 = vmatprep.subr.mxu1 %v685_v58  ;;  %4544 = vmatpush3.msra.mxu0 %v637_v59  ;;  %v736_v56 = vld [vmem:[%s6028_s5 + $0xb60] sm:$0xff]  ;;  %v751_v58 = vld [vmem:[%s6028_s5 + $0xbd8] sm:$0xff] }
 0x126   : > { %4582 = vmatpush3.msra.mxu1 %v669_v60  ;;  %4545 = vmatprep.subr.mxu0 %v652_v61  ;;  %v703_v59 = vld [vmem:[%s6028_s5 + $0xa58] sm:$0xff]  ;;  %v718_v61 = vld [vmem:[%s6028_s5 + $0xad0] sm:$0xff] }
 0x127   : > { %4583 = vmatprep.subr.mxu1 %v684_v62  ;;  %4546 = vmatpush3.msra.mxu0 %v636_v63  ;;  %v735_v60 = vld [vmem:[%s6028_s5 + $0xb58] sm:$0xff]  ;;  %v750_v62 = vld [vmem:[%s6028_s5 + $0xbd0] sm:$0xff] }
 0x128   : > { %4584 = vmatpush3.msra.mxu1 %v668_v0  ;;  %4547 = vmatprep.subr.mxu0 %v651_v1  ;;  %v702_v63 = vld [vmem:[%s6028_s5 + $0xa50] sm:$0xff]  ;;  %v717_v1 = vld [vmem:[%s6028_s5 + $0xac8] sm:$0xff] }
 0x129   : > { %4585 = vmatprep.subr.mxu1 %v683_v2  ;;  %4548 = vmatpush3.msra.mxu0 %v635_v3  ;;  %v734_v0 = vld [vmem:[%s6028_s5 + $0xb50] sm:$0xff]  ;;  %v749_v2 = vld [vmem:[%s6028_s5 + $0xbc8] sm:$0xff] }
 0x12a   : > { %4586 = vmatpush3.msra.mxu1 %v667_v4  ;;  %4549 = vmatprep.subr.mxu0 %v650_v5  ;;  %v701_v3 = vld [vmem:[%s6028_s5 + $0xa48] sm:$0xff]  ;;  %v716_v5 = vld [vmem:[%s6028_s5 + $0xac0] sm:$0xff] }
 0x12b   : > { %4587 = vmatprep.subr.mxu1 %v682_v6  ;;  %4550 = vmatpush3.msra.mxu0 %v634_v7  ;;  %v733_v4 = vld [vmem:[%s6028_s5 + $0xb48] sm:$0xff]  ;;  %v748_v6 = vld [vmem:[%s6028_s5 + $0xbc0] sm:$0xff] }
 0x12c   : > { %4588 = vmatpush3.msra.mxu1 %v666_v8  ;;  %4551 = vmatprep.subr.mxu0 %v649_v9  ;;  %v700_v7 = vld [vmem:[%s6028_s5 + $0xa40] sm:$0xff]  ;;  %v715_v9 = vld [vmem:[%s6028_s5 + $0xab8] sm:$0xff] }
 0x12d   : > { %4589 = vmatprep.subr.mxu1 %v681_v10  ;;  %4552 = vmatpush3.msra.mxu0 %v633_v11  ;;  %v732_v8 = vld [vmem:[%s6028_s5 + $0xb40] sm:$0xff]  ;;  %v747_v10 = vld [vmem:[%s6028_s5 + $0xbb8] sm:$0xff] }
 0x12e   : > { %4590 = vmatpush3.msra.mxu1 %v665_v12  ;;  %4553 = vmatprep.subr.mxu0 %v648_v13  ;;  %v699_v11 = vld [vmem:[%s6028_s5 + $0xa38] sm:$0xff]  ;;  %v714_v13 = vld [vmem:[%s6028_s5 + $0xab0] sm:$0xff] }
 0x12f   : > { %4591 = vmatprep.subr.mxu1 %v680_v14  ;;  %4554 = vmatpush3.msra.mxu0 %v632_v15  ;;  %v731_v12 = vld [vmem:[%s6028_s5 + $0xb38] sm:$0xff]  ;;  %v746_v14 = vld [vmem:[%s6028_s5 + $0xbb0] sm:$0xff] }
 0x130   : > { %4592 = vmatpush3.msra.mxu1 %v664_v16  ;;  %4555 = vmatprep.subr.mxu0 %v647_v17  ;;  %v698_v15 = vld [vmem:[%s6028_s5 + $0xa30] sm:$0xff]  ;;  %v713_v17 = vld [vmem:[%s6028_s5 + $0xaa8] sm:$0xff] }
 0x131   : > { %4593 = vmatprep.subr.mxu1 %v679_v18  ;;  %4556 = vmatpush3.msra.mxu0 %v631_v19  ;;  %v730_v16 = vld [vmem:[%s6028_s5 + $0xb30] sm:$0xff]  ;;  %v745_v18 = vld [vmem:[%s6028_s5 + $0xba8] sm:$0xff] }
 0x132   : > { %4594 = vmatpush3.msra.mxu1 %v663_v20  ;;  %4557 = vmatprep.subr.mxu0 %v646_v21  ;;  %v697_v19 = vld [vmem:[%s6028_s5 + $0xa28] sm:$0xff]  ;;  %v712_v21 = vld [vmem:[%s6028_s5 + $0xaa0] sm:$0xff] }
 0x133   : > { %4595 = vmatprep.subr.mxu1 %v678_v22  ;;  %4558 = vmatpush3.msra.mxu0 %v630_v23  ;;  %v729_v20 = vld [vmem:[%s6028_s5 + $0xb28] sm:$0xff]  ;;  %v744_v22 = vld [vmem:[%s6028_s5 + $0xba0] sm:$0xff] }
 0x134   : > { %4596 = vmatpush3.msra.mxu1 %v662_v24  ;;  %4559 = vmatprep.subr.mxu0 %v645_v25  ;;  %v696_v23 = vld [vmem:[%s6028_s5 + $0xa20] sm:$0xff]  ;;  %v711_v25 = vld [vmem:[%s6028_s5 + $0xa98] sm:$0xff] }
 0x135   : > { %4597 = vmatprep.subr.mxu1 %v677_v26  ;;  %4560 = vmatpush3.msra.mxu0 %v629_v27  ;;  %v728_v24 = vld [vmem:[%s6028_s5 + $0xb20] sm:$0xff]  ;;  %v743_v26 = vld [vmem:[%s6028_s5 + $0xb98] sm:$0xff] }
 0x136   : > { %4598 = vmatpush3.msra.mxu1 %v661_v28  ;;  %4561 = vmatprep.subr.mxu0 %v644_v29  ;;  %v695_v27 = vld [vmem:[%s6028_s5 + $0xa18] sm:$0xff]  ;;  %v710_v29 = vld [vmem:[%s6028_s5 + $0xa90] sm:$0xff] }
 0x137   : > { %4599 = vmatprep.subr.mxu1 %v676_v30  ;;  %4562 = vmatpush3.msra.mxu0 %v628_v31  ;;  %v727_v28 = vld [vmem:[%s6028_s5 + $0xb18] sm:$0xff]  ;;  %v742_v30 = vld [vmem:[%s6028_s5 + $0xb90] sm:$0xff] }
 0x138   : > { %1548 = vmatprep.mubr.f32.mxu0 %v325_v32  ;;  %4600 = vmatpush3.msra.mxu1 %v660_v33  ;;  %v694_v31 = vld [vmem:[%s6028_s5 + $0xa10] sm:$0xff]  ;;  %v709_v33 = vld [vmem:[%s6028_s5 + $0xa88] sm:$0xff] }
 0x139   : > { %1549 = vmatmul.mubr.f32.vlgmr.msra.gmra.mxu0 %v324_v34  ;;  %1623 = vmatprep.mubr.f32.mxu1 %v327_v35  ;;  %v726_v32 = vld [vmem:[%s6028_s5 + $0xb10] sm:$0xff]  ;;  %v741_v34 = vld [vmem:[%s6028_s5 + $0xb88] sm:$0xff] }
 0x13a   : > { %4607 = vmatprep.subr.mxu0 %v723_v36  ;;  %4645 = vmatprep.subr.mxu1 %v755_v37  ;;  %v693_v35 = vld [vmem:[%s6028_s5 + $0xa08] sm:$0xff]  ;;  %v708_v37 = vld [vmem:[%s6028_s5 + $0xa80] sm:$0xff] }
 0x13b   : > { %1624 = vmatmul.mubr.f32.vlgmr.msra.gmra.mxu1 %v326_v38  ;;  %4608 = vmatpush3.msra.mxu0 %v707_v39  ;;  %v725_v36 = vld [vmem:[%s6028_s5 + $0xb08] sm:$0xff]  ;;  %v740_v38 = vld [vmem:[%s6028_s5 + $0xb80] sm:$0xff] }
 0x13c   : > { %4646 = vmatpush3.msra.mxu1 %v739_v40  ;;  %4609 = vmatprep.subr.mxu0 %v722_v41  ;;  %v692_v39 = vld [vmem:[%s6028_s5 + $0xa00] sm:$0xff]  ;;  %v329_v40 = vld [vmem:[#allocation3 + $0xa8] sm:$0xff] }
 0x13d   : > { %4647 = vmatprep.subr.mxu1 %v754_v42  ;;  %1553 = vmatprep.mubr.f32.mxu0 %v357_v43  ;;  %v724_v41 = vld [vmem:[%s6028_s5 + $0xb00] sm:$0xff]  ;;  %v331_v43 = vld [vmem:[#allocation3 + $0xb8] sm:$0xff] }
 0x13e   : > { %4610 = vmatpush3.msra.mxu0 %v706_v44  ;;  %4648 = vmatpush3.msra.mxu1 %v738_v45  ;;  %v328_v42 = vld [vmem:[#allocation3 + $0xa0] sm:$0xff]  ;;  %v787_v44 = vld [vmem:[%s6028_s5 + $0xcf8] sm:$0xff] }
 0x13f   : > { %1554 = vmatmul.mubr.f32.gmra.mxu0 %v356_v46  ;;  %4611 = vmatprep.subr.mxu0 %v721_v47  ;;  %v819_v45 = vld [vmem:[%s6028_s5 + $0xdf8] sm:$0xff]  ;;  %v330_v46 = vld [vmem:[#allocation3 + $0xb0] sm:$0xff] }
 0x140   : > { %4649 = vmatprep.subr.mxu1 %v753_v48  ;;  %1628 = vmatprep.mubr.f32.mxu1 %v359_v49  ;;  %v771_v47 = vld [vmem:[%s6028_s5 + $0xc78] sm:$0xff]  ;;  %v786_v49 = vld [vmem:[%s6028_s5 + $0xcf0] sm:$0xff] }
 0x141   : > { %4612 = vmatpush3.msra.mxu0 %v705_v50  ;;  %4650 = vmatpush3.msra.mxu1 %v737_v51  ;;  %v803_v48 = vld [vmem:[%s6028_s5 + $0xd78] sm:$0xff]  ;;  %v818_v50 = vld [vmem:[%s6028_s5 + $0xdf0] sm:$0xff]  ;;  %v361_v51 = vld [vmem:[#allocation3 + $0x1a8] sm:$0xff] }
 0x142   : > { %4613 = vmatprep.subr.mxu0 %v720_v52  ;;  %1629 = vmatmul.mubr.f32.gmra.mxu1 %v358_v53  ;;  %v770_v52 = vld [vmem:[%s6028_s5 + $0xc70] sm:$0xff] }
 0x143   : > { %4651 = vmatprep.subr.mxu1 %v752_v54  ;;  %4614 = vmatpush3.msra.mxu0 %v704_v55  ;;  %v802_v53 = vld [vmem:[%s6028_s5 + $0xd70] sm:$0xff]  ;;  %v360_v54 = vld [vmem:[#allocation3 + $0x1a0] sm:$0xff]  ;;  %v785_v55 = vld [vmem:[%s6028_s5 + $0xce8] sm:$0xff] }
 0x144   : > { %4652 = vmatpush3.msra.mxu1 %v736_v56  ;;  %4615 = vmatprep.subr.mxu0 %v719_v57  ;;  %v817_v56 = vld [vmem:[%s6028_s5 + $0xde8] sm:$0xff]  ;;  %v363_v57 = vld [vmem:[#allocation3 + $0x1b8] sm:$0xff] }
 0x145   : > { %4653 = vmatprep.subr.mxu1 %v751_v58  ;;  %4616 = vmatpush3.msra.mxu0 %v703_v59  ;;  %v769_v58 = vld [vmem:[%s6028_s5 + $0xc68] sm:$0xff] }
 0x146   : > { %4654 = vmatpush3.msra.mxu1 %v735_v60  ;;  %4617 = vmatprep.subr.mxu0 %v718_v61  ;;  %v801_v59 = vld [vmem:[%s6028_s5 + $0xd68] sm:$0xff]  ;;  %v784_v60 = vld [vmem:[%s6028_s5 + $0xce0] sm:$0xff]  ;;  %v362_v61 = vld [vmem:[#allocation3 + $0x1b0] sm:$0xff] }
 0x147   : > { %4655 = vmatprep.subr.mxu1 %v750_v62  ;;  %4618 = vmatpush3.msra.mxu0 %v702_v63  ;;  %v816_v62 = vld [vmem:[%s6028_s5 + $0xde0] sm:$0xff] }
 0x148   : > { %4656 = vmatpush3.msra.mxu1 %v734_v0  ;;  %4619 = vmatprep.subr.mxu0 %v717_v1  ;;  %v768_v63 = vld [vmem:[%s6028_s5 + $0xc60] sm:$0xff]  ;;  %v783_v1 = vld [vmem:[%s6028_s5 + $0xcd8] sm:$0xff] }
 0x149   : > { %4657 = vmatprep.subr.mxu1 %v749_v2  ;;  %4620 = vmatpush3.msra.mxu0 %v701_v3  ;;  %v800_v0 = vld [vmem:[%s6028_s5 + $0xd60] sm:$0xff]  ;;  %v815_v2 = vld [vmem:[%s6028_s5 + $0xdd8] sm:$0xff] }
 0x14a   : > { %4658 = vmatpush3.msra.mxu1 %v733_v4  ;;  %4621 = vmatprep.subr.mxu0 %v716_v5  ;;  %v767_v3 = vld [vmem:[%s6028_s5 + $0xc58] sm:$0xff]  ;;  %v782_v5 = vld [vmem:[%s6028_s5 + $0xcd0] sm:$0xff] }
 0x14b   : > { %4659 = vmatprep.subr.mxu1 %v748_v6  ;;  %4622 = vmatpush3.msra.mxu0 %v700_v7  ;;  %v799_v4 = vld [vmem:[%s6028_s5 + $0xd58] sm:$0xff]  ;;  %v814_v6 = vld [vmem:[%s6028_s5 + $0xdd0] sm:$0xff] }
 0x14c   : > { %4660 = vmatpush3.msra.mxu1 %v732_v8  ;;  %4623 = vmatprep.subr.mxu0 %v715_v9  ;;  %v766_v7 = vld [vmem:[%s6028_s5 + $0xc50] sm:$0xff]  ;;  %v781_v9 = vld [vmem:[%s6028_s5 + $0xcc8] sm:$0xff] }
 0x14d   : > { %4661 = vmatprep.subr.mxu1 %v747_v10  ;;  %4624 = vmatpush3.msra.mxu0 %v699_v11  ;;  %v798_v8 = vld [vmem:[%s6028_s5 + $0xd50] sm:$0xff]  ;;  %v813_v10 = vld [vmem:[%s6028_s5 + $0xdc8] sm:$0xff] }
 0x14e   : > { %4662 = vmatpush3.msra.mxu1 %v731_v12  ;;  %4625 = vmatprep.subr.mxu0 %v714_v13  ;;  %v765_v13 = vld [vmem:[%s6028_s5 + $0xc48] sm:$0xff] }
 0x14f   : > { %4663 = vmatprep.subr.mxu1 %v746_v14  ;;  %4626 = vmatpush3.msra.mxu0 %v698_v15  ;;  %v797_v14 = vld [vmem:[%s6028_s5 + $0xd48] sm:$0xff]  ;;  %v780_v15 = vld [vmem:[%s6028_s5 + $0xcc0] sm:$0xff] }
 0x150   : > { %4664 = vmatpush3.msra.mxu1 %v730_v16  ;;  %4627 = vmatprep.subr.mxu0 %v713_v17  ;;  %v812_v16 = vld [vmem:[%s6028_s5 + $0xdc0] sm:$0xff] }
 0x151   : > { %4665 = vmatprep.subr.mxu1 %v745_v18  ;;  %4628 = vmatpush3.msra.mxu0 %v697_v19  ;;  %v764_v19 = vld [vmem:[%s6028_s5 + $0xc40] sm:$0xff] }
 0x152   : > { %4666 = vmatpush3.msra.mxu1 %v729_v20  ;;  %4629 = vmatprep.subr.mxu0 %v712_v21  ;;  %v796_v20 = vld [vmem:[%s6028_s5 + $0xd40] sm:$0xff] }
 0x153   : > { %4667 = vmatprep.subr.mxu1 %v744_v22  ;;  %4630 = vmatpush3.msra.mxu0 %v696_v23  ;;  %v779_v23 = vld [vmem:[%s6028_s5 + $0xcb8] sm:$0xff] }
 0x154   : > { %4668 = vmatpush3.msra.mxu1 %v728_v24  ;;  %4631 = vmatprep.subr.mxu0 %v711_v25  ;;  %v811_v24 = vld [vmem:[%s6028_s5 + $0xdb8] sm:$0xff] }
 0x155   : > { %4669 = vmatprep.subr.mxu1 %v743_v26  ;;  %4632 = vmatpush3.msra.mxu0 %v695_v27  ;;  %v763_v25 = vld [vmem:[%s6028_s5 + $0xc38] sm:$0xff] }
 0x156   : > { %4670 = vmatpush3.msra.mxu1 %v727_v28  ;;  %4633 = vmatprep.subr.mxu0 %v710_v29  ;;  %v795_v26 = vld [vmem:[%s6028_s5 + $0xd38] sm:$0xff]  ;;  %v778_v28 = vld [vmem:[%s6028_s5 + $0xcb0] sm:$0xff] }
 0x157   : > { %4671 = vmatprep.subr.mxu1 %v742_v30  ;;  %4634 = vmatpush3.msra.mxu0 %v694_v31  ;;  %v810_v29 = vld [vmem:[%s6028_s5 + $0xdb0] sm:$0xff] }
 0x158   : > { %4672 = vmatpush3.msra.mxu1 %v726_v32  ;;  %4635 = vmatprep.subr.mxu0 %v709_v33  ;;  %v762_v30 = vld [vmem:[%s6028_s5 + $0xc30] sm:$0xff]  ;;  %v777_v32 = vld [vmem:[%s6028_s5 + $0xca8] sm:$0xff] }
 0x159   : > { %4673 = vmatprep.subr.mxu1 %v741_v34  ;;  %4636 = vmatpush3.msra.mxu0 %v693_v35  ;;  %v794_v31 = vld [vmem:[%s6028_s5 + $0xd30] sm:$0xff]  ;;  %v809_v33 = vld [vmem:[%s6028_s5 + $0xda8] sm:$0xff] }
 0x15a   : > { %4674 = vmatpush3.msra.mxu1 %v725_v36  ;;  %4637 = vmatprep.subr.mxu0 %v708_v37  ;;  %v761_v34 = vld [vmem:[%s6028_s5 + $0xc28] sm:$0xff]  ;;  %v776_v36 = vld [vmem:[%s6028_s5 + $0xca0] sm:$0xff] }
 0x15b   : > { %4675 = vmatprep.subr.mxu1 %v740_v38  ;;  %4638 = vmatpush3.msra.mxu0 %v692_v39  ;;  %v793_v35 = vld [vmem:[%s6028_s5 + $0xd28] sm:$0xff]  ;;  %v808_v37 = vld [vmem:[%s6028_s5 + $0xda0] sm:$0xff] }
 0x15c   : > { %1698 = vmatprep.mubr.f32.mxu0 %v329_v40  ;;  %4676 = vmatpush3.msra.mxu1 %v724_v41  ;;  %v760_v38 = vld [vmem:[%s6028_s5 + $0xc20] sm:$0xff]  ;;  %v775_v40 = vld [vmem:[%s6028_s5 + $0xc98] sm:$0xff] }
 0x15d   : > { %1699 = vmatmul.mubr.f32.vlgmr.msra.gmra.mxu0 %v328_v42  ;;  %1773 = vmatprep.mubr.f32.mxu1 %v331_v43  ;;  %v792_v39 = vld [vmem:[%s6028_s5 + $0xd20] sm:$0xff]  ;;  %v807_v41 = vld [vmem:[%s6028_s5 + $0xd98] sm:$0xff] }
 0x15e   : > { %4683 = vmatprep.subr.mxu0 %v787_v44  ;;  %4721 = vmatprep.subr.mxu1 %v819_v45  ;;  %v759_v42 = vld [vmem:[%s6028_s5 + $0xc18] sm:$0xff]  ;;  %v774_v44 = vld [vmem:[%s6028_s5 + $0xc90] sm:$0xff] }
 0x15f   : > { %1774 = vmatmul.mubr.f32.vlgmr.msra.gmra.mxu1 %v330_v46  ;;  %4684 = vmatpush3.msra.mxu0 %v771_v47  ;;  %v791_v43 = vld [vmem:[%s6028_s5 + $0xd18] sm:$0xff]  ;;  %v806_v45 = vld [vmem:[%s6028_s5 + $0xd90] sm:$0xff] }
 0x160   : > { %4722 = vmatpush3.msra.mxu1 %v803_v48  ;;  %4685 = vmatprep.subr.mxu0 %v786_v49  ;;  %v758_v46 = vld [vmem:[%s6028_s5 + $0xc10] sm:$0xff]  ;;  %v773_v48 = vld [vmem:[%s6028_s5 + $0xc88] sm:$0xff] }
 0x161   : > { %4723 = vmatprep.subr.mxu1 %v818_v50  ;;  %1703 = vmatprep.mubr.f32.mxu0 %v361_v51  ;;  %v790_v47 = vld [vmem:[%s6028_s5 + $0xd10] sm:$0xff]  ;;  %v805_v49 = vld [vmem:[%s6028_s5 + $0xd88] sm:$0xff] }
 0x162   : > { %4686 = vmatpush3.msra.mxu0 %v770_v52  ;;  %4724 = vmatpush3.msra.mxu1 %v802_v53  ;;  %v757_v50 = vld [vmem:[%s6028_s5 + $0xc08] sm:$0xff]  ;;  %v772_v52 = vld [vmem:[%s6028_s5 + $0xc80] sm:$0xff] }
 0x163   : > { %1704 = vmatmul.mubr.f32.gmra.mxu0 %v360_v54  ;;  %4687 = vmatprep.subr.mxu0 %v785_v55  ;;  %v789_v51 = vld [vmem:[%s6028_s5 + $0xd08] sm:$0xff]  ;;  %v804_v53 = vld [vmem:[%s6028_s5 + $0xd80] sm:$0xff] }
 0x164   : > { %4725 = vmatprep.subr.mxu1 %v817_v56  ;;  %1778 = vmatprep.mubr.f32.mxu1 %v363_v57  ;;  %v756_v54 = vld [vmem:[%s6028_s5 + $0xc00] sm:$0xff]  ;;  %v333_v55 = vld [vmem:[#allocation3 + $0xc8] sm:$0xff] }
 0x165   : > { %4688 = vmatpush3.msra.mxu0 %v769_v58  ;;  %4726 = vmatpush3.msra.mxu1 %v801_v59  ;;  %v788_v56 = vld [vmem:[%s6028_s5 + $0xd00] sm:$0xff]  ;;  %v335_v58 = vld [vmem:[#allocation3 + $0xd8] sm:$0xff] }
 0x166   : > { %4689 = vmatprep.subr.mxu0 %v784_v60  ;;  %1779 = vmatmul.mubr.f32.gmra.mxu1 %v362_v61  ;;  %v332_v57 = vld [vmem:[#allocation3 + $0xc0] sm:$0xff]  ;;  %v851_v59 = vld [vmem:[%s6028_s5 + $0xef8] sm:$0xff]  ;;  %v334_v61 = vld [vmem:[#allocation3 + $0xd0] sm:$0xff] }
 0x167   : > { %4727 = vmatprep.subr.mxu1 %v816_v62  ;;  %4690 = vmatpush3.msra.mxu0 %v768_v63  ;;  %v883_v60 = vld [vmem:[%s6028_s5 + $0xff8] sm:$0xff] }
 0x168   : > { %4728 = vmatpush3.msra.mxu1 %v800_v0  ;;  %4691 = vmatprep.subr.mxu0 %v783_v1  ;;  %v835_v62 = vld [vmem:[%s6028_s5 + $0xe78] sm:$0xff]  ;;  %v850_v0 = vld [vmem:[%s6028_s5 + $0xef0] sm:$0xff] }
 0x169   : > { %4729 = vmatprep.subr.mxu1 %v815_v2  ;;  %4692 = vmatpush3.msra.mxu0 %v767_v3  ;;  %v4259_v11 = vpop.f32.mrf.mxu0  ;;  %v867_v63 = vld [vmem:[%s6028_s5 + $0xf78] sm:$0xff]  ;;  %v882_v1 = vld [vmem:[%s6028_s5 + $0xff0] sm:$0xff]  ;;  %v365_v2 = vld [vmem:[#allocation3 + $0x1c8] sm:$0xff] }
 0x16a   : > { %4730 = vmatpush3.msra.mxu1 %v799_v4  ;;  %v4297_v12 = vpop.f32.mrf.mxu1  ;;  %4693 = vmatprep.subr.mxu0 %v782_v5  ;;  %v834_v3 = vld [vmem:[%s6028_s5 + $0xe70] sm:$0xff]  ;;  %v364_v5 = vld [vmem:[#allocation3 + $0x1c0] sm:$0xff] }
 0x16b   : > { %4731 = vmatprep.subr.mxu1 %v814_v6  ;;  %4694 = vmatpush3.msra.mxu0 %v766_v7  ;;  %v4260_v17 = vpop.f32.mrf.mxu0  ;;  %v866_v4 = vld [vmem:[%s6028_s5 + $0xf70] sm:$0xff]  ;;  %v849_v6 = vld [vmem:[%s6028_s5 + $0xee8] sm:$0xff] }
 0x16c   : > { %4732 = vmatpush3.msra.mxu1 %v798_v8  ;;  %v4298_v18 = vpop.f32.mrf.mxu1  ;;  %4695 = vmatprep.subr.mxu0 %v781_v9  ;;  %v4261_v21 = vadd.f32 %v4260_v17, %v4259_v11  ;;  %v881_v7 = vld [vmem:[%s6028_s5 + $0xfe8] sm:$0xff]  ;;  %v367_v8 = vld [vmem:[#allocation3 + $0x1d8] sm:$0xff]  ;;  %v848_v11 = vld [vmem:[%s6028_s5 + $0xee0] sm:$0xff] }
 0x16d   : > { %4733 = vmatprep.subr.mxu1 %v813_v10  ;;  %v4299_v22 = vadd.f32 %v4298_v18, %v4297_v12  ;;  %4696 = vmatpush3.msra.mxu0 %v765_v13  ;;  %v833_v9 = vld [vmem:[%s6028_s5 + $0xe68] sm:$0xff]  ;;  %v864_v17 = vld [vmem:[%s6028_s5 + $0xf60] sm:$0xff] }
 0x16e   : > { %4734 = vmatpush3.msra.mxu1 %v797_v14  ;;  %4697 = vmatprep.subr.mxu0 %v780_v15  ;;  %v865_v10 = vld [vmem:[%s6028_s5 + $0xf68] sm:$0xff]  ;;  %v366_v14 = vld [vmem:[#allocation3 + $0x1d0] sm:$0xff]  ;;  %v880_v15 = vld [vmem:[%s6028_s5 + $0xfe0] sm:$0xff] }
 0x16f   : > { %4735 = vmatprep.subr.mxu1 %v812_v16  ;;  %v6464_v27 = vadd.f32 %v4299_v22, %v4261_v21  ;;  %4698 = vmatpush3.msra.mxu0 %v764_v19  ;;  %v832_v16 = vld [vmem:[%s6028_s5 + $0xe60] sm:$0xff]  ;;  %v879_v21 = vld [vmem:[%s6028_s5 + $0xfd8] sm:$0xff] }
 0x170   : > { %4736 = vmatpush3.msra.mxu1 %v796_v20  ;;  %4699 = vmatprep.subr.mxu0 %v779_v23  ;;  %v847_v20 = vld [vmem:[%s6028_s5 + $0xed8] sm:$0xff] }
 0x171   : > { %4737 = vmatprep.subr.mxu1 %v811_v24  ;;  %4700 = vmatpush3.msra.mxu0 %v763_v25  ;;  %v831_v24 = vld [vmem:[%s6028_s5 + $0xe58] sm:$0xff] }
 0x172   : > { %4738 = vmatpush3.msra.mxu1 %v795_v26  ;;  %4701 = vmatprep.subr.mxu0 %v778_v28  ;;  %v863_v25 = vld [vmem:[%s6028_s5 + $0xf58] sm:$0xff]  ;;  %v846_v26 = vld [vmem:[%s6028_s5 + $0xed0] sm:$0xff] }
 0x173   : > { %4739 = vmatprep.subr.mxu1 %v810_v29  ;;  %4702 = vmatpush3.msra.mxu0 %v762_v30  ;;  %v878_v28 = vld [vmem:[%s6028_s5 + $0xfd0] sm:$0xff] }
 0x174   : > { %4740 = vmatpush3.msra.mxu1 %v794_v31  ;;  %4703 = vmatprep.subr.mxu0 %v777_v32  ;;  %v830_v30 = vld [vmem:[%s6028_s5 + $0xe50] sm:$0xff] }
 0x175   : > { %4741 = vmatprep.subr.mxu1 %v809_v33  ;;  %4704 = vmatpush3.msra.mxu0 %v761_v34  ;;  %v862_v31 = vld [vmem:[%s6028_s5 + $0xf50] sm:$0xff]  ;;  %v845_v33 = vld [vmem:[%s6028_s5 + $0xec8] sm:$0xff] }
 0x176   : > { %4742 = vmatpush3.msra.mxu1 %v793_v35  ;;  %4705 = vmatprep.subr.mxu0 %v776_v36  ;;  %v877_v34 = vld [vmem:[%s6028_s5 + $0xfc8] sm:$0xff] }
 0x177   : > { %4743 = vmatprep.subr.mxu1 %v808_v37  ;;  %4706 = vmatpush3.msra.mxu0 %v760_v38  ;;  %v829_v35 = vld [vmem:[%s6028_s5 + $0xe48] sm:$0xff] }
 0x178   : > { %4744 = vmatpush3.msra.mxu1 %v792_v39  ;;  %4707 = vmatprep.subr.mxu0 %v775_v40  ;;  %v861_v36 = vld [vmem:[%s6028_s5 + $0xf48] sm:$0xff]  ;;  %v844_v39 = vld [vmem:[%s6028_s5 + $0xec0] sm:$0xff] }
 0x179   : > { %4745 = vmatprep.subr.mxu1 %v807_v41  ;;  %4708 = vmatpush3.msra.mxu0 %v759_v42  ;;  %v876_v40 = vld [vmem:[%s6028_s5 + $0xfc0] sm:$0xff] }
 0x17a   : > { %4746 = vmatpush3.msra.mxu1 %v791_v43  ;;  %4709 = vmatprep.subr.mxu0 %v774_v44  ;;  %v828_v42 = vld [vmem:[%s6028_s5 + $0xe40] sm:$0xff] }
 0x17b   : > { %4747 = vmatprep.subr.mxu1 %v806_v45  ;;  %4710 = vmatpush3.msra.mxu0 %v758_v46  ;;  %v860_v43 = vld [vmem:[%s6028_s5 + $0xf40] sm:$0xff]  ;;  %v843_v45 = vld [vmem:[%s6028_s5 + $0xeb8] sm:$0xff] }
 0x17c   : > { %4748 = vmatpush3.msra.mxu1 %v790_v47  ;;  %4711 = vmatprep.subr.mxu0 %v773_v48  ;;  %v875_v46 = vld [vmem:[%s6028_s5 + $0xfb8] sm:$0xff] }
 0x17d   : > { %4749 = vmatprep.subr.mxu1 %v805_v49  ;;  %4712 = vmatpush3.msra.mxu0 %v757_v50  ;;  %v827_v49 = vld [vmem:[%s6028_s5 + $0xe38] sm:$0xff] }
 0x17e   : > { %4750 = vmatpush3.msra.mxu1 %v789_v51  ;;  %4713 = vmatprep.subr.mxu0 %v772_v52  ;;  %v859_v50 = vld [vmem:[%s6028_s5 + $0xf38] sm:$0xff]  ;;  %v842_v52 = vld [vmem:[%s6028_s5 + $0xeb0] sm:$0xff] }
 0x17f   : > { %4751 = vmatprep.subr.mxu1 %v804_v53  ;;  %4714 = vmatpush3.msra.mxu0 %v756_v54  ;;  %v874_v53 = vld [vmem:[%s6028_s5 + $0xfb0] sm:$0xff] }
 0x180   : > { %1848 = vmatprep.mubr.f32.mxu0 %v333_v55  ;;  %4752 = vmatpush3.msra.mxu1 %v788_v56  ;;  %v858_v55 = vld [vmem:[%s6028_s5 + $0xf30] sm:$0xff] }
 0x181   : > { %1849 = vmatmul.mubr.f32.vlgmr.msra.gmra.mxu0 %v332_v57  ;;  %1923 = vmatprep.mubr.f32.mxu1 %v335_v58  ;;  %v841_v57 = vld [vmem:[%s6028_s5 + $0xea8] sm:$0xff] }
 0x182   : > { %4759 = vmatprep.subr.mxu0 %v851_v59  ;;  %4797 = vmatprep.subr.mxu1 %v883_v60  ;;  %v873_v58 = vld [vmem:[%s6028_s5 + $0xfa8] sm:$0xff] }
 0x183   : > { %1924 = vmatmul.mubr.f32.vlgmr.msra.gmra.mxu1 %v334_v61  ;;  %4760 = vmatpush3.msra.mxu0 %v835_v62  ;;  %v825_v60 = vld [vmem:[%s6028_s5 + $0xe28] sm:$0xff] }
 0x184   : > { %4798 = vmatpush3.msra.mxu1 %v867_v63  ;;  %4761 = vmatprep.subr.mxu0 %v850_v0  ;;  %v857_v61 = vld [vmem:[%s6028_s5 + $0xf28] sm:$0xff]  ;;  %v840_v63 = vld [vmem:[%s6028_s5 + $0xea0] sm:$0xff] }
 0x185   : > { %4799 = vmatprep.subr.mxu1 %v882_v1  ;;  %1853 = vmatprep.mubr.f32.mxu0 %v365_v2  ;;  %v872_v0 = vld [vmem:[%s6028_s5 + $0xfa0] sm:$0xff] }
 0x186   : > { %4762 = vmatpush3.msra.mxu0 %v834_v3  ;;  %4800 = vmatpush3.msra.mxu1 %v866_v4  ;;  %v4262_v12 = vpop.f32.mrf.mxu0  ;;  %v824_v2 = vld [vmem:[%s6028_s5 + $0xe20] sm:$0xff] }
 0x187   : > { %1854 = vmatmul.mubr.f32.gmra.mxu0 %v364_v5  ;;  %v4300_v13 = vpop.f32.mrf.mxu1  ;;  %4763 = vmatprep.subr.mxu0 %v849_v6  ;;  %v856_v3 = vld [vmem:[%s6028_s5 + $0xf20] sm:$0xff]  ;;  %v839_v5 = vld [vmem:[%s6028_s5 + $0xe98] sm:$0xff] }
 0x188   : > { %4801 = vmatprep.subr.mxu1 %v881_v7  ;;  %1928 = vmatprep.mubr.f32.mxu1 %v367_v8  ;;  %v4263_v18 = vpop.f32.mrf.mxu0  ;;  %v871_v6 = vld [vmem:[%s6028_s5 + $0xf98] sm:$0xff] }
 0x189   : > { %4764 = vmatpush3.msra.mxu0 %v833_v9  ;;  %v4301_v19 = vpop.f32.mrf.mxu1  ;;  %4802 = vmatpush3.msra.mxu1 %v865_v10  ;;  %v4264_v22 = vadd.f32 %v4263_v18, %v4262_v12  ;;  %v823_v8 = vld [vmem:[%s6028_s5 + $0xe18] sm:$0xff]  ;;  %v838_v10 = vld [vmem:[%s6028_s5 + $0xe90] sm:$0xff]  ;;  %v853_v18 = vld [vmem:[%s6028_s5 + $0xf08] sm:$0xff] }
 0x18a   : > { %4765 = vmatprep.subr.mxu0 %v848_v11  ;;  %v4302_v23 = vadd.f32 %v4301_v19, %v4300_v13  ;;  %1929 = vmatmul.mubr.f32.gmra.mxu1 %v366_v14  ;;  %v855_v9 = vld [vmem:[%s6028_s5 + $0xf18] sm:$0xff]  ;;  %v870_v11 = vld [vmem:[%s6028_s5 + $0xf90] sm:$0xff]  ;;  %v836_v19 = vld [vmem:[%s6028_s5 + $0xe80] sm:$0xff] }
 0x18b   : > { %4803 = vmatprep.subr.mxu1 %v880_v15  ;;  %4766 = vmatpush3.msra.mxu0 %v832_v16  ;;  %v822_v13 = vld [vmem:[%s6028_s5 + $0xe10] sm:$0xff]  ;;  %v837_v15 = vld [vmem:[%s6028_s5 + $0xe88] sm:$0xff] }
 0x18c   : > { %4804 = vmatpush3.msra.mxu1 %v864_v17  ;;  %v1031_v29 = vadd.f32 %v4302_v23, %v4264_v22  ;;  %4767 = vmatprep.subr.mxu0 %v847_v20  ;;  %v854_v14 = vld [vmem:[%s6028_s5 + $0xf10] sm:$0xff]  ;;  %v869_v16 = vld [vmem:[%s6028_s5 + $0xf88] sm:$0xff]  ;;  %v868_v20 = vld [vmem:[%s6028_s5 + $0xf80] sm:$0xff] }
 0x18d   : > { %4805 = vmatprep.subr.mxu1 %v879_v21  ;;  %v4335_v32 = vpop.f32.mrf.mxu0  ;;  %4768 = vmatpush3.msra.mxu0 %v831_v24  ;;  %v821_v17 = vld [vmem:[%s6028_s5 + $0xe08] sm:$0xff]  ;;  %v820_v21 = vld [vmem:[%s6028_s5 + $0xe00] sm:$0xff] }
 0x18e   : > { %4806 = vmatpush3.msra.mxu1 %v863_v25  ;;  %4769 = vmatprep.subr.mxu0 %v846_v26  ;;  %v337_v22 = vld [vmem:[#allocation3 + $0xe8] sm:$0xff]  ;;  %v852_v23 = vld [vmem:[%s6028_s5 + $0xf00] sm:$0xff]  ;;  %v339_v25 = vld [vmem:[#allocation3 + $0xf8] sm:$0xff] }
 0x18f   : > { %4807 = vmatprep.subr.mxu1 %v878_v28  ;;  %v4373_v37 = vpop.f32.mrf.mxu1  ;;  %v4336_v38 = vpop.f32.mrf.mxu0  ;;  %4770 = vmatpush3.msra.mxu0 %v830_v30  ;;  %v336_v24 = vld [vmem:[#allocation3 + $0xe0] sm:$0xff]  ;;  %v2115_v26 = vld [vmem:[%s6034_s6 + $0xf8] sm:$0xff] }
 0x190   : > { %4808 = vmatpush3.msra.mxu1 %v862_v31  ;;  %v4337_v41 = vadd.f32 %v4336_v38, %v4335_v32  ;;  %4771 = vmatprep.subr.mxu0 %v845_v33  ;;  %v2147_v28 = vld [vmem:[%s6034_s6 + $0x1f8] sm:$0xff]  ;;  %v2114_v32 = vld [vmem:[%s6034_s6 + $0xf0] sm:$0xff]  ;;  %v2113_v38 = vld [vmem:[%s6034_s6 + $0xe8] sm:$0xff] }
 0x191   : > { %4809 = vmatprep.subr.mxu1 %v877_v34  ;;  %v4374_v44 = vpop.f32.mrf.mxu1  ;;  %4772 = vmatpush3.msra.mxu0 %v829_v35  ;;  %v2099_v30 = vld [vmem:[%s6034_s6 + $0x78] sm:$0xff]  ;;  %v2146_v33 = vld [vmem:[%s6034_s6 + $0x1f0] sm:$0xff]  ;;  %v369_v34 = vld [vmem:[#allocation3 + $0x1e8] sm:$0xff] }
 0x192   : > { %4810 = vmatpush3.msra.mxu1 %v861_v36  ;;  %v1101_v47 = vadd.f32 %v4337_v41, %v6464_v27  ;;  %v4375_v48 = vadd.f32 %v4374_v44, %v4373_v37  ;;  %4773 = vmatprep.subr.mxu0 %v844_v39  ;;  %v826_v27 = vld [vmem:[%s6028_s5 + $0xe30] sm:$0xff]  ;;  %v2131_v31 = vld [vmem:[%s6034_s6 + $0x178] sm:$0xff]  ;;  %v368_v37 = vld [vmem:[#allocation3 + $0x1e0] sm:$0xff] }
 0x193   : > { %4811 = vmatprep.subr.mxu1 %v876_v40  ;;  %v4338_v51 = vpop.f32.mrf.mxu0  ;;  %4774 = vmatpush3.msra.mxu0 %v828_v42  ;;  %v2098_v35 = vld [vmem:[%s6034_s6 + $0x70] sm:$0xff]  ;;  %v2145_v39 = vld [vmem:[%s6034_s6 + $0x1e8] sm:$0xff]  ;;  %v371_v40 = vld [vmem:[#allocation3 + $0x1f8] sm:$0xff] }
 0x194   : > { %4812 = vmatpush3.msra.mxu1 %v860_v43  ;;  %v6533_v54 = vadd.f32 %v4375_v48, %v1101_v47  ;;  %4775 = vmatprep.subr.mxu0 %v843_v45  ;;  %v2130_v36 = vld [vmem:[%s6034_s6 + $0x170] sm:$0xff]  ;;  %v2097_v41 = vld [vmem:[%s6034_s6 + $0x68] sm:$0xff]  ;;  %v2112_v43 = vld [vmem:[%s6034_s6 + $0xe0] sm:$0xff] }
 0x195   : > { %4813 = vmatprep.subr.mxu1 %v875_v46  ;;  %v4339_v56 = vpop.f32.mrf.mxu0  ;;  %4776 = vmatpush3.msra.mxu0 %v827_v49  ;;  %v2129_v42 = vld [vmem:[%s6034_s6 + $0x168] sm:$0xff]  ;;  %v370_v44 = vld [vmem:[#allocation3 + $0x1f0] sm:$0xff]  ;;  %v2144_v45 = vld [vmem:[%s6034_s6 + $0x1e0] sm:$0xff] }
 0x196   : > { %4814 = vmatpush3.msra.mxu1 %v859_v50  ;;  %v4340_v59 = vadd.f32 %v4339_v56, %v4338_v51  ;;  %4777 = vmatprep.subr.mxu0 %v842_v52  ;;  %v4376_v62 = vpop.f32.mrf.mxu1  ;;  %v2096_v46 = vld [vmem:[%s6034_s6 + $0x60] sm:$0xff]  ;;  %v2111_v48 = vld [vmem:[%s6034_s6 + $0xd8] sm:$0xff]  ;;  %v2110_v52 = vld [vmem:[%s6034_s6 + $0xd0] sm:$0xff] }
 0x197   : > { %4815 = vmatprep.subr.mxu1 %v874_v53  ;;  %4778 = vmatpush3.msra.mxu0 %v826_v27  ;;  %v2128_v47 = vld [vmem:[%s6034_s6 + $0x160] sm:$0xff]  ;;  %v2143_v49 = vld [vmem:[%s6034_s6 + $0x1d8] sm:$0xff]  ;;  %v2142_v53 = vld [vmem:[%s6034_s6 + $0x1d0] sm:$0xff] }
 0x198   : > { %4816 = vmatpush3.msra.mxu1 %v858_v55  ;;  %v1106_v1 = vadd.f32 %v4340_v59, %v1031_v29  ;;  %4779 = vmatprep.subr.mxu0 %v841_v57  ;;  %v4377_v4 = vpop.f32.mrf.mxu1  ;;  %v338_v29 = vld [vmem:[#allocation3 + $0xf0] sm:$0xff]  ;;  %v2095_v50 = vld [vmem:[%s6034_s6 + $0x58] sm:$0xff]  ;;  %v2109_v57 = vld [vmem:[%s6034_s6 + $0xc8] sm:$0xff] }
 0x199   : > { %4817 = vmatprep.subr.mxu1 %v873_v58  ;;  %4780 = vmatpush3.msra.mxu0 %v825_v60  ;;  %v4378_v7 = vadd.f32 %v4377_v4, %v4376_v62  ;;  %v2127_v51 = vld [vmem:[%s6034_s6 + $0x158] sm:$0xff]  ;;  %v2094_v27 = vld [vmem:[%s6034_s6 + $0x50] sm:$0xff]  ;;  %v2141_v58 = vld [vmem:[%s6034_s6 + $0x1c8] sm:$0xff] }
 0x19a   : > { %4818 = vmatpush3.msra.mxu1 %v857_v61  ;;  %4781 = vmatprep.subr.mxu0 %v840_v63  ;;  %v2126_v55 = vld [vmem:[%s6034_s6 + $0x150] sm:$0xff]  ;;  %v2093_v59 = vld [vmem:[%s6034_s6 + $0x48] sm:$0xff]  ;;  %v2108_v63 = vld [vmem:[%s6034_s6 + $0xc0] sm:$0xff] }
 0x19b   : > { %4819 = vmatprep.subr.mxu1 %v872_v0  ;;  %4782 = vmatpush3.msra.mxu0 %v824_v2  ;;  %v6551_v12 = vadd.f32 %v4378_v7, %v1106_v1  ;;  %v2125_v60 = vld [vmem:[%s6034_s6 + $0x148] sm:$0xff]  ;;  %v2140_v0 = vld [vmem:[%s6034_s6 + $0x1c0] sm:$0xff] }
 0x19c   : > { %4820 = vmatpush3.msra.mxu1 %v856_v3  ;;  %4783 = vmatprep.subr.mxu0 %v839_v5  ;;  %v2092_v2 = vld [vmem:[%s6034_s6 + $0x40] sm:$0xff]  ;;  %v2107_v5 = vld [vmem:[%s6034_s6 + $0xb8] sm:$0xff] }
 0x19d   : > { %4821 = vmatprep.subr.mxu1 %v871_v6  ;;  %4784 = vmatpush3.msra.mxu0 %v823_v8  ;;  %v2124_v3 = vld [vmem:[%s6034_s6 + $0x140] sm:$0xff]  ;;  %v2139_v6 = vld [vmem:[%s6034_s6 + $0x1b8] sm:$0xff] }
 0x19e   : > { %4822 = vmatpush3.msra.mxu1 %v855_v9  ;;  %4785 = vmatprep.subr.mxu0 %v838_v10  ;;  %v2091_v9 = vld [vmem:[%s6034_s6 + $0x38] sm:$0xff] }
 0x19f   : > { %4823 = vmatprep.subr.mxu1 %v870_v11  ;;  %4786 = vmatpush3.msra.mxu0 %v822_v13  ;;  %v2123_v10 = vld [vmem:[%s6034_s6 + $0x138] sm:$0xff]  ;;  %v2106_v13 = vld [vmem:[%s6034_s6 + $0xb0] sm:$0xff] }
 0x1a0   : > { %4824 = vmatpush3.msra.mxu1 %v854_v14  ;;  %4787 = vmatprep.subr.mxu0 %v837_v15  ;;  %v2138_v14 = vld [vmem:[%s6034_s6 + $0x1b0] sm:$0xff] }
 0x1a1   : > { %4825 = vmatprep.subr.mxu1 %v869_v16  ;;  %4788 = vmatpush3.msra.mxu0 %v821_v17  ;;  %v2122_v16 = vld [vmem:[%s6034_s6 + $0x130] sm:$0xff] }
 0x1a2   : > { %4826 = vmatpush3.msra.mxu1 %v853_v18  ;;  %4789 = vmatprep.subr.mxu0 %v836_v19  ;;  %v2105_v18 = vld [vmem:[%s6034_s6 + $0xa8] sm:$0xff] }
 0x1a3   : > { %4827 = vmatprep.subr.mxu1 %v868_v20  ;;  %4790 = vmatpush3.msra.mxu0 %v820_v21  ;;  %v2137_v19 = vld [vmem:[%s6034_s6 + $0x1a8] sm:$0xff] }
 0x1a4   : > { %1998 = vmatprep.mubr.f32.mxu0 %v337_v22  ;;  %4828 = vmatpush3.msra.mxu1 %v852_v23  ;;  %v2089_v21 = vld [vmem:[%s6034_s6 + $0x28] sm:$0xff] }
 0x1a5   : > { %1999 = vmatmul.mubr.f32.vlgmr.msra.gmra.mxu0 %v336_v24  ;;  %2073 = vmatprep.mubr.f32.mxu1 %v339_v25  ;;  %v2121_v22 = vld [vmem:[%s6034_s6 + $0x128] sm:$0xff]  ;;  %v2104_v24 = vld [vmem:[%s6034_s6 + $0xa0] sm:$0xff] }
 0x1a6   : > { %4835 = vmatprep.subr.mxu0 %v2115_v26  ;;  %4873 = vmatprep.subr.mxu1 %v2147_v28  ;;  %v2136_v25 = vld [vmem:[%s6034_s6 + $0x1a0] sm:$0xff] }
 0x1a7   : > { %2074 = vmatmul.mubr.f32.vlgmr.msra.gmra.mxu1 %v338_v29  ;;  %4836 = vmatpush3.msra.mxu0 %v2099_v30  ;;  %v2088_v28 = vld [vmem:[%s6034_s6 + $0x20] sm:$0xff] }
 0x1a8   : > { %4874 = vmatpush3.msra.mxu1 %v2131_v31  ;;  %4837 = vmatprep.subr.mxu0 %v2114_v32  ;;  %v2120_v29 = vld [vmem:[%s6034_s6 + $0x120] sm:$0xff]  ;;  %v2103_v31 = vld [vmem:[%s6034_s6 + $0x98] sm:$0xff] }
 0x1a9   : > { %4875 = vmatprep.subr.mxu1 %v2146_v33  ;;  %2003 = vmatprep.mubr.f32.mxu0 %v369_v34  ;;  %v2135_v32 = vld [vmem:[%s6034_s6 + $0x198] sm:$0xff] }
 0x1aa   : > { %4838 = vmatpush3.msra.mxu0 %v2098_v35  ;;  %4876 = vmatpush3.msra.mxu1 %v2130_v36  ;;  %v2087_v34 = vld [vmem:[%s6034_s6 + $0x18] sm:$0xff]  ;;  %v2102_v35 = vld [vmem:[%s6034_s6 + $0x90] sm:$0xff] }
 0x1ab   : > { %2004 = vmatmul.mubr.f32.gmra.mxu0 %v368_v37  ;;  %4839 = vmatprep.subr.mxu0 %v2113_v38  ;;  %v2134_v36 = vld [vmem:[%s6034_s6 + $0x190] sm:$0xff] }
 0x1ac   : > { %4877 = vmatprep.subr.mxu1 %v2145_v39  ;;  %2078 = vmatprep.mubr.f32.mxu1 %v371_v40  ;;  %v2086_v38 = vld [vmem:[%s6034_s6 + $0x10] sm:$0xff]  ;;  %v2101_v40 = vld [vmem:[%s6034_s6 + $0x88] sm:$0xff] }
 0x1ad   : > { %4840 = vmatpush3.msra.mxu0 %v2097_v41  ;;  %4878 = vmatpush3.msra.mxu1 %v2129_v42  ;;  %v2118_v39 = vld [vmem:[%s6034_s6 + $0x110] sm:$0xff]  ;;  %v2133_v41 = vld [vmem:[%s6034_s6 + $0x188] sm:$0xff] }
 0x1ae   : > { %4841 = vmatprep.subr.mxu0 %v2112_v43  ;;  %2079 = vmatmul.mubr.f32.gmra.mxu1 %v370_v44  ;;  %v2085_v42 = vld [vmem:[%s6034_s6 + $0x8] sm:$0xff]  ;;  %v2100_v44 = vld [vmem:[%s6034_s6 + $0x80] sm:$0xff] }
 0x1af   : > { %4879 = vmatprep.subr.mxu1 %v2144_v45  ;;  %4842 = vmatpush3.msra.mxu0 %v2096_v46  ;;  %v2117_v43 = vld [vmem:[%s6034_s6 + $0x108] sm:$0xff]  ;;  %v2132_v45 = vld [vmem:[%s6034_s6 + $0x180] sm:$0xff] }
 0x1b0   : > { %4880 = vmatpush3.msra.mxu1 %v2128_v47  ;;  %4843 = vmatprep.subr.mxu0 %v2111_v48  ;;  %v2084_v46 = vld [vmem:[%s6034_s6] sm:$0xff]  ;;  %v5521_v48 = vld [vmem:[#allocation3 + $0x8] sm:$0xff] }
 0x1b1   : > { %4881 = vmatprep.subr.mxu1 %v2143_v49  ;;  %v4411_v56 = vpop.f32.mrf.mxu0  ;;  %4844 = vmatpush3.msra.mxu0 %v2095_v50  ;;  %v2116_v47 = vld [vmem:[%s6034_s6 + $0x100] sm:$0xff]  ;;  %v2179_v49 = vld [vmem:[%s6034_s6 + $0x2f8] sm:$0xff] }
 0x1b2   : > { %4882 = vmatpush3.msra.mxu1 %v2127_v51  ;;  %4845 = vmatprep.subr.mxu0 %v2110_v52  ;;  %v2211_v50 = vld [vmem:[%s6034_s6 + $0x3f8] sm:$0xff] }
 0x1b3   : > { %4883 = vmatprep.subr.mxu1 %v2142_v53  ;;  %v4449_v61 = vpop.f32.mrf.mxu1  ;;  %v4412_v62 = vpop.f32.mrf.mxu0  ;;  %4846 = vmatpush3.msra.mxu0 %v2094_v27  ;;  %v5522_v51 = vld [vmem:[#allocation3 + $0x18] sm:$0xff]  ;;  %v5523_v27 = vld [vmem:[#allocation3] sm:$0xff] }
 0x1b4   : > { %4884 = vmatpush3.msra.mxu1 %v2126_v55  ;;  %v4413_v1 = vadd.f32 %v4412_v62, %v4411_v56  ;;  %4847 = vmatprep.subr.mxu0 %v2109_v57  ;;  %v2163_v52 = vld [vmem:[%s6034_s6 + $0x278] sm:$0xff]  ;;  %v5524_v55 = vld [vmem:[#allocation3 + $0x10] sm:$0xff]  ;;  %v2161_v62 = vld [vmem:[%s6034_s6 + $0x268] sm:$0xff] }
 0x1b5   : > { %4885 = vmatprep.subr.mxu1 %v2141_v58  ;;  %v4450_v4 = vpop.f32.mrf.mxu1  ;;  %4848 = vmatpush3.msra.mxu0 %v2093_v59  ;;  %v2195_v53 = vld [vmem:[%s6034_s6 + $0x378] sm:$0xff]  ;;  %v2178_v56 = vld [vmem:[%s6034_s6 + $0x2f0] sm:$0xff] }
 0x1b6   : > { %4886 = vmatpush3.msra.mxu1 %v2125_v60  ;;  %v1251_v7 = vadd.f32 %v4413_v1, %v6533_v54  ;;  %v4451_v8 = vadd.f32 %v4450_v4, %v4449_v61  ;;  %4849 = vmatprep.subr.mxu0 %v2108_v63  ;;  %v2090_v54 = vld [vmem:[%s6034_s6 + $0x30] sm:$0xff]  ;;  %v2177_v60 = vld [vmem:[%s6034_s6 + $0x2e8] sm:$0xff]  ;;  %v2208_v1 = vld [vmem:[%s6034_s6 + $0x3e0] sm:$0xff] }
 0x1b7   : > { %4887 = vmatprep.subr.mxu1 %v2140_v0  ;;  %v4414_v11 = vpop.f32.mrf.mxu0  ;;  %4850 = vmatpush3.msra.mxu0 %v2092_v2  ;;  %v2210_v57 = vld [vmem:[%s6034_s6 + $0x3f0] sm:$0xff]  ;;  %v2209_v61 = vld [vmem:[%s6034_s6 + $0x3e8] sm:$0xff]  ;;  %v2176_v0 = vld [vmem:[%s6034_s6 + $0x2e0] sm:$0xff] }
 0x1b8   : > { %4888 = vmatpush3.msra.mxu1 %v2124_v3  ;;  %v6602_v15 = vadd.f32 %v4451_v8, %v1251_v7  ;;  %4851 = vmatprep.subr.mxu0 %v2107_v5  ;;  %v2162_v58 = vld [vmem:[%s6034_s6 + $0x270] sm:$0xff]  ;;  %v2193_v63 = vld [vmem:[%s6034_s6 + $0x368] sm:$0xff]  ;;  %v2160_v2 = vld [vmem:[%s6034_s6 + $0x260] sm:$0xff] }
 0x1b9   : > { %4889 = vmatprep.subr.mxu1 %v2139_v6  ;;  %v4415_v17 = vpop.f32.mrf.mxu0  ;;  %4852 = vmatpush3.msra.mxu0 %v2091_v9  ;;  %v2194_v59 = vld [vmem:[%s6034_s6 + $0x370] sm:$0xff]  ;;  %v2192_v3 = vld [vmem:[%s6034_s6 + $0x360] sm:$0xff]  ;;  %v2175_v4 = vld [vmem:[%s6034_s6 + $0x2d8] sm:$0xff] }
 0x1ba   : > { %4890 = vmatpush3.msra.mxu1 %v2123_v10  ;;  %v4416_v20 = vadd.f32 %v4415_v17, %v4414_v11  ;;  %4853 = vmatprep.subr.mxu0 %v2106_v13  ;;  %v4452_v23 = vpop.f32.mrf.mxu1  ;;  %v2207_v5 = vld [vmem:[%s6034_s6 + $0x3d8] sm:$0xff]  ;;  %v2174_v8 = vld [vmem:[%s6034_s6 + $0x2d0] sm:$0xff]  ;;  %v2173_v13 = vld [vmem:[%s6034_s6 + $0x2c8] sm:$0xff] }
 0x1bb   : > { %4891 = vmatprep.subr.mxu1 %v2138_v14  ;;  %4854 = vmatpush3.msra.mxu0 %v2090_v54  ;;  %v2159_v6 = vld [vmem:[%s6034_s6 + $0x258] sm:$0xff]  ;;  %v2206_v9 = vld [vmem:[%s6034_s6 + $0x3d0] sm:$0xff]  ;;  %v2205_v14 = vld [vmem:[%s6034_s6 + $0x3c8] sm:$0xff] }
 0x1bc   : > { %4892 = vmatpush3.msra.mxu1 %v2122_v16  ;;  %v1256_v26 = vadd.f32 %v4416_v20, %v6551_v12  ;;  %4855 = vmatprep.subr.mxu0 %v2105_v18  ;;  %v4453_v30 = vpop.f32.mrf.mxu1  ;;  %v2119_v12 = vld [vmem:[%s6034_s6 + $0x118] sm:$0xff]  ;;  %v2158_v10 = vld [vmem:[%s6034_s6 + $0x250] sm:$0xff]  ;;  %v2157_v54 = vld [vmem:[%s6034_s6 + $0x248] sm:$0xff] }
 0x1bd   : > { %4893 = vmatprep.subr.mxu1 %v2137_v19  ;;  %4856 = vmatpush3.msra.mxu0 %v2089_v21  ;;  %v4454_v33 = vadd.f32 %v4453_v30, %v4452_v23  ;;  %v2191_v7 = vld [vmem:[%s6034_s6 + $0x358] sm:$0xff]  ;;  %v2190_v11 = vld [vmem:[%s6034_s6 + $0x350] sm:$0xff]  ;;  %v2189_v16 = vld [vmem:[%s6034_s6 + $0x348] sm:$0xff] }
 0x1be   : > { %4894 = vmatpush3.msra.mxu1 %v2121_v22  ;;  %4857 = vmatprep.subr.mxu0 %v2104_v24  ;;  %v2172_v18 = vld [vmem:[%s6034_s6 + $0x2c0] sm:$0xff]  ;;  %v2171_v24 = vld [vmem:[%s6034_s6 + $0x2b8] sm:$0xff] }
 0x1bf   : > { %4895 = vmatprep.subr.mxu1 %v2136_v25  ;;  %4858 = vmatpush3.msra.mxu0 %v2088_v28  ;;  %v6621_v37 = vadd.f32 %v4454_v33, %v1256_v26  ;;  %v2204_v19 = vld [vmem:[%s6034_s6 + $0x3c0] sm:$0xff]  ;;  %v2203_v25 = vld [vmem:[%s6034_s6 + $0x3b8] sm:$0xff] }
 0x1c0   : > { %4896 = vmatpush3.msra.mxu1 %v2120_v29  ;;  %4859 = vmatprep.subr.mxu0 %v2103_v31  ;;  %v2156_v20 = vld [vmem:[%s6034_s6 + $0x240] sm:$0xff]  ;;  %v2155_v28 = vld [vmem:[%s6034_s6 + $0x238] sm:$0xff]  ;;  %v2170_v31 = vld [vmem:[%s6034_s6 + $0x2b0] sm:$0xff] }
 0x1c1   : > { %4897 = vmatprep.subr.mxu1 %v2135_v32  ;;  %4860 = vmatpush3.msra.mxu0 %v2087_v34  ;;  %v2188_v21 = vld [vmem:[%s6034_s6 + $0x340] sm:$0xff]  ;;  %v2187_v29 = vld [vmem:[%s6034_s6 + $0x338] sm:$0xff]  ;;  %v2202_v32 = vld [vmem:[%s6034_s6 + $0x3b0] sm:$0xff] }
 0x1c2   : > { %4898 = vmatpush3.msra.mxu1 %v2119_v12  ;;  %4861 = vmatprep.subr.mxu0 %v2102_v35  ;;  %v2154_v12 = vld [vmem:[%s6034_s6 + $0x230] sm:$0xff] }
 0x1c3   : > { %4899 = vmatprep.subr.mxu1 %v2134_v36  ;;  %4862 = vmatpush3.msra.mxu0 %v2086_v38  ;;  %v2186_v35 = vld [vmem:[%s6034_s6 + $0x330] sm:$0xff]  ;;  %v2169_v38 = vld [vmem:[%s6034_s6 + $0x2a8] sm:$0xff] }
 0x1c4   : > { %4900 = vmatpush3.msra.mxu1 %v2118_v39  ;;  %4863 = vmatprep.subr.mxu0 %v2101_v40  ;;  %v2201_v39 = vld [vmem:[%s6034_s6 + $0x3a8] sm:$0xff] }
 0x1c5   : > { %4901 = vmatprep.subr.mxu1 %v2133_v41  ;;  %4864 = vmatpush3.msra.mxu0 %v2085_v42  ;;  %v2185_v41 = vld [vmem:[%s6034_s6 + $0x328] sm:$0xff] }
 0x1c6   : > { %4902 = vmatpush3.msra.mxu1 %v2117_v43  ;;  %4865 = vmatprep.subr.mxu0 %v2100_v44  ;;  %v2168_v43 = vld [vmem:[%s6034_s6 + $0x2a0] sm:$0xff] }
 0x1c7   : > { %4903 = vmatprep.subr.mxu1 %v2132_v45  ;;  %4866 = vmatpush3.msra.mxu0 %v2084_v46  ;;  %v2200_v44 = vld [vmem:[%s6034_s6 + $0x3a0] sm:$0xff] }
 0x1c8   : > { %2660 = vmatprep.mubr.f32.mxu0 %v5521_v48  ;;  %4904 = vmatpush3.msra.mxu1 %v2116_v47  ;;  %v2152_v46 = vld [vmem:[%s6034_s6 + $0x220] sm:$0xff] }
 0x1c9   : > { %2735 = vmatprep.mubr.f32.mxu1 %v5522_v51  ;;  %2661 = vmatmul.mubr.f32.vlgmr.msra.gmra.mxu0 %v5523_v27  ;;  %v2184_v47 = vld [vmem:[%s6034_s6 + $0x320] sm:$0xff] }
 0x1ca   : > { %2736 = vmatmul.mubr.f32.vlgmr.msra.gmra.mxu1 %v5524_v55  ;;  %4911 = vmatprep.subr.mxu0 %v2179_v49  ;;  %v2167_v49 = vld [vmem:[%s6034_s6 + $0x298] sm:$0xff] }
 0x1cb   : > { %4949 = vmatprep.subr.mxu1 %v2211_v50  ;;  %4912 = vmatpush3.msra.mxu0 %v2163_v52  ;;  %v2199_v50 = vld [vmem:[%s6034_s6 + $0x398] sm:$0xff] }
 0x1cc   : > { %4950 = vmatpush3.msra.mxu1 %v2195_v53  ;;  %4913 = vmatprep.subr.mxu0 %v2178_v56  ;;  %v2151_v52 = vld [vmem:[%s6034_s6 + $0x218] sm:$0xff]  ;;  %v2166_v56 = vld [vmem:[%s6034_s6 + $0x290] sm:$0xff] }
 0x1cd   : > { %4951 = vmatprep.subr.mxu1 %v2210_v57  ;;  %4914 = vmatpush3.msra.mxu0 %v2162_v58  ;;  %v2183_v53 = vld [vmem:[%s6034_s6 + $0x318] sm:$0xff]  ;;  %v2198_v57 = vld [vmem:[%s6034_s6 + $0x390] sm:$0xff]  ;;  %v5525_v58 = vld [vmem:[#allocation3 + $0x108] sm:$0xff] }
 0x1ce   : > { %4952 = vmatpush3.msra.mxu1 %v2194_v59  ;;  %4915 = vmatprep.subr.mxu0 %v2177_v60  ;;  %v5526_v59 = vld [vmem:[#allocation3 + $0x118] sm:$0xff]  ;;  %v2150_v60 = vld [vmem:[%s6034_s6 + $0x210] sm:$0xff] }
 0x1cf   : > { %4953 = vmatprep.subr.mxu1 %v2209_v61  ;;  %4916 = vmatpush3.msra.mxu0 %v2161_v62  ;;  %v2182_v61 = vld [vmem:[%s6034_s6 + $0x310] sm:$0xff]  ;;  %v2165_v62 = vld [vmem:[%s6034_s6 + $0x288] sm:$0xff] }
 0x1d0   : > { %4954 = vmatpush3.msra.mxu1 %v2193_v63  ;;  %4917 = vmatprep.subr.mxu0 %v2176_v0  ;;  %v2197_v63 = vld [vmem:[%s6034_s6 + $0x388] sm:$0xff]  ;;  %v5527_v0 = vld [vmem:[#allocation3 + $0x100] sm:$0xff] }
 0x1d1   : > { %4955 = vmatprep.subr.mxu1 %v2208_v1  ;;  %4918 = vmatpush3.msra.mxu0 %v2160_v2  ;;  %v5528_v1 = vld [vmem:[#allocation3 + $0x110] sm:$0xff]  ;;  %v2149_v2 = vld [vmem:[%s6034_s6 + $0x208] sm:$0xff] }
 0x1d2   : > { %4956 = vmatpush3.msra.mxu1 %v2192_v3  ;;  %4919 = vmatprep.subr.mxu0 %v2175_v4  ;;  %v2181_v3 = vld [vmem:[%s6034_s6 + $0x308] sm:$0xff]  ;;  %v2164_v4 = vld [vmem:[%s6034_s6 + $0x280] sm:$0xff] }
 0x1d3   : > { %4957 = vmatprep.subr.mxu1 %v2207_v5  ;;  %4920 = vmatpush3.msra.mxu0 %v2159_v6  ;;  %v2196_v5 = vld [vmem:[%s6034_s6 + $0x380] sm:$0xff] }
 0x1d4   : > { %4958 = vmatpush3.msra.mxu1 %v2191_v7  ;;  %4921 = vmatprep.subr.mxu0 %v2174_v8  ;;  %v2148_v6 = vld [vmem:[%s6034_s6 + $0x200] sm:$0xff]  ;;  %v2243_v8 = vld [vmem:[%s6034_s6 + $0x4f8] sm:$0xff] }
 0x1d5   : > { %4959 = vmatprep.subr.mxu1 %v2206_v9  ;;  %v4487_v17 = vpop.f32.mrf.mxu0  ;;  %4922 = vmatpush3.msra.mxu0 %v2158_v10  ;;  %v2180_v7 = vld [vmem:[%s6034_s6 + $0x300] sm:$0xff]  ;;  %v5529_v9 = vld [vmem:[#allocation3 + $0x28] sm:$0xff]  ;;  %v2275_v10 = vld [vmem:[%s6034_s6 + $0x5f8] sm:$0xff] }
 0x1d6   : > { %4960 = vmatpush3.msra.mxu1 %v2190_v11  ;;  %4923 = vmatprep.subr.mxu0 %v2173_v13  ;;  %v5530_v11 = vld [vmem:[#allocation3 + $0x20] sm:$0xff]  ;;  %v2227_v13 = vld [vmem:[%s6034_s6 + $0x478] sm:$0xff] }
 0x1d7   : > { %4961 = vmatprep.subr.mxu1 %v2205_v14  ;;  %v4525_v22 = vpop.f32.mrf.mxu1  ;;  %v4488_v23 = vpop.f32.mrf.mxu0  ;;  %4924 = vmatpush3.msra.mxu0 %v2157_v54  ;;  %v2259_v14 = vld [vmem:[%s6034_s6 + $0x578] sm:$0xff] }
 0x1d8   : > { %4962 = vmatpush3.msra.mxu1 %v2189_v16  ;;  %v4489_v26 = vadd.f32 %v4488_v23, %v4487_v17  ;;  %4925 = vmatprep.subr.mxu0 %v2172_v18  ;;  %v5531_v54 = vld [vmem:[#allocation3 + $0x38] sm:$0xff]  ;;  %v2242_v16 = vld [vmem:[%s6034_s6 + $0x4f0] sm:$0xff]  ;;  %v5533_v23 = vld [vmem:[#allocation3 + $0x128] sm:$0xff] }
 0x1d9   : > { %4963 = vmatprep.subr.mxu1 %v2204_v19  ;;  %v4526_v30 = vpop.f32.mrf.mxu1  ;;  %4926 = vmatpush3.msra.mxu0 %v2156_v20  ;;  %v2274_v17 = vld [vmem:[%s6034_s6 + $0x5f0] sm:$0xff] }
 0x1da   : > { %4964 = vmatpush3.msra.mxu1 %v2188_v21  ;;  %v1401_v33 = vadd.f32 %v4489_v26, %v6602_v15  ;;  %v4527_v34 = vadd.f32 %v4526_v30, %v4525_v22  ;;  %4927 = vmatprep.subr.mxu0 %v2171_v24  ;;  %v2153_v15 = vld [vmem:[%s6034_s6 + $0x228] sm:$0xff]  ;;  %v5532_v18 = vld [vmem:[#allocation3 + $0x30] sm:$0xff]  ;;  %v5535_v30 = vld [vmem:[#allocation3 + $0x138] sm:$0xff] }
 0x1db   : > { %4965 = vmatprep.subr.mxu1 %v2203_v25  ;;  %v4490_v36 = vpop.f32.mrf.mxu0  ;;  %4928 = vmatpush3.msra.mxu0 %v2155_v28  ;;  %v2226_v19 = vld [vmem:[%s6034_s6 + $0x470] sm:$0xff]  ;;  %v2241_v21 = vld [vmem:[%s6034_s6 + $0x4e8] sm:$0xff]  ;;  %v5534_v25 = vld [vmem:[#allocation3 + $0x120] sm:$0xff] }
 0x1dc   : > { %4966 = vmatpush3.msra.mxu1 %v2187_v29  ;;  %v6676_v40 = vadd.f32 %v4527_v34, %v1401_v33  ;;  %4929 = vmatprep.subr.mxu0 %v2170_v31  ;;  %v2258_v20 = vld [vmem:[%s6034_s6 + $0x570] sm:$0xff]  ;;  %v2273_v22 = vld [vmem:[%s6034_s6 + $0x5e8] sm:$0xff]  ;;  %v2240_v28 = vld [vmem:[%s6034_s6 + $0x4e0] sm:$0xff] }
 0x1dd   : > { %4967 = vmatprep.subr.mxu1 %v2202_v32  ;;  %v4491_v42 = vpop.f32.mrf.mxu0  ;;  %4930 = vmatpush3.msra.mxu0 %v2154_v12  ;;  %v2225_v24 = vld [vmem:[%s6034_s6 + $0x468] sm:$0xff]  ;;  %v2272_v29 = vld [vmem:[%s6034_s6 + $0x5e0] sm:$0xff]  ;;  %v2239_v33 = vld [vmem:[%s6034_s6 + $0x4d8] sm:$0xff] }
 0x1de   : > { %4968 = vmatpush3.msra.mxu1 %v2186_v35  ;;  %v4492_v45 = vadd.f32 %v4491_v42, %v4490_v36  ;;  %4931 = vmatprep.subr.mxu0 %v2169_v38  ;;  %v4528_v48 = vpop.f32.mrf.mxu1  ;;  %v2257_v26 = vld [vmem:[%s6034_s6 + $0x568] sm:$0xff]  ;;  %v2224_v31 = vld [vmem:[%s6034_s6 + $0x460] sm:$0xff]  ;;  %v2271_v34 = vld [vmem:[%s6034_s6 + $0x5d8] sm:$0xff] }
 0x1df   : > { %4969 = vmatprep.subr.mxu1 %v2201_v39  ;;  %4932 = vmatpush3.msra.mxu0 %v2153_v15  ;;  %v2256_v32 = vld [vmem:[%s6034_s6 + $0x560] sm:$0xff]  ;;  %v5536_v12 = vld [vmem:[#allocation3 + $0x130] sm:$0xff]  ;;  %v2223_v35 = vld [vmem:[%s6034_s6 + $0x458] sm:$0xff] }
 0x1e0   : > { %4970 = vmatpush3.msra.mxu1 %v2185_v41  ;;  %v1406_v51 = vadd.f32 %v4492_v45, %v6621_v37  ;;  %4933 = vmatprep.subr.mxu0 %v2168_v43  ;;  %v4529_v27 = vpop.f32.mrf.mxu1  ;;  %v2255_v36 = vld [vmem:[%s6034_s6 + $0x558] sm:$0xff]  ;;  %v2238_v38 = vld [vmem:[%s6034_s6 + $0x4d0] sm:$0xff]  ;;  %v2237_v43 = vld [vmem:[%s6034_s6 + $0x4c8] sm:$0xff] }
 0x1e1   : > { %4971 = vmatprep.subr.mxu1 %v2200_v44  ;;  %4934 = vmatpush3.msra.mxu0 %v2152_v46  ;;  %v4530_v55 = vadd.f32 %v4529_v27, %v4528_v48  ;;  %v2270_v39 = vld [vmem:[%s6034_s6 + $0x5d0] sm:$0xff]  ;;  %v2269_v44 = vld [vmem:[%s6034_s6 + $0x5c8] sm:$0xff] }
 0x1e2   : > { %4972 = vmatpush3.msra.mxu1 %v2184_v47  ;;  %4935 = vmatprep.subr.mxu0 %v2167_v49  ;;  %v2222_v15 = vld [vmem:[%s6034_s6 + $0x450] sm:$0xff]  ;;  %v2221_v45 = vld [vmem:[%s6034_s6 + $0x448] sm:$0xff]  ;;  %v2236_v49 = vld [vmem:[%s6034_s6 + $0x4c0] sm:$0xff] }
 0x1e3   : > { %4973 = vmatprep.subr.mxu1 %v2199_v50  ;;  %4936 = vmatpush3.msra.mxu0 %v2151_v52  ;;  %v6691_v37 = vadd.f32 %v4530_v55, %v1406_v51  ;;  %v2254_v41 = vld [vmem:[%s6034_s6 + $0x550] sm:$0xff]  ;;  %v2253_v46 = vld [vmem:[%s6034_s6 + $0x548] sm:$0xff]  ;;  %v2268_v50 = vld [vmem:[%s6034_s6 + $0x5c0] sm:$0xff] }
 0x1e4   : > { %4974 = vmatpush3.msra.mxu1 %v2183_v53  ;;  %2665 = vmatprep.mubr.f32.mxu0 %v5525_v58  ;;  %v2220_v52 = vld [vmem:[%s6034_s6 + $0x440] sm:$0xff]  ;;  %v2235_v55 = vld [vmem:[%s6034_s6 + $0x4b8] sm:$0xff] }
 0x1e5   : > { %2740 = vmatprep.mubr.f32.mxu1 %v5526_v59  ;;  %4937 = vmatprep.subr.mxu0 %v2166_v56  ;;  %v2252_v53 = vld [vmem:[%s6034_s6 + $0x540] sm:$0xff]  ;;  %v2267_v56 = vld [vmem:[%s6034_s6 + $0x5b8] sm:$0xff] }
 0x1e6   : > { %4975 = vmatprep.subr.mxu1 %v2198_v57  ;;  %2666 = vmatmul.mubr.f32.gmra.mxu0 %v5527_v0  ;;  %v2219_v59 = vld [vmem:[%s6034_s6 + $0x438] sm:$0xff] }
 0x1e7   : > { %2741 = vmatmul.mubr.f32.gmra.mxu1 %v5528_v1  ;;  %4938 = vmatpush3.msra.mxu0 %v2150_v60  ;;  %v2251_v60 = vld [vmem:[%s6034_s6 + $0x538] sm:$0xff]  ;;  %v2250_v1 = vld [vmem:[%s6034_s6 + $0x530] sm:$0xff] }
 0x1e8   : > { %4976 = vmatpush3.msra.mxu1 %v2182_v61  ;;  %4939 = vmatprep.subr.mxu0 %v2165_v62  ;;  %v2234_v62 = vld [vmem:[%s6034_s6 + $0x4b0] sm:$0xff] }
 0x1e9   : > { %4977 = vmatprep.subr.mxu1 %v2197_v63  ;;  %4940 = vmatpush3.msra.mxu0 %v2149_v2  ;;  %v2266_v63 = vld [vmem:[%s6034_s6 + $0x5b0] sm:$0xff] }
 0x1ea   : > { %4978 = vmatpush3.msra.mxu1 %v2181_v3  ;;  %4941 = vmatprep.subr.mxu0 %v2164_v4  ;;  %v2233_v3 = vld [vmem:[%s6034_s6 + $0x4a8] sm:$0xff] }
 0x1eb   : > { %4979 = vmatprep.subr.mxu1 %v2196_v5  ;;  %4942 = vmatpush3.msra.mxu0 %v2148_v6  ;;  %v2265_v4 = vld [vmem:[%s6034_s6 + $0x5a8] sm:$0xff] }
 0x1ec   : > { %2810 = vmatprep.mubr.f32.mxu0 %v5529_v9  ;;  %4980 = vmatpush3.msra.mxu1 %v2180_v7  ;;  %v2217_v6 = vld [vmem:[%s6034_s6 + $0x428] sm:$0xff]  ;;  %v2232_v9 = vld [vmem:[%s6034_s6 + $0x4a0] sm:$0xff] }
 0x1ed   : > { %2811 = vmatmul.mubr.f32.vlgmr.msra.gmra.mxu0 %v5530_v11  ;;  %2885 = vmatprep.mubr.f32.mxu1 %v5531_v54  ;;  %v2249_v7 = vld [vmem:[%s6034_s6 + $0x528] sm:$0xff] }
 0x1ee   : > { %4987 = vmatprep.subr.mxu0 %v2243_v8  ;;  %5025 = vmatprep.subr.mxu1 %v2275_v10  ;;  %v2264_v10 = vld [vmem:[%s6034_s6 + $0x5a0] sm:$0xff] }
 0x1ef   : > { %2886 = vmatmul.mubr.f32.vlgmr.msra.gmra.mxu1 %v5532_v18  ;;  %4988 = vmatpush3.msra.mxu0 %v2227_v13  ;;  %v2216_v13 = vld [vmem:[%s6034_s6 + $0x420] sm:$0xff] }
 0x1f0   : > { %5026 = vmatpush3.msra.mxu1 %v2259_v14  ;;  %4989 = vmatprep.subr.mxu0 %v2242_v16  ;;  %v2248_v14 = vld [vmem:[%s6034_s6 + $0x520] sm:$0xff]  ;;  %v2231_v16 = vld [vmem:[%s6034_s6 + $0x498] sm:$0xff] }
 0x1f1   : > { %5027 = vmatprep.subr.mxu1 %v2274_v17  ;;  %2815 = vmatprep.mubr.f32.mxu0 %v5533_v23  ;;  %v2263_v17 = vld [vmem:[%s6034_s6 + $0x598] sm:$0xff]  ;;  %v2214_v23 = vld [vmem:[%s6034_s6 + $0x410] sm:$0xff] }
 0x1f2   : > { %4990 = vmatpush3.msra.mxu0 %v2226_v19  ;;  %5028 = vmatpush3.msra.mxu1 %v2258_v20  ;;  %v2215_v19 = vld [vmem:[%s6034_s6 + $0x418] sm:$0xff]  ;;  %v2230_v20 = vld [vmem:[%s6034_s6 + $0x490] sm:$0xff] }
 0x1f3   : > { %2816 = vmatmul.mubr.f32.gmra.mxu0 %v5534_v25  ;;  %4991 = vmatprep.subr.mxu0 %v2241_v21  ;;  %v2262_v21 = vld [vmem:[%s6034_s6 + $0x590] sm:$0xff]  ;;  %v2229_v25 = vld [vmem:[%s6034_s6 + $0x488] sm:$0xff] }
 0x1f4   : > { %5029 = vmatprep.subr.mxu1 %v2273_v22  ;;  %2890 = vmatprep.mubr.f32.mxu1 %v5535_v30  ;;  %v2228_v30 = vld [vmem:[%s6034_s6 + $0x480] sm:$0xff] }
 0x1f5   : > { %4992 = vmatpush3.msra.mxu0 %v2225_v24  ;;  %5030 = vmatpush3.msra.mxu1 %v2257_v26  ;;  %v2246_v24 = vld [vmem:[%s6034_s6 + $0x510] sm:$0xff]  ;;  %v2261_v26 = vld [vmem:[%s6034_s6 + $0x588] sm:$0xff] }
 0x1f6   : > { %4993 = vmatprep.subr.mxu0 %v2240_v28  ;;  %2891 = vmatmul.mubr.f32.gmra.mxu1 %v5536_v12  ;;  %v2213_v28 = vld [vmem:[%s6034_s6 + $0x408] sm:$0xff] }
 0x1f7   : > { %5031 = vmatprep.subr.mxu1 %v2272_v29  ;;  %4994 = vmatpush3.msra.mxu0 %v2224_v31  ;;  %v2245_v29 = vld [vmem:[%s6034_s6 + $0x508] sm:$0xff]  ;;  %v2260_v31 = vld [vmem:[%s6034_s6 + $0x580] sm:$0xff] }
 0x1f8   : > { %5032 = vmatpush3.msra.mxu1 %v2256_v32  ;;  %4995 = vmatprep.subr.mxu0 %v2239_v33  ;;  %v2212_v32 = vld [vmem:[%s6034_s6 + $0x400] sm:$0xff]  ;;  %v5537_v12 = vld [vmem:[#allocation3 + $0x48] sm:$0xff] }
 0x1f9   : > { %5033 = vmatprep.subr.mxu1 %v2271_v34  ;;  %v4563_v42 = vpop.f32.mrf.mxu0  ;;  %4996 = vmatpush3.msra.mxu0 %v2223_v35  ;;  %v2244_v33 = vld [vmem:[%s6034_s6 + $0x500] sm:$0xff]  ;;  %v2307_v34 = vld [vmem:[%s6034_s6 + $0x6f8] sm:$0xff] }
 0x1fa   : > { %5034 = vmatpush3.msra.mxu1 %v2255_v36  ;;  %4997 = vmatprep.subr.mxu0 %v2238_v38  ;;  %v2339_v35 = vld [vmem:[%s6034_s6 + $0x7f8] sm:$0xff]  ;;  %v5538_v36 = vld [vmem:[#allocation3 + $0x40] sm:$0xff] }
 0x1fb   : > { %5035 = vmatprep.subr.mxu1 %v2270_v39  ;;  %v4601_v47 = vpop.f32.mrf.mxu1  ;;  %v4564_v48 = vpop.f32.mrf.mxu0  ;;  %4998 = vmatpush3.msra.mxu0 %v2222_v15  ;;  %v2291_v38 = vld [vmem:[%s6034_s6 + $0x678] sm:$0xff] }
 0x1fc   : > { %5036 = vmatpush3.msra.mxu1 %v2254_v41  ;;  %v4565_v51 = vadd.f32 %v4564_v48, %v4563_v42  ;;  %4999 = vmatprep.subr.mxu0 %v2237_v43  ;;  %v2323_v39 = vld [vmem:[%s6034_s6 + $0x778] sm:$0xff]  ;;  %v2306_v41 = vld [vmem:[%s6034_s6 + $0x6f0] sm:$0xff]  ;;  %v5541_v48 = vld [vmem:[#allocation3 + $0x148] sm:$0xff] }
 0x1fd   : > { %5037 = vmatprep.subr.mxu1 %v2269_v44  ;;  %v4602_v27 = vpop.f32.mrf.mxu1  ;;  %5000 = vmatpush3.msra.mxu0 %v2221_v45  ;;  %v5539_v15 = vld [vmem:[#allocation3 + $0x58] sm:$0xff]  ;;  %v2338_v42 = vld [vmem:[%s6034_s6 + $0x7f0] sm:$0xff] }
 0x1fe   : > { %5038 = vmatpush3.msra.mxu1 %v2253_v46  ;;  %v1551_v57 = vadd.f32 %v4565_v51, %v6676_v40  ;;  %v4603_v58 = vadd.f32 %v4602_v27, %v4601_v47  ;;  %5001 = vmatprep.subr.mxu0 %v2236_v49  ;;  %v2218_v40 = vld [vmem:[%s6034_s6 + $0x430] sm:$0xff]  ;;  %v2305_v46 = vld [vmem:[%s6034_s6 + $0x6e8] sm:$0xff]  ;;  %v5543_v27 = vld [vmem:[#allocation3 + $0x158] sm:$0xff] }
 0x1ff   : > { %5039 = vmatprep.subr.mxu1 %v2268_v50  ;;  %v4566_v61 = vpop.f32.mrf.mxu0  ;;  %5002 = vmatpush3.msra.mxu0 %v2220_v52  ;;  %v5540_v43 = vld [vmem:[#allocation3 + $0x50] sm:$0xff]  ;;  %v2337_v47 = vld [vmem:[%s6034_s6 + $0x7e8] sm:$0xff]  ;;  %v5542_v50 = vld [vmem:[#allocation3 + $0x140] sm:$0xff] }
 0x200   : > { %5040 = vmatpush3.msra.mxu1 %v2252_v53  ;;  %v6742_v0 = vadd.f32 %v4603_v58, %v1551_v57  ;;  %5003 = vmatprep.subr.mxu0 %v2235_v55  ;;  %v2290_v44 = vld [vmem:[%s6034_s6 + $0x670] sm:$0xff]  ;;  %v2289_v49 = vld [vmem:[%s6034_s6 + $0x668] sm:$0xff]  ;;  %v2304_v52 = vld [vmem:[%s6034_s6 + $0x6e0] sm:$0xff] }
 0x201   : > { %5041 = vmatprep.subr.mxu1 %v2267_v56  ;;  %v4567_v2 = vpop.f32.mrf.mxu0  ;;  %5004 = vmatpush3.msra.mxu0 %v2219_v59  ;;  %v2322_v45 = vld [vmem:[%s6034_s6 + $0x770] sm:$0xff]  ;;  %v2321_v51 = vld [vmem:[%s6034_s6 + $0x768] sm:$0xff]  ;;  %v2336_v53 = vld [vmem:[%s6034_s6 + $0x7e0] sm:$0xff] }
 0x202   : > { %5042 = vmatpush3.msra.mxu1 %v2251_v60  ;;  %v4568_v5 = vadd.f32 %v4567_v2, %v4566_v61  ;;  %5005 = vmatprep.subr.mxu0 %v2234_v62  ;;  %v4604_v8 = vpop.f32.mrf.mxu1  ;;  %v2288_v55 = vld [vmem:[%s6034_s6 + $0x660] sm:$0xff]  ;;  %v2303_v57 = vld [vmem:[%s6034_s6 + $0x6d8] sm:$0xff]  ;;  %v5544_v59 = vld [vmem:[#allocation3 + $0x150] sm:$0xff] }
 0x203   : > { %5043 = vmatprep.subr.mxu1 %v2266_v63  ;;  %5006 = vmatpush3.msra.mxu0 %v2218_v40  ;;  %v2320_v56 = vld [vmem:[%s6034_s6 + $0x760] sm:$0xff]  ;;  %v2335_v58 = vld [vmem:[%s6034_s6 + $0x7d8] sm:$0xff]  ;;  %v2302_v62 = vld [vmem:[%s6034_s6 + $0x6d0] sm:$0xff] }
 0x204   : > { %5044 = vmatpush3.msra.mxu1 %v2250_v1  ;;  %v1556_v11 = vadd.f32 %v4568_v5, %v6691_v37  ;;  %5007 = vmatprep.subr.mxu0 %v2233_v3  ;;  %v4605_v54 = vpop.f32.mrf.mxu1  ;;  %v2247_v37 = vld [vmem:[%s6034_s6 + $0x518] sm:$0xff]  ;;  %v2334_v63 = vld [vmem:[%s6034_s6 + $0x7d0] sm:$0xff]  ;;  %v2301_v3 = vld [vmem:[%s6034_s6 + $0x6c8] sm:$0xff] }
 0x205   : > { %5045 = vmatprep.subr.mxu1 %v2265_v4  ;;  %5008 = vmatpush3.msra.mxu0 %v2217_v6  ;;  %v4606_v18 = vadd.f32 %v4605_v54, %v4604_v8  ;;  %v2287_v60 = vld [vmem:[%s6034_s6 + $0x658] sm:$0xff]  ;;  %v2286_v40 = vld [vmem:[%s6034_s6 + $0x650] sm:$0xff]  ;;  %v2333_v4 = vld [vmem:[%s6034_s6 + $0x7c8] sm:$0xff] }
 0x206   : > { %5046 = vmatpush3.msra.mxu1 %v2249_v7  ;;  %5009 = vmatprep.subr.mxu0 %v2232_v9  ;;  %v2319_v61 = vld [vmem:[%s6034_s6 + $0x758] sm:$0xff]  ;;  %v2318_v1 = vld [vmem:[%s6034_s6 + $0x750] sm:$0xff]  ;;  %v2285_v5 = vld [vmem:[%s6034_s6 + $0x648] sm:$0xff] }
 0x207   : > { %5047 = vmatprep.subr.mxu1 %v2264_v10  ;;  %5010 = vmatpush3.msra.mxu0 %v2216_v13  ;;  %v6761_v22 = vadd.f32 %v4606_v18, %v1556_v11  ;;  %v2317_v6 = vld [vmem:[%s6034_s6 + $0x748] sm:$0xff]  ;;  %v2300_v9 = vld [vmem:[%s6034_s6 + $0x6c0] sm:$0xff] }
 0x208   : > { %5048 = vmatpush3.msra.mxu1 %v2248_v14  ;;  %5011 = vmatprep.subr.mxu0 %v2231_v16  ;;  %v2332_v10 = vld [vmem:[%s6034_s6 + $0x7c0] sm:$0xff]  ;;  %v2299_v16 = vld [vmem:[%s6034_s6 + $0x6b8] sm:$0xff] }
 0x209   : > { %5049 = vmatprep.subr.mxu1 %v2263_v17  ;;  %5012 = vmatpush3.msra.mxu0 %v2215_v19  ;;  %v2284_v13 = vld [vmem:[%s6034_s6 + $0x640] sm:$0xff]  ;;  %v2331_v17 = vld [vmem:[%s6034_s6 + $0x7b8] sm:$0xff] }
 0x20a   : > { %5050 = vmatpush3.msra.mxu1 %v2247_v37  ;;  %5013 = vmatprep.subr.mxu0 %v2230_v20  ;;  %v2316_v14 = vld [vmem:[%s6034_s6 + $0x740] sm:$0xff]  ;;  %v2283_v37 = vld [vmem:[%s6034_s6 + $0x638] sm:$0xff] }
 0x20b   : > { %5051 = vmatprep.subr.mxu1 %v2262_v21  ;;  %5014 = vmatpush3.msra.mxu0 %v2214_v23  ;;  %v2315_v20 = vld [vmem:[%s6034_s6 + $0x738] sm:$0xff]  ;;  %v2298_v23 = vld [vmem:[%s6034_s6 + $0x6b0] sm:$0xff] }
 0x20c   : > { %5052 = vmatpush3.msra.mxu1 %v2246_v24  ;;  %5015 = vmatprep.subr.mxu0 %v2229_v25  ;;  %v2330_v24 = vld [vmem:[%s6034_s6 + $0x7b0] sm:$0xff] }
 0x20d   : > { %5053 = vmatprep.subr.mxu1 %v2261_v26  ;;  %5016 = vmatpush3.msra.mxu0 %v2213_v28  ;;  %v2314_v26 = vld [vmem:[%s6034_s6 + $0x730] sm:$0xff] }
 0x20e   : > { %5054 = vmatpush3.msra.mxu1 %v2245_v29  ;;  %5017 = vmatprep.subr.mxu0 %v2228_v30  ;;  %v2297_v29 = vld [vmem:[%s6034_s6 + $0x6a8] sm:$0xff] }
 0x20f   : > { %5055 = vmatprep.subr.mxu1 %v2260_v31  ;;  %5018 = vmatpush3.msra.mxu0 %v2212_v32  ;;  %v2329_v30 = vld [vmem:[%s6034_s6 + $0x7a8] sm:$0xff] }
 0x210   : > { %2960 = vmatprep.mubr.f32.mxu0 %v5537_v12  ;;  %5056 = vmatpush3.msra.mxu1 %v2244_v33  ;;  %v2281_v32 = vld [vmem:[%s6034_s6 + $0x628] sm:$0xff]  ;;  %v2296_v12 = vld [vmem:[%s6034_s6 + $0x6a0] sm:$0xff] }
 0x211   : > { %2961 = vmatmul.mubr.f32.vlgmr.msra.gmra.mxu0 %v5538_v36  ;;  %3035 = vmatprep.mubr.f32.mxu1 %v5539_v15  ;;  %v2313_v33 = vld [vmem:[%s6034_s6 + $0x728] sm:$0xff] }
 0x212   : > { %5063 = vmatprep.subr.mxu0 %v2307_v34  ;;  %5101 = vmatprep.subr.mxu1 %v2339_v35  ;;  %v2328_v35 = vld [vmem:[%s6034_s6 + $0x7a0] sm:$0xff] }
 0x213   : > { %3036 = vmatmul.mubr.f32.vlgmr.msra.gmra.mxu1 %v5540_v43  ;;  %5064 = vmatpush3.msra.mxu0 %v2291_v38  ;;  %v2280_v38 = vld [vmem:[%s6034_s6 + $0x620] sm:$0xff] }
 0x214   : > { %5102 = vmatpush3.msra.mxu1 %v2323_v39  ;;  %5065 = vmatprep.subr.mxu0 %v2306_v41  ;;  %v2312_v39 = vld [vmem:[%s6034_s6 + $0x720] sm:$0xff]  ;;  %v2295_v41 = vld [vmem:[%s6034_s6 + $0x698] sm:$0xff] }
 0x215   : > { %5103 = vmatprep.subr.mxu1 %v2338_v42  ;;  %2965 = vmatprep.mubr.f32.mxu0 %v5541_v48  ;;  %v2327_v42 = vld [vmem:[%s6034_s6 + $0x798] sm:$0xff]  ;;  %v2278_v48 = vld [vmem:[%s6034_s6 + $0x610] sm:$0xff] }
 0x216   : > { %5066 = vmatpush3.msra.mxu0 %v2290_v44  ;;  %5104 = vmatpush3.msra.mxu1 %v2322_v45  ;;  %v2279_v44 = vld [vmem:[%s6034_s6 + $0x618] sm:$0xff]  ;;  %v2294_v45 = vld [vmem:[%s6034_s6 + $0x690] sm:$0xff] }
 0x217   : > { %2966 = vmatmul.mubr.f32.gmra.mxu0 %v5542_v50  ;;  %5067 = vmatprep.subr.mxu0 %v2305_v46  ;;  %v2326_v46 = vld [vmem:[%s6034_s6 + $0x790] sm:$0xff]  ;;  %v2293_v50 = vld [vmem:[%s6034_s6 + $0x688] sm:$0xff] }
 0x218   : > { %5105 = vmatprep.subr.mxu1 %v2337_v47  ;;  %3040 = vmatprep.mubr.f32.mxu1 %v5543_v27  ;;  %v2292_v27 = vld [vmem:[%s6034_s6 + $0x680] sm:$0xff] }
 0x219   : > { %5068 = vmatpush3.msra.mxu0 %v2289_v49  ;;  %5106 = vmatpush3.msra.mxu1 %v2321_v51  ;;  %v2310_v49 = vld [vmem:[%s6034_s6 + $0x710] sm:$0xff]  ;;  %v2325_v51 = vld [vmem:[%s6034_s6 + $0x788] sm:$0xff] }
 0x21a   : > { %5069 = vmatprep.subr.mxu0 %v2304_v52  ;;  %3041 = vmatmul.mubr.f32.gmra.mxu1 %v5544_v59  ;;  %v2277_v52 = vld [vmem:[%s6034_s6 + $0x608] sm:$0xff] }
 0x21b   : > { %5107 = vmatprep.subr.mxu1 %v2336_v53  ;;  %5070 = vmatpush3.msra.mxu0 %v2288_v55  ;;  %v2309_v53 = vld [vmem:[%s6034_s6 + $0x708] sm:$0xff]  ;;  %v2324_v55 = vld [vmem:[%s6034_s6 + $0x780] sm:$0xff] }
 0x21c   : > { %5108 = vmatpush3.msra.mxu1 %v2320_v56  ;;  %5071 = vmatprep.subr.mxu0 %v2303_v57  ;;  %v2276_v56 = vld [vmem:[%s6034_s6 + $0x600] sm:$0xff]  ;;  %v5545_v59 = vld [vmem:[#allocation3 + $0x68] sm:$0xff] }
 0x21d   : > { %5109 = vmatprep.subr.mxu1 %v2335_v58  ;;  %v4639_v2 = vpop.f32.mrf.mxu0  ;;  %5072 = vmatpush3.msra.mxu0 %v2287_v60  ;;  %v2308_v57 = vld [vmem:[%s6034_s6 + $0x700] sm:$0xff]  ;;  %v2371_v58 = vld [vmem:[%s6034_s6 + $0x8f8] sm:$0xff] }
 0x21e   : > { %5110 = vmatpush3.msra.mxu1 %v2319_v61  ;;  %5073 = vmatprep.subr.mxu0 %v2302_v62  ;;  %v2403_v60 = vld [vmem:[%s6034_s6 + $0x9f8] sm:$0xff]  ;;  %v5546_v61 = vld [vmem:[#allocation3 + $0x60] sm:$0xff] }
 0x21f   : > { %5111 = vmatprep.subr.mxu1 %v2334_v63  ;;  %v4677_v7 = vpop.f32.mrf.mxu1  ;;  %v4640_v8 = vpop.f32.mrf.mxu0  ;;  %5074 = vmatpush3.msra.mxu0 %v2286_v40  ;;  %v2355_v62 = vld [vmem:[%s6034_s6 + $0x878] sm:$0xff] }
 0x220   : > { %5112 = vmatpush3.msra.mxu1 %v2318_v1  ;;  %v4641_v11 = vadd.f32 %v4640_v8, %v4639_v2  ;;  %5075 = vmatprep.subr.mxu0 %v2301_v3  ;;  %v2387_v63 = vld [vmem:[%s6034_s6 + $0x978] sm:$0xff]  ;;  %v2370_v1 = vld [vmem:[%s6034_s6 + $0x8f0] sm:$0xff]  ;;  %v5549_v8 = vld [vmem:[#allocation3 + $0x168] sm:$0xff] }
 0x221   : > { %5113 = vmatprep.subr.mxu1 %v2333_v4  ;;  %v4678_v54 = vpop.f32.mrf.mxu1  ;;  %5076 = vmatpush3.msra.mxu0 %v2285_v5  ;;  %v5547_v40 = vld [vmem:[#allocation3 + $0x78] sm:$0xff]  ;;  %v2402_v2 = vld [vmem:[%s6034_s6 + $0x9f0] sm:$0xff] }
 0x222   : > { %5114 = vmatpush3.msra.mxu1 %v2317_v6  ;;  %v1701_v18 = vadd.f32 %v4641_v11, %v6742_v0  ;;  %v4679_v19 = vadd.f32 %v4678_v54, %v4677_v7  ;;  %5077 = vmatprep.subr.mxu0 %v2300_v9  ;;  %v2282_v0 = vld [vmem:[%s6034_s6 + $0x630] sm:$0xff]  ;;  %v2369_v6 = vld [vmem:[%s6034_s6 + $0x8e8] sm:$0xff]  ;;  %v5551_v54 = vld [vmem:[#allocation3 + $0x178] sm:$0xff] }
 0x223   : > { %5115 = vmatprep.subr.mxu1 %v2332_v10  ;;  %v4642_v21 = vpop.f32.mrf.mxu0  ;;  %5078 = vmatpush3.msra.mxu0 %v2284_v13  ;;  %v5548_v3 = vld [vmem:[#allocation3 + $0x70] sm:$0xff]  ;;  %v2401_v7 = vld [vmem:[%s6034_s6 + $0x9e8] sm:$0xff]  ;;  %v5550_v10 = vld [vmem:[#allocation3 + $0x160] sm:$0xff] }
 0x224   : > { %5116 = vmatpush3.msra.mxu1 %v2316_v14  ;;  %v6812_v25 = vadd.f32 %v4679_v19, %v1701_v18  ;;  %5079 = vmatprep.subr.mxu0 %v2299_v16  ;;  %v2354_v4 = vld [vmem:[%s6034_s6 + $0x870] sm:$0xff]  ;;  %v2353_v9 = vld [vmem:[%s6034_s6 + $0x868] sm:$0xff]  ;;  %v2368_v13 = vld [vmem:[%s6034_s6 + $0x8e0] sm:$0xff] }
 0x225   : > { %5117 = vmatprep.subr.mxu1 %v2331_v17  ;;  %v4643_v28 = vpop.f32.mrf.mxu0  ;;  %5080 = vmatpush3.msra.mxu0 %v2283_v37  ;;  %v2386_v5 = vld [vmem:[%s6034_s6 + $0x970] sm:$0xff]  ;;  %v2385_v11 = vld [vmem:[%s6034_s6 + $0x968] sm:$0xff]  ;;  %v2400_v14 = vld [vmem:[%s6034_s6 + $0x9e0] sm:$0xff] }
 0x226   : > { %5118 = vmatpush3.msra.mxu1 %v2315_v20  ;;  %v4644_v31 = vadd.f32 %v4643_v28, %v4642_v21  ;;  %5081 = vmatprep.subr.mxu0 %v2298_v23  ;;  %v4680_v34 = vpop.f32.mrf.mxu1  ;;  %v2352_v16 = vld [vmem:[%s6034_s6 + $0x860] sm:$0xff]  ;;  %v2367_v18 = vld [vmem:[%s6034_s6 + $0x8d8] sm:$0xff]  ;;  %v5552_v37 = vld [vmem:[#allocation3 + $0x170] sm:$0xff] }
 0x227   : > { %5119 = vmatprep.subr.mxu1 %v2330_v24  ;;  %5082 = vmatpush3.msra.mxu0 %v2282_v0  ;;  %v2384_v17 = vld [vmem:[%s6034_s6 + $0x960] sm:$0xff]  ;;  %v2399_v19 = vld [vmem:[%s6034_s6 + $0x9d8] sm:$0xff]  ;;  %v2366_v23 = vld [vmem:[%s6034_s6 + $0x8d0] sm:$0xff] }
 0x228   : > { %5120 = vmatpush3.msra.mxu1 %v2314_v26  ;;  %v1706_v36 = vadd.f32 %v4644_v31, %v6761_v22  ;;  %5083 = vmatprep.subr.mxu0 %v2297_v29  ;;  %v4681_v15 = vpop.f32.mrf.mxu1  ;;  %v2311_v22 = vld [vmem:[%s6034_s6 + $0x718] sm:$0xff]  ;;  %v2398_v24 = vld [vmem:[%s6034_s6 + $0x9d0] sm:$0xff]  ;;  %v2365_v29 = vld [vmem:[%s6034_s6 + $0x8c8] sm:$0xff] }
 0x229   : > { %5121 = vmatprep.subr.mxu1 %v2329_v30  ;;  %5084 = vmatpush3.msra.mxu0 %v2281_v32  ;;  %v4682_v43 = vadd.f32 %v4681_v15, %v4680_v34  ;;  %v2351_v20 = vld [vmem:[%s6034_s6 + $0x858] sm:$0xff]  ;;  %v2350_v0 = vld [vmem:[%s6034_s6 + $0x850] sm:$0xff]  ;;  %v2397_v30 = vld [vmem:[%s6034_s6 + $0x9c8] sm:$0xff] }
 0x22a   : > { %5122 = vmatpush3.msra.mxu1 %v2313_v33  ;;  %5085 = vmatprep.subr.mxu0 %v2296_v12  ;;  %v2383_v21 = vld [vmem:[%s6034_s6 + $0x958] sm:$0xff]  ;;  %v2382_v26 = vld [vmem:[%s6034_s6 + $0x950] sm:$0xff]  ;;  %v2349_v31 = vld [vmem:[%s6034_s6 + $0x848] sm:$0xff] }
 0x22b   : > { %5123 = vmatprep.subr.mxu1 %v2328_v35  ;;  %5086 = vmatpush3.msra.mxu0 %v2280_v38  ;;  %v6831_v47 = vadd.f32 %v4682_v43, %v1706_v36  ;;  %v2381_v32 = vld [vmem:[%s6034_s6 + $0x948] sm:$0xff]  ;;  %v2364_v12 = vld [vmem:[%s6034_s6 + $0x8c0] sm:$0xff] }
 0x22c   : > { %5124 = vmatpush3.msra.mxu1 %v2312_v39  ;;  %5087 = vmatprep.subr.mxu0 %v2295_v41  ;;  %v2396_v35 = vld [vmem:[%s6034_s6 + $0x9c0] sm:$0xff]  ;;  %v2363_v41 = vld [vmem:[%s6034_s6 + $0x8b8] sm:$0xff] }
 0x22d   : > { %5125 = vmatprep.subr.mxu1 %v2327_v42  ;;  %5088 = vmatpush3.msra.mxu0 %v2279_v44  ;;  %v2348_v38 = vld [vmem:[%s6034_s6 + $0x840] sm:$0xff]  ;;  %v2395_v42 = vld [vmem:[%s6034_s6 + $0x9b8] sm:$0xff] }
 0x22e   : > { %5126 = vmatpush3.msra.mxu1 %v2311_v22  ;;  %5089 = vmatprep.subr.mxu0 %v2294_v45  ;;  %v2380_v39 = vld [vmem:[%s6034_s6 + $0x940] sm:$0xff]  ;;  %v2347_v22 = vld [vmem:[%s6034_s6 + $0x838] sm:$0xff] }
 0x22f   : > { %5127 = vmatprep.subr.mxu1 %v2326_v46  ;;  %5090 = vmatpush3.msra.mxu0 %v2278_v48  ;;  %v2379_v45 = vld [vmem:[%s6034_s6 + $0x938] sm:$0xff]  ;;  %v2362_v48 = vld [vmem:[%s6034_s6 + $0x8b0] sm:$0xff] }
 0x230   : > { %5128 = vmatpush3.msra.mxu1 %v2310_v49  ;;  %5091 = vmatprep.subr.mxu0 %v2293_v50  ;;  %v2394_v49 = vld [vmem:[%s6034_s6 + $0x9b0] sm:$0xff] }
 0x231   : > { %5129 = vmatprep.subr.mxu1 %v2325_v51  ;;  %5092 = vmatpush3.msra.mxu0 %v2277_v52  ;;  %v2378_v51 = vld [vmem:[%s6034_s6 + $0x930] sm:$0xff] }
 0x232   : > { %5130 = vmatpush3.msra.mxu1 %v2309_v53  ;;  %5093 = vmatprep.subr.mxu0 %v2292_v27  ;;  %v2361_v53 = vld [vmem:[%s6034_s6 + $0x8a8] sm:$0xff] }
 0x233   : > { %5131 = vmatprep.subr.mxu1 %v2324_v55  ;;  %5094 = vmatpush3.msra.mxu0 %v2276_v56  ;;  %v2393_v27 = vld [vmem:[%s6034_s6 + $0x9a8] sm:$0xff] }
 0x234   : > { %3110 = vmatprep.mubr.f32.mxu0 %v5545_v59  ;;  %5132 = vmatpush3.msra.mxu1 %v2308_v57  ;;  %v2345_v56 = vld [vmem:[%s6034_s6 + $0x828] sm:$0xff]  ;;  %v2360_v59 = vld [vmem:[%s6034_s6 + $0x8a0] sm:$0xff] }
 0x235   : > { %3111 = vmatmul.mubr.f32.vlgmr.msra.gmra.mxu0 %v5546_v61  ;;  %3185 = vmatprep.mubr.f32.mxu1 %v5547_v40  ;;  %v2377_v57 = vld [vmem:[%s6034_s6 + $0x928] sm:$0xff] }
 0x236   : > { %5139 = vmatprep.subr.mxu0 %v2371_v58  ;;  %5177 = vmatprep.subr.mxu1 %v2403_v60  ;;  %v2392_v60 = vld [vmem:[%s6034_s6 + $0x9a0] sm:$0xff] }
 0x237   : > { %3186 = vmatmul.mubr.f32.vlgmr.msra.gmra.mxu1 %v5548_v3  ;;  %5140 = vmatpush3.msra.mxu0 %v2355_v62  ;;  %v2344_v62 = vld [vmem:[%s6034_s6 + $0x820] sm:$0xff] }
 0x238   : > { %5178 = vmatpush3.msra.mxu1 %v2387_v63  ;;  %5141 = vmatprep.subr.mxu0 %v2370_v1  ;;  %v2376_v63 = vld [vmem:[%s6034_s6 + $0x920] sm:$0xff]  ;;  %v2359_v1 = vld [vmem:[%s6034_s6 + $0x898] sm:$0xff] }
 0x239   : > { %5179 = vmatprep.subr.mxu1 %v2402_v2  ;;  %3115 = vmatprep.mubr.f32.mxu0 %v5549_v8  ;;  %v2391_v2 = vld [vmem:[%s6034_s6 + $0x998] sm:$0xff]  ;;  %v2342_v8 = vld [vmem:[%s6034_s6 + $0x810] sm:$0xff] }
 0x23a   : > { %5142 = vmatpush3.msra.mxu0 %v2354_v4  ;;  %5180 = vmatpush3.msra.mxu1 %v2386_v5  ;;  %v2343_v4 = vld [vmem:[%s6034_s6 + $0x818] sm:$0xff]  ;;  %v2358_v5 = vld [vmem:[%s6034_s6 + $0x890] sm:$0xff] }
 0x23b   : > { %3116 = vmatmul.mubr.f32.gmra.mxu0 %v5550_v10  ;;  %5143 = vmatprep.subr.mxu0 %v2369_v6  ;;  %v2390_v6 = vld [vmem:[%s6034_s6 + $0x990] sm:$0xff]  ;;  %v2357_v10 = vld [vmem:[%s6034_s6 + $0x888] sm:$0xff] }
 0x23c   : > { %5181 = vmatprep.subr.mxu1 %v2401_v7  ;;  %3190 = vmatprep.mubr.f32.mxu1 %v5551_v54  ;;  %v2356_v54 = vld [vmem:[%s6034_s6 + $0x880] sm:$0xff] }
 0x23d   : > { %5144 = vmatpush3.msra.mxu0 %v2353_v9  ;;  %5182 = vmatpush3.msra.mxu1 %v2385_v11  ;;  %v2374_v9 = vld [vmem:[%s6034_s6 + $0x910] sm:$0xff]  ;;  %v2389_v11 = vld [vmem:[%s6034_s6 + $0x988] sm:$0xff] }
 0x23e   : > { %5145 = vmatprep.subr.mxu0 %v2368_v13  ;;  %3191 = vmatmul.mubr.f32.gmra.mxu1 %v5552_v37  ;;  %v2341_v13 = vld [vmem:[%s6034_s6 + $0x808] sm:$0xff] }
 0x23f   : > { %5183 = vmatprep.subr.mxu1 %v2400_v14  ;;  %5146 = vmatpush3.msra.mxu0 %v2352_v16  ;;  %v2373_v14 = vld [vmem:[%s6034_s6 + $0x908] sm:$0xff]  ;;  %v2388_v16 = vld [vmem:[%s6034_s6 + $0x980] sm:$0xff] }
 0x240   : > { %5184 = vmatpush3.msra.mxu1 %v2384_v17  ;;  %5147 = vmatprep.subr.mxu0 %v2367_v18  ;;  %v2340_v17 = vld [vmem:[%s6034_s6 + $0x800] sm:$0xff]  ;;  %v5553_v37 = vld [vmem:[#allocation3 + $0x88] sm:$0xff] }
 0x241   : > { %5185 = vmatprep.subr.mxu1 %v2399_v19  ;;  %v4715_v28 = vpop.f32.mrf.mxu0  ;;  %5148 = vmatpush3.msra.mxu0 %v2351_v20  ;;  %v2372_v18 = vld [vmem:[%s6034_s6 + $0x900] sm:$0xff]  ;;  %v2435_v19 = vld [vmem:[%s6034_s6 + $0xaf8] sm:$0xff] }
 0x242   : > { %5186 = vmatpush3.msra.mxu1 %v2383_v21  ;;  %5149 = vmatprep.subr.mxu0 %v2366_v23  ;;  %v2467_v20 = vld [vmem:[%s6034_s6 + $0xbf8] sm:$0xff]  ;;  %v5554_v21 = vld [vmem:[#allocation3 + $0x80] sm:$0xff] }
 0x243   : > { %5187 = vmatprep.subr.mxu1 %v2398_v24  ;;  %v4753_v33 = vpop.f32.mrf.mxu1  ;;  %v4716_v34 = vpop.f32.mrf.mxu0  ;;  %5150 = vmatpush3.msra.mxu0 %v2350_v0  ;;  %v2419_v23 = vld [vmem:[%s6034_s6 + $0xa78] sm:$0xff] }
 0x244   : > { %5188 = vmatpush3.msra.mxu1 %v2382_v26  ;;  %v4717_v36 = vadd.f32 %v4716_v34, %v4715_v28  ;;  %5151 = vmatprep.subr.mxu0 %v2365_v29  ;;  %v2451_v24 = vld [vmem:[%s6034_s6 + $0xb78] sm:$0xff]  ;;  %v2434_v26 = vld [vmem:[%s6034_s6 + $0xaf0] sm:$0xff]  ;;  %v5557_v34 = vld [vmem:[#allocation3 + $0x188] sm:$0xff] }
 0x245   : > { %5189 = vmatprep.subr.mxu1 %v2397_v30  ;;  %v4754_v15 = vpop.f32.mrf.mxu1  ;;  %5152 = vmatpush3.msra.mxu0 %v2349_v31  ;;  %v5555_v0 = vld [vmem:[#allocation3 + $0x98] sm:$0xff]  ;;  %v2466_v28 = vld [vmem:[%s6034_s6 + $0xbf0] sm:$0xff] }
 0x246   : > { %5190 = vmatpush3.msra.mxu1 %v2381_v32  ;;  %v1851_v43 = vadd.f32 %v4717_v36, %v6812_v25  ;;  %v4755_v44 = vadd.f32 %v4754_v15, %v4753_v33  ;;  %5153 = vmatprep.subr.mxu0 %v2364_v12  ;;  %v2346_v25 = vld [vmem:[%s6034_s6 + $0x830] sm:$0xff]  ;;  %v2433_v32 = vld [vmem:[%s6034_s6 + $0xae8] sm:$0xff]  ;;  %v5559_v15 = vld [vmem:[#allocation3 + $0x198] sm:$0xff] }
 0x247   : > { %5191 = vmatprep.subr.mxu1 %v2396_v35  ;;  %v4718_v46 = vpop.f32.mrf.mxu0  ;;  %5154 = vmatpush3.msra.mxu0 %v2348_v38  ;;  %v5556_v29 = vld [vmem:[#allocation3 + $0x90] sm:$0xff]  ;;  %v2465_v33 = vld [vmem:[%s6034_s6 + $0xbe8] sm:$0xff]  ;;  %v5558_v35 = vld [vmem:[#allocation3 + $0x180] sm:$0xff] }
 0x248   : > { %5192 = vmatpush3.msra.mxu1 %v2380_v39  ;;  %v6882_v50 = vadd.f32 %v4755_v44, %v1851_v43  ;;  %5155 = vmatprep.subr.mxu0 %v2363_v41  ;;  %v2418_v30 = vld [vmem:[%s6034_s6 + $0xa70] sm:$0xff]  ;;  %v2417_v12 = vld [vmem:[%s6034_s6 + $0xa68] sm:$0xff]  ;;  %v2432_v38 = vld [vmem:[%s6034_s6 + $0xae0] sm:$0xff] }
 0x249   : > { %5193 = vmatprep.subr.mxu1 %v2395_v42  ;;  %v4719_v52 = vpop.f32.mrf.mxu0  ;;  %5156 = vmatpush3.msra.mxu0 %v2347_v22  ;;  %v2450_v31 = vld [vmem:[%s6034_s6 + $0xb70] sm:$0xff]  ;;  %v2449_v36 = vld [vmem:[%s6034_s6 + $0xb68] sm:$0xff]  ;;  %v2464_v39 = vld [vmem:[%s6034_s6 + $0xbe0] sm:$0xff] }
 0x24a   : > { %5194 = vmatpush3.msra.mxu1 %v2379_v45  ;;  %v4720_v55 = vadd.f32 %v4719_v52, %v4718_v46  ;;  %5157 = vmatprep.subr.mxu0 %v2362_v48  ;;  %v4756_v58 = vpop.f32.mrf.mxu1  ;;  %v2416_v41 = vld [vmem:[%s6034_s6 + $0xa60] sm:$0xff]  ;;  %v2431_v43 = vld [vmem:[%s6034_s6 + $0xad8] sm:$0xff]  ;;  %v5560_v22 = vld [vmem:[#allocation3 + $0x190] sm:$0xff] }
 0x24b   : > { %5195 = vmatprep.subr.mxu1 %v2394_v49  ;;  %5158 = vmatpush3.msra.mxu0 %v2346_v25  ;;  %v2448_v42 = vld [vmem:[%s6034_s6 + $0xb60] sm:$0xff]  ;;  %v2463_v44 = vld [vmem:[%s6034_s6 + $0xbd8] sm:$0xff]  ;;  %v2430_v48 = vld [vmem:[%s6034_s6 + $0xad0] sm:$0xff] }
 0x24c   : > { %5196 = vmatpush3.msra.mxu1 %v2378_v51  ;;  %v1856_v61 = vadd.f32 %v4720_v55, %v6831_v47  ;;  %5159 = vmatprep.subr.mxu0 %v2361_v53  ;;  %v4757_v40 = vpop.f32.mrf.mxu1  ;;  %v2375_v47 = vld [vmem:[%s6034_s6 + $0x918] sm:$0xff]  ;;  %v2462_v49 = vld [vmem:[%s6034_s6 + $0xbd0] sm:$0xff]  ;;  %v2429_v53 = vld [vmem:[%s6034_s6 + $0xac8] sm:$0xff] }
 0x24d   : > { %5197 = vmatprep.subr.mxu1 %v2393_v27  ;;  %5160 = vmatpush3.msra.mxu0 %v2345_v56  ;;  %v4758_v3 = vadd.f32 %v4757_v40, %v4756_v58  ;;  %v2415_v45 = vld [vmem:[%s6034_s6 + $0xa58] sm:$0xff]  ;;  %v2414_v25 = vld [vmem:[%s6034_s6 + $0xa50] sm:$0xff]  ;;  %v2461_v27 = vld [vmem:[%s6034_s6 + $0xbc8] sm:$0xff] }
 0x24e   : > { %5198 = vmatpush3.msra.mxu1 %v2377_v57  ;;  %5161 = vmatprep.subr.mxu0 %v2360_v59  ;;  %v2447_v46 = vld [vmem:[%s6034_s6 + $0xb58] sm:$0xff]  ;;  %v2446_v51 = vld [vmem:[%s6034_s6 + $0xb50] sm:$0xff]  ;;  %v2413_v55 = vld [vmem:[%s6034_s6 + $0xa48] sm:$0xff] }
 0x24f   : > { %5199 = vmatprep.subr.mxu1 %v2392_v60  ;;  %5162 = vmatpush3.msra.mxu0 %v2344_v62  ;;  %v6901_v7 = vadd.f32 %v4758_v3, %v1856_v61  ;;  %v2445_v56 = vld [vmem:[%s6034_s6 + $0xb48] sm:$0xff]  ;;  %v2428_v59 = vld [vmem:[%s6034_s6 + $0xac0] sm:$0xff] }
 0x250   : > { %5200 = vmatpush3.msra.mxu1 %v2376_v63  ;;  %5163 = vmatprep.subr.mxu0 %v2359_v1  ;;  %v2460_v60 = vld [vmem:[%s6034_s6 + $0xbc0] sm:$0xff]  ;;  %v2427_v1 = vld [vmem:[%s6034_s6 + $0xab8] sm:$0xff] }
 0x251   : > { %5201 = vmatprep.subr.mxu1 %v2391_v2  ;;  %5164 = vmatpush3.msra.mxu0 %v2343_v4  ;;  %v2412_v62 = vld [vmem:[%s6034_s6 + $0xa40] sm:$0xff]  ;;  %v2459_v2 = vld [vmem:[%s6034_s6 + $0xbb8] sm:$0xff] }
 0x252   : > { %5202 = vmatpush3.msra.mxu1 %v2375_v47  ;;  %5165 = vmatprep.subr.mxu0 %v2358_v5  ;;  %v2444_v63 = vld [vmem:[%s6034_s6 + $0xb40] sm:$0xff]  ;;  %v2411_v47 = vld [vmem:[%s6034_s6 + $0xa38] sm:$0xff] }
 0x253   : > { %5203 = vmatprep.subr.mxu1 %v2390_v6  ;;  %5166 = vmatpush3.msra.mxu0 %v2342_v8  ;;  %v2443_v5 = vld [vmem:[%s6034_s6 + $0xb38] sm:$0xff]  ;;  %v2426_v8 = vld [vmem:[%s6034_s6 + $0xab0] sm:$0xff] }
 0x254   : > { %5204 = vmatpush3.msra.mxu1 %v2374_v9  ;;  %5167 = vmatprep.subr.mxu0 %v2357_v10  ;;  %v2458_v9 = vld [vmem:[%s6034_s6 + $0xbb0] sm:$0xff] }
 0x255   : > { %5205 = vmatprep.subr.mxu1 %v2389_v11  ;;  %5168 = vmatpush3.msra.mxu0 %v2341_v13  ;;  %v2442_v11 = vld [vmem:[%s6034_s6 + $0xb30] sm:$0xff] }
 0x256   : > { %5206 = vmatpush3.msra.mxu1 %v2373_v14  ;;  %5169 = vmatprep.subr.mxu0 %v2356_v54  ;;  %v2425_v14 = vld [vmem:[%s6034_s6 + $0xaa8] sm:$0xff] }
 0x257   : > { %5207 = vmatprep.subr.mxu1 %v2388_v16  ;;  %5170 = vmatpush3.msra.mxu0 %v2340_v17  ;;  %v2457_v54 = vld [vmem:[%s6034_s6 + $0xba8] sm:$0xff] }
 0x258   : > { %3260 = vmatprep.mubr.f32.mxu0 %v5553_v37  ;;  %5208 = vmatpush3.msra.mxu1 %v2372_v18  ;;  %v2409_v17 = vld [vmem:[%s6034_s6 + $0xa28] sm:$0xff]  ;;  %v2424_v37 = vld [vmem:[%s6034_s6 + $0xaa0] sm:$0xff] }
 0x259   : > { %3261 = vmatmul.mubr.f32.vlgmr.msra.gmra.mxu0 %v5554_v21  ;;  %3335 = vmatprep.mubr.f32.mxu1 %v5555_v0  ;;  %v2441_v18 = vld [vmem:[%s6034_s6 + $0xb28] sm:$0xff] }
 0x25a   : > { %5215 = vmatprep.subr.mxu0 %v2435_v19  ;;  %5253 = vmatprep.subr.mxu1 %v2467_v20  ;;  %v2456_v20 = vld [vmem:[%s6034_s6 + $0xba0] sm:$0xff] }
 0x25b   : > { %3336 = vmatmul.mubr.f32.vlgmr.msra.gmra.mxu1 %v5556_v29  ;;  %5216 = vmatpush3.msra.mxu0 %v2419_v23  ;;  %v2408_v23 = vld [vmem:[%s6034_s6 + $0xa20] sm:$0xff] }
 0x25c   : > { %5254 = vmatpush3.msra.mxu1 %v2451_v24  ;;  %5217 = vmatprep.subr.mxu0 %v2434_v26  ;;  %v2440_v24 = vld [vmem:[%s6034_s6 + $0xb20] sm:$0xff]  ;;  %v2423_v26 = vld [vmem:[%s6034_s6 + $0xa98] sm:$0xff] }
 0x25d   : > { %5255 = vmatprep.subr.mxu1 %v2466_v28  ;;  %3265 = vmatprep.mubr.f32.mxu0 %v5557_v34  ;;  %v2455_v28 = vld [vmem:[%s6034_s6 + $0xb98] sm:$0xff]  ;;  %v2406_v34 = vld [vmem:[%s6034_s6 + $0xa10] sm:$0xff] }
 0x25e   : > { %5218 = vmatpush3.msra.mxu0 %v2418_v30  ;;  %5256 = vmatpush3.msra.mxu1 %v2450_v31  ;;  %v2407_v30 = vld [vmem:[%s6034_s6 + $0xa18] sm:$0xff]  ;;  %v2422_v31 = vld [vmem:[%s6034_s6 + $0xa90] sm:$0xff] }
 0x25f   : > { %3266 = vmatmul.mubr.f32.gmra.mxu0 %v5558_v35  ;;  %5219 = vmatprep.subr.mxu0 %v2433_v32  ;;  %v2454_v32 = vld [vmem:[%s6034_s6 + $0xb90] sm:$0xff]  ;;  %v2421_v35 = vld [vmem:[%s6034_s6 + $0xa88] sm:$0xff] }
 0x260   : > { %5257 = vmatprep.subr.mxu1 %v2465_v33  ;;  %3340 = vmatprep.mubr.f32.mxu1 %v5559_v15  ;;  %v2420_v15 = vld [vmem:[%s6034_s6 + $0xa80] sm:$0xff] }
 0x261   : > { %5220 = vmatpush3.msra.mxu0 %v2417_v12  ;;  %5258 = vmatpush3.msra.mxu1 %v2449_v36  ;;  %v2438_v12 = vld [vmem:[%s6034_s6 + $0xb10] sm:$0xff]  ;;  %v2453_v36 = vld [vmem:[%s6034_s6 + $0xb88] sm:$0xff] }
 0x262   : > { %5221 = vmatprep.subr.mxu0 %v2432_v38  ;;  %3341 = vmatmul.mubr.f32.gmra.mxu1 %v5560_v22  ;;  %v2405_v38 = vld [vmem:[%s6034_s6 + $0xa08] sm:$0xff] }
 0x263   : > { %5259 = vmatprep.subr.mxu1 %v2464_v39  ;;  %5222 = vmatpush3.msra.mxu0 %v2416_v41  ;;  %v2437_v39 = vld [vmem:[%s6034_s6 + $0xb08] sm:$0xff]  ;;  %v2452_v41 = vld [vmem:[%s6034_s6 + $0xb80] sm:$0xff] }
 0x264   : > { %5260 = vmatpush3.msra.mxu1 %v2448_v42  ;;  %5223 = vmatprep.subr.mxu0 %v2431_v43  ;;  %v2404_v42 = vld [vmem:[%s6034_s6 + $0xa00] sm:$0xff]  ;;  %v5561_v22 = vld [vmem:[#allocation3 + $0xa8] sm:$0xff] }
 0x265   : > { %5261 = vmatprep.subr.mxu1 %v2463_v44  ;;  %v4791_v52 = vpop.f32.mrf.mxu0  ;;  %5224 = vmatpush3.msra.mxu0 %v2415_v45  ;;  %v2436_v43 = vld [vmem:[%s6034_s6 + $0xb00] sm:$0xff]  ;;  %v2499_v44 = vld [vmem:[%s6034_s6 + $0xcf8] sm:$0xff] }
 0x266   : > { %5262 = vmatpush3.msra.mxu1 %v2447_v46  ;;  %5225 = vmatprep.subr.mxu0 %v2430_v48  ;;  %v2531_v45 = vld [vmem:[%s6034_s6 + $0xdf8] sm:$0xff]  ;;  %v5562_v46 = vld [vmem:[#allocation3 + $0xa0] sm:$0xff] }
 0x267   : > { %5263 = vmatprep.subr.mxu1 %v2462_v49  ;;  %v4829_v57 = vpop.f32.mrf.mxu1  ;;  %v4792_v58 = vpop.f32.mrf.mxu0  ;;  %5226 = vmatpush3.msra.mxu0 %v2414_v25  ;;  %v2483_v48 = vld [vmem:[%s6034_s6 + $0xc78] sm:$0xff] }
 0x268   : > { %5264 = vmatpush3.msra.mxu1 %v2446_v51  ;;  %v4793_v61 = vadd.f32 %v4792_v58, %v4791_v52  ;;  %5227 = vmatprep.subr.mxu0 %v2429_v53  ;;  %v2515_v49 = vld [vmem:[%s6034_s6 + $0xd78] sm:$0xff]  ;;  %v2498_v51 = vld [vmem:[%s6034_s6 + $0xcf0] sm:$0xff]  ;;  %v5565_v58 = vld [vmem:[#allocation3 + $0x1a8] sm:$0xff] }
 0x269   : > { %5265 = vmatprep.subr.mxu1 %v2461_v27  ;;  %v4830_v40 = vpop.f32.mrf.mxu1  ;;  %5228 = vmatpush3.msra.mxu0 %v2413_v55  ;;  %v5563_v25 = vld [vmem:[#allocation3 + $0xb8] sm:$0xff]  ;;  %v2530_v52 = vld [vmem:[%s6034_s6 + $0xdf0] sm:$0xff] }
 0x26a   : > { %5266 = vmatpush3.msra.mxu1 %v2445_v56  ;;  %v2001_v3 = vadd.f32 %v4793_v61, %v6882_v50  ;;  %v4831_v4 = vadd.f32 %v4830_v40, %v4829_v57  ;;  %5229 = vmatprep.subr.mxu0 %v2428_v59  ;;  %v2410_v50 = vld [vmem:[%s6034_s6 + $0xa30] sm:$0xff]  ;;  %v2497_v56 = vld [vmem:[%s6034_s6 + $0xce8] sm:$0xff]  ;;  %v5567_v40 = vld [vmem:[#allocation3 + $0x1b8] sm:$0xff] }
 0x26b   : > { %5267 = vmatprep.subr.mxu1 %v2460_v60  ;;  %v4794_v6 = vpop.f32.mrf.mxu0  ;;  %5230 = vmatpush3.msra.mxu0 %v2412_v62  ;;  %v5564_v53 = vld [vmem:[#allocation3 + $0xb0] sm:$0xff]  ;;  %v2529_v57 = vld [vmem:[%s6034_s6 + $0xde8] sm:$0xff]  ;;  %v5566_v60 = vld [vmem:[#allocation3 + $0x1a0] sm:$0xff] }
 0x26c   : > { %5268 = vmatpush3.msra.mxu1 %v2444_v63  ;;  %v6952_v10 = vadd.f32 %v4831_v4, %v2001_v3  ;;  %5231 = vmatprep.subr.mxu0 %v2427_v1  ;;  %v2482_v27 = vld [vmem:[%s6034_s6 + $0xc70] sm:$0xff]  ;;  %v2481_v59 = vld [vmem:[%s6034_s6 + $0xc68] sm:$0xff]  ;;  %v2496_v62 = vld [vmem:[%s6034_s6 + $0xce0] sm:$0xff] }
 0x26d   : > { %5269 = vmatprep.subr.mxu1 %v2459_v2  ;;  %v4795_v13 = vpop.f32.mrf.mxu0  ;;  %5232 = vmatpush3.msra.mxu0 %v2411_v47  ;;  %v2514_v55 = vld [vmem:[%s6034_s6 + $0xd70] sm:$0xff]  ;;  %v2513_v61 = vld [vmem:[%s6034_s6 + $0xd68] sm:$0xff]  ;;  %v2528_v63 = vld [vmem:[%s6034_s6 + $0xde0] sm:$0xff] }
 0x26e   : > { %5270 = vmatpush3.msra.mxu1 %v2443_v5  ;;  %v4796_v16 = vadd.f32 %v4795_v13, %v4794_v6  ;;  %5233 = vmatprep.subr.mxu0 %v2426_v8  ;;  %v4832_v19 = vpop.f32.mrf.mxu1  ;;  %v2480_v1 = vld [vmem:[%s6034_s6 + $0xc60] sm:$0xff]  ;;  %v2495_v3 = vld [vmem:[%s6034_s6 + $0xcd8] sm:$0xff]  ;;  %v5568_v47 = vld [vmem:[#allocation3 + $0x1b0] sm:$0xff] }
 0x26f   : > { %5271 = vmatprep.subr.mxu1 %v2458_v9  ;;  %5234 = vmatpush3.msra.mxu0 %v2410_v50  ;;  %v2512_v2 = vld [vmem:[%s6034_s6 + $0xd60] sm:$0xff]  ;;  %v2527_v4 = vld [vmem:[%s6034_s6 + $0xdd8] sm:$0xff]  ;;  %v2494_v8 = vld [vmem:[%s6034_s6 + $0xcd0] sm:$0xff] }
 0x270   : > { %5272 = vmatpush3.msra.mxu1 %v2442_v11  ;;  %v2006_v21 = vadd.f32 %v4796_v16, %v6901_v7  ;;  %5235 = vmatprep.subr.mxu0 %v2425_v14  ;;  %v4833_v0 = vpop.f32.mrf.mxu1  ;;  %v2439_v7 = vld [vmem:[%s6034_s6 + $0xb18] sm:$0xff]  ;;  %v2526_v9 = vld [vmem:[%s6034_s6 + $0xdd0] sm:$0xff]  ;;  %v2493_v13 = vld [vmem:[%s6034_s6 + $0xcc8] sm:$0xff] }
 0x271   : > { %5273 = vmatprep.subr.mxu1 %v2457_v54  ;;  %5236 = vmatpush3.msra.mxu0 %v2409_v17  ;;  %v4834_v29 = vadd.f32 %v4833_v0, %v4832_v19  ;;  %v2479_v5 = vld [vmem:[%s6034_s6 + $0xc58] sm:$0xff]  ;;  %v2478_v50 = vld [vmem:[%s6034_s6 + $0xc50] sm:$0xff]  ;;  %v2525_v14 = vld [vmem:[%s6034_s6 + $0xdc8] sm:$0xff] }
 0x272   : > { %5274 = vmatpush3.msra.mxu1 %v2441_v18  ;;  %5237 = vmatprep.subr.mxu0 %v2424_v37  ;;  %v2511_v6 = vld [vmem:[%s6034_s6 + $0xd58] sm:$0xff]  ;;  %v2510_v11 = vld [vmem:[%s6034_s6 + $0xd50] sm:$0xff]  ;;  %v2477_v54 = vld [vmem:[%s6034_s6 + $0xc48] sm:$0xff] }
 0x273   : > { %5275 = vmatprep.subr.mxu1 %v2456_v20  ;;  %5238 = vmatpush3.msra.mxu0 %v2408_v23  ;;  %v6971_v33 = vadd.f32 %v4834_v29, %v2006_v21  ;;  %v2509_v16 = vld [vmem:[%s6034_s6 + $0xd48] sm:$0xff]  ;;  %v2492_v17 = vld [vmem:[%s6034_s6 + $0xcc0] sm:$0xff]  ;;  %v2491_v20 = vld [vmem:[%s6034_s6 + $0xcb8] sm:$0xff] }
 0x274   : > { %5276 = vmatpush3.msra.mxu1 %v2440_v24  ;;  %5239 = vmatprep.subr.mxu0 %v2423_v26  ;;  %v2524_v18 = vld [vmem:[%s6034_s6 + $0xdc0] sm:$0xff]  ;;  %v2523_v21 = vld [vmem:[%s6034_s6 + $0xdb8] sm:$0xff]  ;;  %v2490_v0 = vld [vmem:[%s6034_s6 + $0xcb0] sm:$0xff] }
 0x275   : > { %5277 = vmatprep.subr.mxu1 %v2455_v28  ;;  %5240 = vmatpush3.msra.mxu0 %v2407_v30  ;;  %v2476_v19 = vld [vmem:[%s6034_s6 + $0xc40] sm:$0xff]  ;;  %v2475_v23 = vld [vmem:[%s6034_s6 + $0xc38] sm:$0xff]  ;;  %v2522_v26 = vld [vmem:[%s6034_s6 + $0xdb0] sm:$0xff] }
 0x276   : > { %5278 = vmatpush3.msra.mxu1 %v2439_v7  ;;  %5241 = vmatprep.subr.mxu0 %v2422_v31  ;;  %v2508_v37 = vld [vmem:[%s6034_s6 + $0xd40] sm:$0xff]  ;;  %v2507_v24 = vld [vmem:[%s6034_s6 + $0xd38] sm:$0xff]  ;;  %v2474_v28 = vld [vmem:[%s6034_s6 + $0xc30] sm:$0xff] }
 0x277   : > { %5279 = vmatprep.subr.mxu1 %v2454_v32  ;;  %5242 = vmatpush3.msra.mxu0 %v2406_v34  ;;  %v2506_v29 = vld [vmem:[%s6034_s6 + $0xd30] sm:$0xff]  ;;  %v2489_v30 = vld [vmem:[%s6034_s6 + $0xca8] sm:$0xff]  ;;  %v2488_v34 = vld [vmem:[%s6034_s6 + $0xca0] sm:$0xff] }
 0x278   : > { %5280 = vmatpush3.msra.mxu1 %v2438_v12  ;;  %5243 = vmatprep.subr.mxu0 %v2421_v35  ;;  %v2521_v7 = vld [vmem:[%s6034_s6 + $0xda8] sm:$0xff]  ;;  %v2520_v12 = vld [vmem:[%s6034_s6 + $0xda0] sm:$0xff] }
 0x279   : > { %5281 = vmatprep.subr.mxu1 %v2453_v36  ;;  %5244 = vmatpush3.msra.mxu0 %v2405_v38  ;;  %v2473_v31 = vld [vmem:[%s6034_s6 + $0xc28] sm:$0xff]  ;;  %v2472_v35 = vld [vmem:[%s6034_s6 + $0xc20] sm:$0xff]  ;;  %v2487_v38 = vld [vmem:[%s6034_s6 + $0xc98] sm:$0xff] }
 0x27a   : > { %5282 = vmatpush3.msra.mxu1 %v2437_v39  ;;  %5245 = vmatprep.subr.mxu0 %v2420_v15  ;;  %v2505_v32 = vld [vmem:[%s6034_s6 + $0xd28] sm:$0xff]  ;;  %v2504_v36 = vld [vmem:[%s6034_s6 + $0xd20] sm:$0xff]  ;;  %v2519_v39 = vld [vmem:[%s6034_s6 + $0xd98] sm:$0xff] }
 0x27b   : > { %5283 = vmatprep.subr.mxu1 %v2452_v41  ;;  %5246 = vmatpush3.msra.mxu0 %v2404_v42  ;;  %v2471_v15 = vld [vmem:[%s6034_s6 + $0xc18] sm:$0xff]  ;;  %v2486_v42 = vld [vmem:[%s6034_s6 + $0xc90] sm:$0xff] }
 0x27c   : > { %3410 = vmatprep.mubr.f32.mxu0 %v5561_v22  ;;  %5284 = vmatpush3.msra.mxu1 %v2436_v43  ;;  %v2503_v41 = vld [vmem:[%s6034_s6 + $0xd18] sm:$0xff]  ;;  %v2518_v43 = vld [vmem:[%s6034_s6 + $0xd90] sm:$0xff] }
 0x27d   : > { %3411 = vmatmul.mubr.f32.vlgmr.msra.gmra.mxu0 %v5562_v46  ;;  %3485 = vmatprep.mubr.f32.mxu1 %v5563_v25  ;;  %v2502_v22 = vld [vmem:[%s6034_s6 + $0xd10] sm:$0xff]  ;;  %v2517_v46 = vld [vmem:[%s6034_s6 + $0xd88] sm:$0xff]  ;;  %v2484_v25 = vld [vmem:[%s6034_s6 + $0xc80] sm:$0xff] }
 0x27e   : > { %5291 = vmatprep.subr.mxu0 %v2499_v44  ;;  %5329 = vmatprep.subr.mxu1 %v2531_v45  ;;  %v2470_v44 = vld [vmem:[%s6034_s6 + $0xc10] sm:$0xff]  ;;  %v2485_v45 = vld [vmem:[%s6034_s6 + $0xc88] sm:$0xff] }
 0x27f   : > { %3486 = vmatmul.mubr.f32.vlgmr.msra.gmra.mxu1 %v5564_v53  ;;  %5292 = vmatpush3.msra.mxu0 %v2483_v48  ;;  %v2469_v48 = vld [vmem:[%s6034_s6 + $0xc08] sm:$0xff]  ;;  %v2500_v53 = vld [vmem:[%s6034_s6 + $0xd00] sm:$0xff] }
 0x280   : > { %5330 = vmatpush3.msra.mxu1 %v2515_v49  ;;  %5293 = vmatprep.subr.mxu0 %v2498_v51  ;;  %v2501_v49 = vld [vmem:[%s6034_s6 + $0xd08] sm:$0xff]  ;;  %v2516_v51 = vld [vmem:[%s6034_s6 + $0xd80] sm:$0xff] }
 0x281   : > { %5331 = vmatprep.subr.mxu1 %v2530_v52  ;;  %3415 = vmatprep.mubr.f32.mxu0 %v5565_v58  ;;  %v2468_v52 = vld [vmem:[%s6034_s6 + $0xc00] sm:$0xff]  ;;  %v2547_v58 = vld [vmem:[%s6034_s6 + $0xe78] sm:$0xff] }
 0x282   : > { %5294 = vmatpush3.msra.mxu0 %v2482_v27  ;;  %5332 = vmatpush3.msra.mxu1 %v2514_v55  ;;  %v2563_v27 = vld [vmem:[%s6034_s6 + $0xef8] sm:$0xff]  ;;  %v5569_v55 = vld [vmem:[#allocation3 + $0xc8] sm:$0xff] }
 0x283   : > { %3416 = vmatmul.mubr.f32.gmra.mxu0 %v5566_v60  ;;  %5295 = vmatprep.subr.mxu0 %v2497_v56  ;;  %v2595_v56 = vld [vmem:[%s6034_s6 + $0xff8] sm:$0xff] }
 0x284   : > { %5333 = vmatprep.subr.mxu1 %v2529_v57  ;;  %3490 = vmatprep.mubr.f32.mxu1 %v5567_v40  ;;  %v5570_v57 = vld [vmem:[#allocation3 + $0xc0] sm:$0xff]  ;;  %v5571_v60 = vld [vmem:[#allocation3 + $0xd8] sm:$0xff]  ;;  %v2546_v40 = vld [vmem:[%s6034_s6 + $0xe70] sm:$0xff] }
 0x285   : > { %5296 = vmatpush3.msra.mxu0 %v2481_v59  ;;  %5334 = vmatpush3.msra.mxu1 %v2513_v61  ;;  %v2579_v59 = vld [vmem:[%s6034_s6 + $0xf78] sm:$0xff]  ;;  %v2562_v61 = vld [vmem:[%s6034_s6 + $0xef0] sm:$0xff] }
 0x286   : > { %5297 = vmatprep.subr.mxu0 %v2496_v62  ;;  %3491 = vmatmul.mubr.f32.gmra.mxu1 %v5568_v47  ;;  %v2594_v62 = vld [vmem:[%s6034_s6 + $0xff0] sm:$0xff]  ;;  %v2545_v47 = vld [vmem:[%s6034_s6 + $0xe68] sm:$0xff] }
 0x287   : > { %5335 = vmatprep.subr.mxu1 %v2528_v63  ;;  %5298 = vmatpush3.msra.mxu0 %v2480_v1  ;;  %v5572_v63 = vld [vmem:[#allocation3 + $0xd0] sm:$0xff] }
 0x288   : > { %5336 = vmatpush3.msra.mxu1 %v2512_v2  ;;  %5299 = vmatprep.subr.mxu0 %v2495_v3  ;;  %v2578_v1 = vld [vmem:[%s6034_s6 + $0xf70] sm:$0xff]  ;;  %v2561_v2 = vld [vmem:[%s6034_s6 + $0xee8] sm:$0xff] }
 0x289   : > { %5337 = vmatprep.subr.mxu1 %v2527_v4  ;;  %5300 = vmatpush3.msra.mxu0 %v2479_v5  ;;  %v2593_v3 = vld [vmem:[%s6034_s6 + $0xfe8] sm:$0xff]  ;;  %v5574_v5 = vld [vmem:[#allocation3 + $0x1c0] sm:$0xff] }
 0x28a   : > { %5338 = vmatpush3.msra.mxu1 %v2511_v6  ;;  %5301 = vmatprep.subr.mxu0 %v2494_v8  ;;  %v5573_v4 = vld [vmem:[#allocation3 + $0x1c8] sm:$0xff]  ;;  %v2560_v8 = vld [vmem:[%s6034_s6 + $0xee0] sm:$0xff] }
 0x28b   : > { %5339 = vmatprep.subr.mxu1 %v2526_v9  ;;  %5302 = vmatpush3.msra.mxu0 %v2478_v50  ;;  %v2577_v6 = vld [vmem:[%s6034_s6 + $0xf68] sm:$0xff]  ;;  %v2592_v9 = vld [vmem:[%s6034_s6 + $0xfe0] sm:$0xff]  ;;  %v5575_v50 = vld [vmem:[#allocation3 + $0x1d8] sm:$0xff] }
 0x28c   : > { %5340 = vmatpush3.msra.mxu1 %v2510_v11  ;;  %5303 = vmatprep.subr.mxu0 %v2493_v13  ;;  %v2544_v11 = vld [vmem:[%s6034_s6 + $0xe60] sm:$0xff] }
 0x28d   : > { %5341 = vmatprep.subr.mxu1 %v2525_v14  ;;  %5304 = vmatpush3.msra.mxu0 %v2477_v54  ;;  %v2576_v13 = vld [vmem:[%s6034_s6 + $0xf60] sm:$0xff]  ;;  %v2559_v14 = vld [vmem:[%s6034_s6 + $0xed8] sm:$0xff] }
 0x28e   : > { %5342 = vmatpush3.msra.mxu1 %v2509_v16  ;;  %5305 = vmatprep.subr.mxu0 %v2492_v17  ;;  %v2591_v54 = vld [vmem:[%s6034_s6 + $0xfd8] sm:$0xff]  ;;  %v5576_v16 = vld [vmem:[#allocation3 + $0x1d0] sm:$0xff] }
 0x28f   : > { %5343 = vmatprep.subr.mxu1 %v2524_v18  ;;  %5306 = vmatpush3.msra.mxu0 %v2476_v19  ;;  %v2543_v17 = vld [vmem:[%s6034_s6 + $0xe58] sm:$0xff]  ;;  %v2558_v19 = vld [vmem:[%s6034_s6 + $0xed0] sm:$0xff] }
 0x290   : > { %5344 = vmatpush3.msra.mxu1 %v2508_v37  ;;  %5307 = vmatprep.subr.mxu0 %v2491_v20  ;;  %v2575_v18 = vld [vmem:[%s6034_s6 + $0xf58] sm:$0xff]  ;;  %v2590_v37 = vld [vmem:[%s6034_s6 + $0xfd0] sm:$0xff] }
 0x291   : > { %5345 = vmatprep.subr.mxu1 %v2523_v21  ;;  %5308 = vmatpush3.msra.mxu0 %v2475_v23  ;;  %v2542_v20 = vld [vmem:[%s6034_s6 + $0xe50] sm:$0xff]  ;;  %v2557_v23 = vld [vmem:[%s6034_s6 + $0xec8] sm:$0xff] }
 0x292   : > { %5346 = vmatpush3.msra.mxu1 %v2507_v24  ;;  %5309 = vmatprep.subr.mxu0 %v2490_v0  ;;  %v2574_v21 = vld [vmem:[%s6034_s6 + $0xf50] sm:$0xff]  ;;  %v2589_v24 = vld [vmem:[%s6034_s6 + $0xfc8] sm:$0xff] }
 0x293   : > { %5347 = vmatprep.subr.mxu1 %v2522_v26  ;;  %5310 = vmatpush3.msra.mxu0 %v2474_v28  ;;  %v2541_v0 = vld [vmem:[%s6034_s6 + $0xe48] sm:$0xff]  ;;  %v2556_v28 = vld [vmem:[%s6034_s6 + $0xec0] sm:$0xff] }
 0x294   : > { %5348 = vmatpush3.msra.mxu1 %v2506_v29  ;;  %5311 = vmatprep.subr.mxu0 %v2489_v30  ;;  %v2573_v26 = vld [vmem:[%s6034_s6 + $0xf48] sm:$0xff]  ;;  %v2588_v29 = vld [vmem:[%s6034_s6 + $0xfc0] sm:$0xff] }
 0x295   : > { %5349 = vmatprep.subr.mxu1 %v2521_v7  ;;  %5312 = vmatpush3.msra.mxu0 %v2473_v31  ;;  %v2540_v30 = vld [vmem:[%s6034_s6 + $0xe40] sm:$0xff]  ;;  %v2555_v31 = vld [vmem:[%s6034_s6 + $0xeb8] sm:$0xff] }
 0x296   : > { %5350 = vmatpush3.msra.mxu1 %v2505_v32  ;;  %5313 = vmatprep.subr.mxu0 %v2488_v34  ;;  %v2572_v7 = vld [vmem:[%s6034_s6 + $0xf40] sm:$0xff]  ;;  %v2587_v32 = vld [vmem:[%s6034_s6 + $0xfb8] sm:$0xff] }
 0x297   : > { %5351 = vmatprep.subr.mxu1 %v2520_v12  ;;  %5314 = vmatpush3.msra.mxu0 %v2472_v35  ;;  %v2539_v34 = vld [vmem:[%s6034_s6 + $0xe38] sm:$0xff]  ;;  %v2554_v35 = vld [vmem:[%s6034_s6 + $0xeb0] sm:$0xff] }
 0x298   : > { %5352 = vmatpush3.msra.mxu1 %v2504_v36  ;;  %5315 = vmatprep.subr.mxu0 %v2487_v38  ;;  %v2571_v12 = vld [vmem:[%s6034_s6 + $0xf38] sm:$0xff]  ;;  %v2586_v36 = vld [vmem:[%s6034_s6 + $0xfb0] sm:$0xff] }
 0x299   : > { %5353 = vmatprep.subr.mxu1 %v2519_v39  ;;  %5316 = vmatpush3.msra.mxu0 %v2471_v15  ;;  %v2538_v38 = vld [vmem:[%s6034_s6 + $0xe30] sm:$0xff]  ;;  %v2553_v15 = vld [vmem:[%s6034_s6 + $0xea8] sm:$0xff] }
 0x29a   : > { %5354 = vmatpush3.msra.mxu1 %v2503_v41  ;;  %5317 = vmatprep.subr.mxu0 %v2486_v42  ;;  %v2570_v39 = vld [vmem:[%s6034_s6 + $0xf30] sm:$0xff]  ;;  %v2585_v41 = vld [vmem:[%s6034_s6 + $0xfa8] sm:$0xff] }
 0x29b   : > { %5355 = vmatprep.subr.mxu1 %v2518_v43  ;;  %5318 = vmatpush3.msra.mxu0 %v2470_v44  ;;  %v2537_v42 = vld [vmem:[%s6034_s6 + $0xe28] sm:$0xff]  ;;  %v2552_v44 = vld [vmem:[%s6034_s6 + $0xea0] sm:$0xff] }
 0x29c   : > { %5356 = vmatpush3.msra.mxu1 %v2502_v22  ;;  %5319 = vmatprep.subr.mxu0 %v2485_v45  ;;  %v2569_v43 = vld [vmem:[%s6034_s6 + $0xf28] sm:$0xff]  ;;  %v2584_v22 = vld [vmem:[%s6034_s6 + $0xfa0] sm:$0xff] }
 0x29d   : > { %5357 = vmatprep.subr.mxu1 %v2517_v46  ;;  %5320 = vmatpush3.msra.mxu0 %v2469_v48  ;;  %v2536_v45 = vld [vmem:[%s6034_s6 + $0xe20] sm:$0xff]  ;;  %v2551_v48 = vld [vmem:[%s6034_s6 + $0xe98] sm:$0xff] }
 0x29e   : > { %5358 = vmatpush3.msra.mxu1 %v2501_v49  ;;  %5321 = vmatprep.subr.mxu0 %v2484_v25  ;;  %v2568_v46 = vld [vmem:[%s6034_s6 + $0xf20] sm:$0xff]  ;;  %v2583_v49 = vld [vmem:[%s6034_s6 + $0xf98] sm:$0xff] }
 0x29f   : > { %5359 = vmatprep.subr.mxu1 %v2516_v51  ;;  %5322 = vmatpush3.msra.mxu0 %v2468_v52  ;;  %v2535_v25 = vld [vmem:[%s6034_s6 + $0xe18] sm:$0xff]  ;;  %v2550_v52 = vld [vmem:[%s6034_s6 + $0xe90] sm:$0xff] }
 0x2a0   : > { %3560 = vmatprep.mubr.f32.mxu0 %v5569_v55  ;;  %5360 = vmatpush3.msra.mxu1 %v2500_v53  ;;  %v2567_v51 = vld [vmem:[%s6034_s6 + $0xf18] sm:$0xff]  ;;  %v2582_v53 = vld [vmem:[%s6034_s6 + $0xf90] sm:$0xff] }
 0x2a1   : > { %3561 = vmatmul.mubr.f32.vlgmr.msra.gmra.mxu0 %v5570_v57  ;;  %3635 = vmatprep.mubr.f32.mxu1 %v5571_v60  ;;  %v2566_v55 = vld [vmem:[%s6034_s6 + $0xf10] sm:$0xff]  ;;  %v2581_v57 = vld [vmem:[%s6034_s6 + $0xf88] sm:$0xff]  ;;  %v2548_v60 = vld [vmem:[%s6034_s6 + $0xe80] sm:$0xff] }
 0x2a2   : > { %5367 = vmatprep.subr.mxu0 %v2563_v27  ;;  %5405 = vmatprep.subr.mxu1 %v2595_v56  ;;  %v2534_v27 = vld [vmem:[%s6034_s6 + $0xe10] sm:$0xff]  ;;  %v2549_v56 = vld [vmem:[%s6034_s6 + $0xe88] sm:$0xff] }
 0x2a3   : > { %3636 = vmatmul.mubr.f32.vlgmr.msra.gmra.mxu1 %v5572_v63  ;;  %5368 = vmatpush3.msra.mxu0 %v2547_v58  ;;  %v2533_v58 = vld [vmem:[%s6034_s6 + $0xe08] sm:$0xff]  ;;  %v2564_v63 = vld [vmem:[%s6034_s6 + $0xf00] sm:$0xff] }
 0x2a4   : > { %5406 = vmatpush3.msra.mxu1 %v2579_v59  ;;  %5369 = vmatprep.subr.mxu0 %v2562_v61  ;;  %v2565_v59 = vld [vmem:[%s6034_s6 + $0xf08] sm:$0xff]  ;;  %v2580_v61 = vld [vmem:[%s6034_s6 + $0xf80] sm:$0xff] }
 0x2a5   : > { %5407 = vmatprep.subr.mxu1 %v2594_v62  ;;  %3565 = vmatprep.mubr.f32.mxu0 %v5573_v4  ;;  %v2532_v62 = vld [vmem:[%s6034_s6 + $0xe00] sm:$0xff]  ;;  %v5581_v4 = vld [vmem:[#allocation3 + $0x1e8] sm:$0xff] }
 0x2a6   : > { %5370 = vmatpush3.msra.mxu0 %v2546_v40  ;;  %5408 = vmatpush3.msra.mxu1 %v2578_v1  ;;  %v5577_v40 = vld [vmem:[#allocation3 + $0xe8] sm:$0xff]  ;;  %v5578_v1 = vld [vmem:[#allocation3 + $0xf8] sm:$0xff] }
 0x2a7   : > { %3566 = vmatmul.mubr.f32.gmra.mxu0 %v5574_v5  ;;  %5371 = vmatprep.subr.mxu0 %v2561_v2  ;;  %v5579_v2 = vld [vmem:[#allocation3 + $0xe0] sm:$0xff] }
 0x2a8   : > { %5409 = vmatprep.subr.mxu1 %v2593_v3  ;;  %3640 = vmatprep.mubr.f32.mxu1 %v5575_v50  ;;  %v5580_v3 = vld [vmem:[#allocation3 + $0xf0] sm:$0xff]  ;;  %v5583_v5 = vld [vmem:[#allocation3 + $0x1e0] sm:$0xff] }
 0x2a9   : > { %5372 = vmatpush3.msra.mxu0 %v2545_v47  ;;  %5410 = vmatpush3.msra.mxu1 %v2577_v6  ;;  %v5582_v47 = vld [vmem:[#allocation3 + $0x1f8] sm:$0xff]  ;;  %v5584_v6 = vld [vmem:[#allocation3 + $0x1f0] sm:$0xff]  ;;  %v3870_v50 = vld [vmem:[%s6036_s13 + $0x1e0] sm:$0xff] }
 0x2aa   : > { %5373 = vmatprep.subr.mxu0 %v2560_v8  ;;  %3641 = vmatmul.mubr.f32.gmra.mxu1 %v5576_v16  ;;  %v3871_v8 = vld [vmem:[%s6036_s13 + $0x1e8] sm:$0xff]  ;;  %v3868_v16 = vld [vmem:[%s6036_s13 + $0x1d0] sm:$0xff] }
 0x2ab   : > { %5411 = vmatprep.subr.mxu1 %v2592_v9  ;;  %5374 = vmatpush3.msra.mxu0 %v2544_v11  ;;  %v3873_v9 = vld [vmem:[%s6036_s13 + $0x1f8] sm:$0xff]  ;;  %v3872_v11 = vld [vmem:[%s6036_s13 + $0x1f0] sm:$0xff] }
 0x2ac   : > { %5412 = vmatpush3.msra.mxu1 %v2576_v13  ;;  %5375 = vmatprep.subr.mxu0 %v2559_v14  ;;  %v3867_v13 = vld [vmem:[%s6036_s13 + $0x1c8] sm:$0xff]  ;;  %v3869_v14 = vld [vmem:[%s6036_s13 + $0x1d8] sm:$0xff] }
 0x2ad   : > { %5413 = vmatprep.subr.mxu1 %v2591_v54  ;;  %5376 = vmatpush3.msra.mxu0 %v2543_v17  ;;  %v3866_v54 = vld [vmem:[%s6036_s13 + $0x1c0] sm:$0xff]  ;;  %v3863_v17 = vld [vmem:[%s6036_s13 + $0x1a8] sm:$0xff] }
 0x2ae   : > { %5414 = vmatpush3.msra.mxu1 %v2575_v18  ;;  %5377 = vmatprep.subr.mxu0 %v2558_v19  ;;  %v3865_v18 = vld [vmem:[%s6036_s13 + $0x1b8] sm:$0xff]  ;;  %v3862_v19 = vld [vmem:[%s6036_s13 + $0x1a0] sm:$0xff] }
 0x2af   : > { %5415 = vmatprep.subr.mxu1 %v2590_v37  ;;  %5378 = vmatpush3.msra.mxu0 %v2542_v20  ;;  %v3864_v37 = vld [vmem:[%s6036_s13 + $0x1b0] sm:$0xff]  ;;  %v3859_v20 = vld [vmem:[%s6036_s13 + $0x188] sm:$0xff] }
 0x2b0   : > { %5416 = vmatpush3.msra.mxu1 %v2574_v21  ;;  %5379 = vmatprep.subr.mxu0 %v2557_v23  ;;  %v3861_v21 = vld [vmem:[%s6036_s13 + $0x198] sm:$0xff]  ;;  %v3858_v23 = vld [vmem:[%s6036_s13 + $0x180] sm:$0xff] }
 0x2b1   : > { %5417 = vmatprep.subr.mxu1 %v2589_v24  ;;  %5380 = vmatpush3.msra.mxu0 %v2541_v0  ;;  %v3860_v24 = vld [vmem:[%s6036_s13 + $0x190] sm:$0xff]  ;;  %v3855_v0 = vld [vmem:[%s6036_s13 + $0x168] sm:$0xff] }
 0x2b2   : > { %5418 = vmatpush3.msra.mxu1 %v2573_v26  ;;  %5381 = vmatprep.subr.mxu0 %v2556_v28  ;;  %v3857_v26 = vld [vmem:[%s6036_s13 + $0x178] sm:$0xff]  ;;  %v3854_v28 = vld [vmem:[%s6036_s13 + $0x160] sm:$0xff] }
 0x2b3   : > { %5419 = vmatprep.subr.mxu1 %v2588_v29  ;;  %5382 = vmatpush3.msra.mxu0 %v2540_v30  ;;  %v3856_v29 = vld [vmem:[%s6036_s13 + $0x170] sm:$0xff]  ;;  %v3851_v30 = vld [vmem:[%s6036_s13 + $0x148] sm:$0xff] }
 0x2b4   : > { %5420 = vmatpush3.msra.mxu1 %v2572_v7  ;;  %5383 = vmatprep.subr.mxu0 %v2555_v31  ;;  %v3853_v7 = vld [vmem:[%s6036_s13 + $0x158] sm:$0xff]  ;;  %v3850_v31 = vld [vmem:[%s6036_s13 + $0x140] sm:$0xff] }
 0x2b5   : > { %5421 = vmatprep.subr.mxu1 %v2587_v32  ;;  %5384 = vmatpush3.msra.mxu0 %v2539_v34  ;;  %v3852_v32 = vld [vmem:[%s6036_s13 + $0x150] sm:$0xff]  ;;  %v3847_v34 = vld [vmem:[%s6036_s13 + $0x128] sm:$0xff] }
 0x2b6   : > { %5422 = vmatpush3.msra.mxu1 %v2571_v12  ;;  %5385 = vmatprep.subr.mxu0 %v2554_v35  ;;  %v3849_v12 = vld [vmem:[%s6036_s13 + $0x138] sm:$0xff]  ;;  %v3846_v35 = vld [vmem:[%s6036_s13 + $0x120] sm:$0xff] }
 0x2b7   : > { %5423 = vmatprep.subr.mxu1 %v2586_v36  ;;  %5386 = vmatpush3.msra.mxu0 %v2538_v38  ;;  %v3848_v36 = vld [vmem:[%s6036_s13 + $0x130] sm:$0xff]  ;;  %v3843_v38 = vld [vmem:[%s6036_s13 + $0x108] sm:$0xff] }
 0x2b8   : > { %5424 = vmatpush3.msra.mxu1 %v2570_v39  ;;  %5387 = vmatprep.subr.mxu0 %v2553_v15  ;;  %v3845_v39 = vld [vmem:[%s6036_s13 + $0x118] sm:$0xff]  ;;  %v3842_v15 = vld [vmem:[%s6036_s13 + $0x100] sm:$0xff] }
 0x2b9   : > { %5425 = vmatprep.subr.mxu1 %v2585_v41  ;;  %5388 = vmatpush3.msra.mxu0 %v2537_v42  ;;  %v3844_v41 = vld [vmem:[%s6036_s13 + $0x110] sm:$0xff]  ;;  %v3839_v42 = vld [vmem:[%s6036_s13 + $0xe8] sm:$0xff] }
 0x2ba   : > { %5426 = vmatpush3.msra.mxu1 %v2569_v43  ;;  %5389 = vmatprep.subr.mxu0 %v2552_v44  ;;  %v3841_v43 = vld [vmem:[%s6036_s13 + $0xf8] sm:$0xff]  ;;  %v3838_v44 = vld [vmem:[%s6036_s13 + $0xe0] sm:$0xff] }
 0x2bb   : > { %5427 = vmatprep.subr.mxu1 %v2584_v22  ;;  %5390 = vmatpush3.msra.mxu0 %v2536_v45  ;;  %v3840_v22 = vld [vmem:[%s6036_s13 + $0xf0] sm:$0xff]  ;;  %v3835_v45 = vld [vmem:[%s6036_s13 + $0xc8] sm:$0xff] }
 0x2bc   : > { %5428 = vmatpush3.msra.mxu1 %v2568_v46  ;;  %5391 = vmatprep.subr.mxu0 %v2551_v48  ;;  %v3837_v46 = vld [vmem:[%s6036_s13 + $0xd8] sm:$0xff]  ;;  %v3834_v48 = vld [vmem:[%s6036_s13 + $0xc0] sm:$0xff] }
 0x2bd   : > { %5429 = vmatprep.subr.mxu1 %v2583_v49  ;;  %5392 = vmatpush3.msra.mxu0 %v2535_v25  ;;  %v3836_v49 = vld [vmem:[%s6036_s13 + $0xd0] sm:$0xff]  ;;  %v3831_v25 = vld [vmem:[%s6036_s13 + $0xa8] sm:$0xff] }
 0x2be   : > { %5430 = vmatpush3.msra.mxu1 %v2567_v51  ;;  %5393 = vmatprep.subr.mxu0 %v2550_v52  ;;  %v3833_v51 = vld [vmem:[%s6036_s13 + $0xb8] sm:$0xff]  ;;  %v3830_v52 = vld [vmem:[%s6036_s13 + $0xa0] sm:$0xff] }
 0x2bf   : > { %5431 = vmatprep.subr.mxu1 %v2582_v53  ;;  %5394 = vmatpush3.msra.mxu0 %v2534_v27  ;;  %v3832_v53 = vld [vmem:[%s6036_s13 + $0xb0] sm:$0xff]  ;;  %v3827_v27 = vld [vmem:[%s6036_s13 + $0x88] sm:$0xff] }
 0x2c0   : > { %5432 = vmatpush3.msra.mxu1 %v2566_v55  ;;  %5395 = vmatprep.subr.mxu0 %v2549_v56  ;;  %v3829_v55 = vld [vmem:[%s6036_s13 + $0x98] sm:$0xff]  ;;  %v3826_v56 = vld [vmem:[%s6036_s13 + $0x80] sm:$0xff] }
 0x2c1   : > { %5433 = vmatprep.subr.mxu1 %v2581_v57  ;;  %5396 = vmatpush3.msra.mxu0 %v2533_v58  ;;  %v3828_v57 = vld [vmem:[%s6036_s13 + $0x90] sm:$0xff]  ;;  %v3823_v58 = vld [vmem:[%s6036_s13 + $0x68] sm:$0xff] }
 0x2c2   : > { %5434 = vmatpush3.msra.mxu1 %v2565_v59  ;;  %5397 = vmatprep.subr.mxu0 %v2548_v60  ;;  %v3825_v59 = vld [vmem:[%s6036_s13 + $0x78] sm:$0xff]  ;;  %v3822_v60 = vld [vmem:[%s6036_s13 + $0x60] sm:$0xff] }
 0x2c3   : > { %5435 = vmatprep.subr.mxu1 %v2580_v61  ;;  %5398 = vmatpush3.msra.mxu0 %v2532_v62  ;;  %v3824_v61 = vld [vmem:[%s6036_s13 + $0x70] sm:$0xff]  ;;  %v3819_v62 = vld [vmem:[%s6036_s13 + $0x48] sm:$0xff] }
 0x2c4   : > { %3710 = vmatprep.mubr.f32.mxu0 %v5577_v40  ;;  %5436 = vmatpush3.msra.mxu1 %v2564_v63  ;;  %v3821_v63 = vld [vmem:[%s6036_s13 + $0x58] sm:$0xff]  ;;  %v3818_v40 = vld [vmem:[%s6036_s13 + $0x40] sm:$0xff] }
 0x2c5   : > { %3785 = vmatprep.mubr.f32.mxu1 %v5578_v1  ;;  %3711 = vmatmul.mubr.f32.vlgmr.msra.gmra.mxu0 %v5579_v2  ;;  %v3820_v1 = vld [vmem:[%s6036_s13 + $0x50] sm:$0xff]  ;;  %v3815_v2 = vld [vmem:[%s6036_s13 + $0x28] sm:$0xff] }
 0x2c6   : > { %3786 = vmatmul.mubr.f32.vlgmr.msra.gmra.mxu1 %v5580_v3  ;;  %3715 = vmatprep.mubr.f32.mxu0 %v5581_v4  ;;  %v3817_v3 = vld [vmem:[%s6036_s13 + $0x38] sm:$0xff]  ;;  %v3814_v4 = vld [vmem:[%s6036_s13 + $0x20] sm:$0xff] }
 0x2c7   : > { %3790 = vmatprep.mubr.f32.mxu1 %v5582_v47  ;;  %3874 = vmatprep.subr.mxu0 %v3871_v8  ;;  %v3816_v47 = vld [vmem:[%s6036_s13 + $0x30] sm:$0xff]  ;;  %v3810_v8 = vld [vmem:[%s6036_s13] sm:$0xff] }
 0x2c8   : > { %3951 = vmatprep.subr.mxu1 %v3873_v9  ;;  %3875 = vmatpush1.msra.mxu0 %v3870_v50  ;;  %v3812_v9 = vld [vmem:[%s6036_s13 + $0x10] sm:$0xff]  ;;  %v5795_v50 = vmov 0.0  }
 0x2c9   : > { %3716 = vmatmul.mubr.f32.gmra.mxu0 %v5583_v5  ;;  %3952 = vmatpush1.msra.mxu1 %v3872_v11  ;;  %v3811_v5 = vld [vmem:[%s6036_s13 + $0x8] sm:$0xff]  ;;  %v4867_v11 = vpop.f32.mrf.mxu0 }
 0x2ca   : > { %3791 = vmatmul.mubr.f32.gmra.mxu1 %v5584_v6  ;;  %3876 = vmatprep.subr.mxu0 %v3867_v13  ;;  %v3813_v6 = vld [vmem:[%s6036_s13 + $0x18] sm:$0xff]  ;;  %v4905_v13 = vpop.f32.mrf.mxu1 }
 0x2cb   : > { %3953 = vmatprep.subr.mxu1 %v3869_v14  ;;  %3877 = vmatpush1.msra.mxu0 %v3866_v54  ;;  %v4868_v14 = vpop.f32.mrf.mxu0 }
 0x2cc   : > { %3954 = vmatpush1.msra.mxu1 %v3868_v16  ;;  %3878 = vmatprep.subr.mxu0 %v3863_v17  ;;  %v4906_v16 = vpop.f32.mrf.mxu1 }
 0x2cd   : > { %3955 = vmatprep.subr.mxu1 %v3865_v18  ;;  %3879 = vmatpush1.msra.mxu0 %v3862_v19  ;;  %v4870_v54 = vpop.f32.mrf.mxu0 }
 0x2ce   : > { %3956 = vmatpush1.msra.mxu1 %v3864_v37  ;;  %3880 = vmatprep.subr.mxu0 %v3859_v20  ;;  %v4908_v17 = vpop.f32.mrf.mxu1 }
 0x2cf   : > { %3957 = vmatprep.subr.mxu1 %v3861_v21  ;;  %3881 = vmatpush1.msra.mxu0 %v3858_v23  ;;  %v4871_v18 = vpop.f32.mrf.mxu0 }
 0x2d0   : > { %3958 = vmatpush1.msra.mxu1 %v3860_v24  ;;  %3882 = vmatprep.subr.mxu0 %v3855_v0  ;;  %v4909_v19 = vpop.f32.mrf.mxu1 }
 0x2d1   : > { %3959 = vmatprep.subr.mxu1 %v3857_v26  ;;  %3883 = vmatpush1.msra.mxu0 %v3854_v28  ;;  %v4943_v37 = vpop.f32.mrf.mxu0 }
 0x2d2   : > { %3960 = vmatpush1.msra.mxu1 %v3856_v29  ;;  %3884 = vmatprep.subr.mxu0 %v3851_v30  ;;  %v4981_v20 = vpop.f32.mrf.mxu1 }
 0x2d3   : > { %3961 = vmatprep.subr.mxu1 %v3853_v7  ;;  %3885 = vmatpush1.msra.mxu0 %v3850_v31  ;;  %v4944_v21 = vpop.f32.mrf.mxu0 }
 0x2d4   : > { %3962 = vmatpush1.msra.mxu1 %v3852_v32  ;;  %3886 = vmatprep.subr.mxu0 %v3847_v34  ;;  %v4982_v23 = vpop.f32.mrf.mxu1 }
 0x2d5   : > { %3963 = vmatprep.subr.mxu1 %v3849_v12  ;;  %3887 = vmatpush1.msra.mxu0 %v3846_v35  ;;  %v4946_v24 = vpop.f32.mrf.mxu0 }
 0x2d6   : > { %3964 = vmatpush1.msra.mxu1 %v3848_v36  ;;  %3888 = vmatprep.subr.mxu0 %v3843_v38  ;;  %v4984_v0 = vpop.f32.mrf.mxu1 }
 0x2d7   : > { %3965 = vmatprep.subr.mxu1 %v3845_v39  ;;  %3889 = vmatpush1.msra.mxu0 %v3842_v15  ;;  %v4947_v26 = vpop.f32.mrf.mxu0 }
 0x2d8   : > { %3966 = vmatpush1.msra.mxu1 %v3844_v41  ;;  %3890 = vmatprep.subr.mxu0 %v3839_v42  ;;  %v4985_v28 = vpop.f32.mrf.mxu1 }
 0x2d9   : > { %3967 = vmatprep.subr.mxu1 %v3841_v43  ;;  %3891 = vmatpush1.msra.mxu0 %v3838_v44  ;;  %v5019_v29 = vpop.f32.mrf.mxu0 }
 0x2da   : > { %3968 = vmatpush1.msra.mxu1 %v3840_v22  ;;  %3892 = vmatprep.subr.mxu0 %v3835_v45  ;;  %v5057_v30 = vpop.f32.mrf.mxu1 }
 0x2db   : > { %3969 = vmatprep.subr.mxu1 %v3837_v46  ;;  %3893 = vmatpush1.msra.mxu0 %v3834_v48  ;;  %v5020_v7 = vpop.f32.mrf.mxu0 }
 0x2dc   : > { %3970 = vmatpush1.msra.mxu1 %v3836_v49  ;;  %3894 = vmatprep.subr.mxu0 %v3831_v25  ;;  %v5058_v31 = vpop.f32.mrf.mxu1  ;;  %v4869_v49 = vadd.f32 %v4868_v14, %v4867_v11  ;;  %v4907_v25 = vadd.f32 %v4906_v16, %v4905_v13 }
 0x2dd   : > { %3971 = vmatprep.subr.mxu1 %v3833_v51  ;;  %3895 = vmatpush1.msra.mxu0 %v3830_v52  ;;  %v5022_v32 = vpop.f32.mrf.mxu0  ;;  %v4945_v52 = vadd.f32 %v4944_v21, %v4943_v37 }
 0x2de   : > { %3972 = vmatpush1.msra.mxu1 %v3832_v53  ;;  %3896 = vmatprep.subr.mxu0 %v3827_v27  ;;  %v5060_v34 = vpop.f32.mrf.mxu1  ;;  %v2738_v27 = vadd.f32 %v4907_v25, %v4869_v49 }
 0x2df   : > { %3973 = vmatprep.subr.mxu1 %v3829_v55  ;;  %3897 = vmatpush1.msra.mxu0 %v3826_v56  ;;  %v5023_v12 = vpop.f32.mrf.mxu0  ;;  %v4872_v55 = vadd.f32 %v4871_v18, %v4870_v54  ;;  %v4910_v56 = vadd.f32 %v4909_v19, %v4908_v17 }
 0x2e0   : > { %3974 = vmatpush1.msra.mxu1 %v3828_v57  ;;  %3898 = vmatprep.subr.mxu0 %v3823_v58  ;;  %v5061_v35 = vpop.f32.mrf.mxu1  ;;  %v2813_v58 = vadd.f32 %v4945_v52, %v2738_v27 }
 0x2e1   : > { %3975 = vmatprep.subr.mxu1 %v3825_v59  ;;  %3899 = vmatpush1.msra.mxu0 %v3822_v60  ;;  %v4983_v59 = vadd.f32 %v4982_v23, %v4981_v20  ;;  %v4948_v60 = vadd.f32 %v4947_v26, %v4946_v24  ;;  %v5062_v17 = vadd.f32 %v5061_v35, %v5060_v34 }
 0x2e2   : > { %3976 = vmatpush1.msra.mxu1 %v3824_v61  ;;  %3900 = vmatprep.subr.mxu0 %v3819_v62 }
 0x2e3   : > { %3977 = vmatprep.subr.mxu1 %v3821_v63  ;;  %3901 = vmatpush1.msra.mxu0 %v3818_v40  ;;  %v2743_v63 = vadd.f32 %v4910_v56, %v4872_v55  ;;  %v5021_v40 = vadd.f32 %v5020_v7, %v5019_v29 }
 0x2e4   : > { %3978 = vmatpush1.msra.mxu1 %v3820_v1  ;;  %3902 = vmatprep.subr.mxu0 %v3815_v2  ;;  %v2888_v2 = vadd.f32 %v4983_v59, %v2813_v58 }
 0x2e5   : > { %3979 = vmatprep.subr.mxu1 %v3817_v3  ;;  %3903 = vmatpush1.msra.mxu0 %v3814_v4  ;;  %v2818_v3 = vadd.f32 %v4948_v60, %v2743_v63  ;;  %v4986_v4 = vadd.f32 %v4985_v28, %v4984_v0 }
 0x2e6   : > { %3980 = vmatpush1.msra.mxu1 %v3816_v47  ;;  %3904 = vmatprep.subr.mxu0 %v3811_v5  ;;  %v2963_v5 = vadd.f32 %v5021_v40, %v2888_v2 }
 0x2e7   : > { %3981 = vmatprep.subr.mxu1 %v3813_v6  ;;  %3905 = vmatpush1.msra.mxu0 %v3810_v8  ;;  %v5059_v6 = vadd.f32 %v5058_v31, %v5057_v30  ;;  %v5024_v8 = vadd.f32 %v5023_v12, %v5022_v32  ;;  %v2893_v11 = vadd.f32 %v4986_v4, %v2818_v3 }
 0x2e8   : > { %3938 = vmatprep.mubr.f32.mxu0 %v5795_v50  ;;  %3982 = vmatpush1.msra.mxu1 %v3812_v9 }
 0x2e9   : > { %4015 = vmatprep.mubr.f32.mxu1 %v5795_v50  ;;  %v3038_v54 = vadd.f32 %v5059_v6, %v2963_v5  ;;  %v2968_v16 = vadd.f32 %v5024_v8, %v2893_v11 }
 0x2eb   : > { %v3043_v23 = vadd.f32 %v5062_v17, %v2968_v16 }
 0x2f5   : > { %v5095_v36 = vpop.f32.mrf.mxu0 }
 0x2f7   : > { %v5133_v38 = vpop.f32.mrf.mxu1  ;;  %v5096_v39 = vpop.f32.mrf.mxu0 }
 0x2f8   : > { %v5097_v13 = vadd.f32 %v5096_v39, %v5095_v36 }
 0x2f9   : > { %v5134_v15 = vpop.f32.mrf.mxu1 }
 0x2fa   : > { %v3113_v19 = vadd.f32 %v5097_v13, %v3038_v54  ;;  %v5135_v37 = vadd.f32 %v5134_v15, %v5133_v38  ;;  %v3796_v13 = vmul.f32 %v6952_v10, %v6952_v10  ;;  %v3804_v10 = vld [vmem:[#allocation2 + $0x18] sm:$0xff] }
 0x2fb   : > { %v5098_v41 = vpop.f32.mrf.mxu0 }
 0x2fc   : > { %v3188_v28 = vadd.f32 %v5135_v37, %v3113_v19  ;;  %v3797_v19 = vmul.f32 %v6971_v33, %v6971_v33 }
 0x2fd   : > { %v5099_v43 = vpop.f32.mrf.mxu0 }
 0x2fe   : > { %v5136_v42 = vpop.f32.mrf.mxu1  ;;  %v5100_v20 = vadd.f32 %v5099_v43, %v5098_v41 }
 0x300   : > { %v5137_v44 = vpop.f32.mrf.mxu1  ;;  %v3118_v29 = vadd.f32 %v5100_v20, %v3043_v23 }
 0x301   : > { %v5138_v30 = vadd.f32 %v5137_v44, %v5136_v42 }
 0x303   : > { %v3193_v39 = vadd.f32 %v5138_v30, %v3118_v29 }
 0x319   : > { %v5171_v22 = vpop.f32.mrf.mxu0 }
 0x31b   : > { %v5209_v45 = vpop.f32.mrf.mxu1  ;;  %v5172_v46 = vpop.f32.mrf.mxu0 }
 0x31c   : > { %v5173_v24 = vadd.f32 %v5172_v46, %v5171_v22 }
 0x31d   : > { %v5210_v48 = vpop.f32.mrf.mxu1 }
 0x31e   : > { %v3263_v31 = vadd.f32 %v5173_v24, %v3188_v28  ;;  %v5211_v32 = vadd.f32 %v5210_v48, %v5209_v45 }
 0x31f   : > { %v5174_v51 = vpop.f32.mrf.mxu0 }
 0x320   : > { %v3338_v35 = vadd.f32 %v5211_v32, %v3263_v31  ;;  %v3808_v31 = vld [vmem:[#allocation2 + $0x28] sm:$0xff] }
 0x321   : > { %v5175_v57 = vpop.f32.mrf.mxu0 }
 0x322   : > { %v5212_v53 = vpop.f32.mrf.mxu1  ;;  %v5176_v12 = vadd.f32 %v5175_v57, %v5174_v51 }
 0x324   : > { %v5213_v61 = vpop.f32.mrf.mxu1  ;;  %v3268_v25 = vadd.f32 %v5176_v12, %v3193_v39  ;;  %v3807_v39 = vld [vmem:[#allocation2 + $0x20] sm:$0xff] }
 0x325   : > { %v5214_v38 = vadd.f32 %v5213_v61, %v5212_v53 }
 0x327   : > { %v3343_v52 = vadd.f32 %v5214_v38, %v3268_v25 }
 0x33d   : > { %v5247_v62 = vpop.f32.mrf.mxu0 }
 0x33f   : > { %v5285_v1 = vpop.f32.mrf.mxu1  ;;  %v5248_v47 = vpop.f32.mrf.mxu0 }
 0x340   : > { %v5249_v49 = vadd.f32 %v5248_v47, %v5247_v62 }
 0x341   : > { %v5286_v9 = vpop.f32.mrf.mxu1 }
 0x342   : > { %v3413_v41 = vadd.f32 %v5249_v49, %v3338_v35  ;;  %v5287_v43 = vadd.f32 %v5286_v9, %v5285_v1  ;;  %v3809_v49 = vld [vmem:[#allocation2 + $0x38] sm:$0xff] }
 0x343   : > { %v5250_v14 = vpop.f32.mrf.mxu0 }
 0x344   : > { %v3488_v42 = vadd.f32 %v5287_v43, %v3413_v41 }
 0x345   : > { %v5251_v21 = vpop.f32.mrf.mxu0 }
 0x346   : > { %v5288_v18 = vpop.f32.mrf.mxu1  ;;  %v5252_v22 = vadd.f32 %v5251_v21, %v5250_v14  ;;  %v3802_v21 = vld [vmem:[#allocation2 + $0x30] sm:$0xff] }
 0x348   : > { %v5289_v26 = vpop.f32.mrf.mxu1  ;;  %v3418_v44 = vadd.f32 %v5252_v22, %v3343_v52 }
 0x349   : > { %v5290_v56 = vadd.f32 %v5289_v26, %v5288_v18  ;;  %v3803_v26 = vld [vmem:[#allocation2] sm:$0xff] }
 0x34b   : > { %v3493_v60 = vadd.f32 %v5290_v56, %v3418_v44 }
 0x361   : > { %v5323_v0 = vpop.f32.mrf.mxu0 }
 0x363   : > { %v5361_v7 = vpop.f32.mrf.mxu1  ;;  %v5324_v36 = vpop.f32.mrf.mxu0 }
 0x364   : > { %v5325_v27 = vadd.f32 %v5324_v36, %v5323_v0  ;;  %v3805_v0 = vld [vmem:[#allocation2 + $0x10] sm:$0xff] }
 0x365   : > { %v5362_v34 = vpop.f32.mrf.mxu1 }
 0x366   : > { %v3563_v48 = vadd.f32 %v5325_v27, %v3488_v42  ;;  %v5363_v51 = vadd.f32 %v5362_v34, %v5361_v7  ;;  %v3806_v7 = vld [vmem:[#allocation2 + $0x8] sm:$0xff] }
 0x367   : > { %v5326_v15 = vpop.f32.mrf.mxu0 }
 0x368   : > { %v3638_v61 = vadd.f32 %v5363_v51, %v3563_v48 }
 0x369   : > { %v5327_v55 = vpop.f32.mrf.mxu0 }
 0x36a   : > { %v5364_v46 = vpop.f32.mrf.mxu1  ;;  %v5328_v57 = vadd.f32 %v5327_v55, %v5326_v15 }
 0x36c   : > { %v5365_v45 = vpop.f32.mrf.mxu1  ;;  %v3568_v63 = vadd.f32 %v5328_v57, %v3493_v60 }
 0x36d   : > { %v5366_v40 = vadd.f32 %v5365_v45, %v5364_v46 }
 0x36f   : > { %v3643_v8 = vadd.f32 %v5366_v40, %v3568_v63 }
 0x385   : > { %v5399_v58 = vpop.f32.mrf.mxu0 }
 0x386   : > { %v5437_v59 = vpop.f32.mrf.mxu1 }
 0x387   : > { %v5400_v62 = vpop.f32.mrf.mxu0 }
 0x388   : > { %v5438_v53 = vpop.f32.mrf.mxu1  ;;  %v5401_v1 = vadd.f32 %v5400_v62, %v5399_v58 }
 0x389   : > { %v5402_v2 = vpop.f32.mrf.mxu0  ;;  %v5439_v47 = vadd.f32 %v5438_v53, %v5437_v59 }
 0x38a   : > { %v5440_v3 = vpop.f32.mrf.mxu1  ;;  %v3713_v4 = vadd.f32 %v5401_v1, %v3638_v61 }
 0x38b   : > { %v5403_v5 = vpop.f32.mrf.mxu0 }
 0x38c   : > { %v5441_v6 = vpop.f32.mrf.mxu1  ;;  %v3788_v9 = vadd.f32 %v5439_v47, %v3713_v4  ;;  %v5404_v11 = vadd.f32 %v5403_v5, %v5402_v2 }
 0x38d   : > { %v5442_v16 = vadd.f32 %v5441_v6, %v5440_v3 }
 0x38e   : > { %v3798_v14 = vmul.f32 %v3788_v9, %v3788_v9  ;;  %v3718_v54 = vadd.f32 %v5404_v11, %v3643_v8 }
 0x390   : > { %v3800_v17 = vadd.f32 %v3798_v14, %v3796_v13  ;;  %v3793_v18 = vadd.f32 %v5442_v16, %v3718_v54 }
 0x392   : > { %v3799_v37 = vmul.f32 %v3793_v18, %v3793_v18  ;;  %3939 = vmatmul.mubr.f32.vlgmr.msra.gmra.mxu0 %v3800_v17  ;;  %4016 = vmatmul.mubr.f32.vlgmr.msra.gmra.mxu1 %v3800_v17 }
 0x393   : > { %3944 = vmatprep.mubr.f32.mxu0 %v5795_v50  ;;  %4021 = vmatprep.mubr.f32.mxu1 %v5795_v50 }
 0x394   : > { %v3801_v20 = vadd.f32 %v3799_v37, %v3797_v19 }
 0x396   : > { %3945 = vmatmul.mubr.f32.gmra.mxu0 %v3801_v20  ;;  %4022 = vmatmul.mubr.f32.gmra.mxu1 %v3801_v20 }
 0x452   : > { %v3940_v23 = vpop.f32.mrf.mxu0  ;;  %v4017_v24 = vpop.f32.mrf.mxu1 }
 0x453   : > { %v4028_v28 = vadd.f32 %v3940_v23, %v3802_v21  ;;  %v4030_v29 = vadd.f32 %v4017_v24, %v3804_v10 }
 0x454   : > { %v3942_v30 = vpop.f32.mrf.mxu0  ;;  %v4019_v33 = vpop.f32.mrf.mxu1 }
 0x455   : > { %4036 = vst [vmem:[#allocation2 + $0x30] sm:$0xff] %v4028_v28  ;;  %4038 = vst [vmem:[#allocation2 + $0x18] sm:$0xff] %v4030_v29  ;;  %v4029_v32 = vadd.f32 %v3942_v30, %v3803_v26  ;;  %v4031_v12 = vadd.f32 %v4019_v33, %v3805_v0 }
 0x456   : > { %v3946_v50 = vpop.f32.mrf.mxu0  ;;  %v4023_v36 = vpop.f32.mrf.mxu1 }
 0x457   : > { %4037 = vst [vmem:[#allocation2] sm:$0xff] %v4029_v32  ;;  %4039 = vst [vmem:[#allocation2 + $0x10] sm:$0xff] %v4031_v12  ;;  %v4032_v34 = vadd.f32 %v3946_v50, %v3806_v7  ;;  %v4034_v35 = vadd.f32 %v4023_v36, %v3808_v31  ;;  %4047 = sbr.rel (%p4220_p9) target bundleno = 1144 (0x478), region = 60 }
 0x458   : > { %v3948_v25 = vpop.f32.mrf.mxu0  ;;  %v4025_v38 = vpop.f32.mrf.mxu1 }
 0x459   : > { %4040 = vst [vmem:[#allocation2 + $0x8] sm:$0xff] %v4032_v34  ;;  %4042 = vst [vmem:[#allocation2 + $0x28] sm:$0xff] %v4034_v35  ;;  %v4033_v15 = vadd.f32 %v3948_v25, %v3807_v39  ;;  %v4035_v41 = vadd.f32 %v4025_v38, %v3809_v49 }
 0x45b   : > { %4041 = vst [vmem:[#allocation2 + $0x20] sm:$0xff] %v4033_v15  ;;  %4043 = vst [vmem:[#allocation2 + $0x38] sm:$0xff] %v4035_v41 }
 0x45c   : > { %v4048_v43 = vld [vmem:[#allocation2 + $0x30] sm:$0xff]  ;;  %v4050_v46 = vld [vmem:[#allocation2 + $0x18] sm:$0xff] }
 0x45d   : > { %v4056_v52 = vmax.f32 %v4048_v43, 1e-06  ;;  %v4058_v55 = vmax.f32 %v4050_v46, 1e-06 }
 0x45e   : > { %v4049_v22 = vld [vmem:[#allocation2] sm:$0xff]  ;;  %v4051_v42 = vld [vmem:[#allocation2 + $0x10] sm:$0xff] }
 0x45f   : > { %v4057_v27 = vmax.f32 %v4049_v22, 1e-06  ;;  %5585 = vlog2.f32 %v4056_v52  ;;  %v4059_v45 = vmax.f32 %v4051_v42, 1e-06 }
 0x460   : > { %v4052_v44 = vld [vmem:[#allocation2 + $0x8] sm:$0xff] }
 0x461   : > { %v4060_v48 = vmax.f32 %v4052_v44, 1e-06  ;;  %5587 = vlog2.f32 %v4057_v27  ;;  %v4054_v57 = vld [vmem:[#allocation2 + $0x28] sm:$0xff] }
 0x462   : > { %v4053_v56 = vld [vmem:[#allocation2 + $0x20] sm:$0xff]  ;;  %v4055_v58 = vld [vmem:[#allocation2 + $0x38] sm:$0xff]  ;;  %5589 = vlog2.f32 %v4058_v55  ;;  %v4062_v59 = vmax.f32 %v4054_v57, 1e-06 }
 0x463   : > { %v4061_v51 = vmax.f32 %v4053_v56, 1e-06  ;;  %5591 = vlog2.f32 %v4059_v45  ;;  %v4063_v60 = vmax.f32 %v4055_v58, 1e-06 }
 0x464   : > { %5593 = vlog2.f32 %v4060_v48 }
 0x465   : > { %5595 = vlog2.f32 %v4061_v51 }
 0x466   : > { %5597 = vlog2.f32 %v4062_v59 }
 0x467   : > { %5599 = vlog2.f32 %v4063_v60 }
 0x46c   : > { %v5586_v62 = vpop.eup %5585 }
 0x46d   : > { %v4065_v61 = vmul.f32 0.6931472, %v5586_v62 }
 0x46e   : > { %v5588_v53 = vpop.eup %5587 }
 0x46f   : > { %v5590_v63 = vpop.eup %5589  ;;  %v4067_v40 = vmul.f32 0.6931472, %v5588_v53  ;;  %4080 = vst [vmem:[#allocation11] sm:$0xff] %v4065_v61 }
 0x470   : > { %v5592_v1 = vpop.eup %5591  ;;  %v4069_v2 = vmul.f32 0.6931472, %v5590_v63 }
 0x471   : > { %v5594_v3 = vpop.eup %5593  ;;  %4081 = vst [vmem:[#allocation11 + $0x8] sm:$0xff] %v4067_v40  ;;  %v4071_v4 = vmul.f32 0.6931472, %v5592_v1 }
 0x472   : > { %v5596_v47 = vpop.eup %5595  ;;  %4082 = vst [vmem:[#allocation11 + $0x10] sm:$0xff] %v4069_v2  ;;  %v4073_v5 = vmul.f32 0.6931472, %v5594_v3 }
 0x473   : > { %v5598_v6 = vpop.eup %5597  ;;  %4083 = vst [vmem:[#allocation11 + $0x18] sm:$0xff] %v4071_v4  ;;  %v4075_v8 = vmul.f32 0.6931472, %v5596_v47 }
 0x474   : > { %v5600_v9 = vpop.eup %5599  ;;  %4084 = vst [vmem:[#allocation11 + $0x20] sm:$0xff] %v4073_v5  ;;  %v4077_v11 = vmul.f32 0.6931472, %v5598_v6 }
 0x475   : > { %4085 = vst [vmem:[#allocation11 + $0x28] sm:$0xff] %v4075_v8  ;;  %v4079_v13 = vmul.f32 0.6931472, %v5600_v9 }
 0x476   : > { %4086 = vst [vmem:[#allocation11 + $0x30] sm:$0xff] %v4077_v11 }
 0x477   : > { %4087 = vst [vmem:[#allocation11 + $0x38] sm:$0xff] %v4079_v13 }
 0x478 PF: > { %p5474_p10 = scmp.eq.s32.totalorder %s5922_s20, 16  ;;  %s5796_s25 = smov [#allocation11]  }
 0x479   : > { %s4094_s10 = sshll.u32 %s5796_s25, 4  ;;  %s4095_s10 = int_to_ptr.vmem [resolvable:$true] %s4094_s10 }
 0x47a   : > { %s5711_s23 = scalar_lea.vmem %s4095_s10, 1024  ;;  %p5718_p11 = scmp.lt.s32.totalorder %s4095_s10, %s4095_s10 }
 0x47b   : > { %p5712_p13 = scmp.ne.s32.totalorder %s4095_s10, %s5711_s23  ;;  %p5719_p12 = scmp.lt.s32.totalorder %s5711_s23, %s5711_s23 }
 0x47d   : > { %p5713_p1 = pnand %p5712_p13, %p5474_p10  ;;  %p5720_p2 = por %p5719_p12, %p5718_p11 }
 0x47f   : > { %p5714_p3 = pneg %p5713_p1 }
 0x481   : > { %p5721_p4 = pnand %p5720_p2, %p5714_p3 }
 0x483   : > { %5724 = shalt.err (!%p5721_p4)
}
 0x484   : > { %s5797_s28 = smov 512   ;;  %s5798_s21 = smov 32  }
 0x485   : > { %5454 = dma.vmem_to_hbm [thread:$0]  (%p5474_p10), %s4095_s10, 1024, %s7213_s4, [#allocation5], %s5797_s28, %s5797_s28, %s5798_s21  }
 0x486   : > { %5764 = dma.done.wait (%p5474_p10), [#allocation5], 1024  }
 0x487   : > { %5766 = vsyncadd (%p5474_p10), [#allocation5], 4294966272 }
 0x488 PF: > { %p19_p7 = scmp.ge.s32.totalorder %s5845_s19, 19   ;;  %s7232_s15 = smov %s5773_s16 }
 0x489   : > { %s7233_s16 = smov %s5777_s17  ;;  %s7234_s17 = smov %s5855_s22 }
 0x48a   : > { %s7235_s18 = smov %s5845_s19  ;;  %21 = sbr.rel (!%p19_p7) target bundleno = 7 (0x7), region = 110 }
 0x48f   :  { %4110 = vsyncpa [#allocation4], 1 }
 0x490   :  { %4112 = vsyncpa [#allocation4 + $0x1], 1 }
 0x491   :  { %4113 = vsyncpa [#allocation7], 1 }
 0x492   :  { %4115 = vsyncpa [#allocation7 + $0x1], 1 }
 0x493   :  { %4116 = vsyncpa [#allocation10], 1 }
 0x494   :  { %4118 = vsyncpa [#allocation10 + $0x1], 1 }
 0x495   :  { %4119 = vsyncpa [#allocation5], 1 }
 0x496   :  { %4121 = vsyncpa [#allocation5 + $0x1], 1 }

</bundles_post_ra>
